<compile_context>
chip_gen: v5e
topology: v5e:2x2
jax: 0.10.0
libtpu: 0.0.40
codegen_flags: <defaults>
</compile_context>

<pallas_src>
import functools

import jax
import jax.numpy as jnp
from jax import lax
from jax.experimental import pallas as pl
from jax.experimental.pallas import tpu as pltpu

BN_EPS = 1e-5
LANES = 128    # lane-dense channel padding for all in-kernel buffers
K = 3          # conv kernel size (conv_kernel_args default)


# ----------------------------------------------------------------------------
# Fused kernel: conv1+BN+ReLU+pool -> conv2+BN+ReLU+pool -> flatten -> dense head
# ----------------------------------------------------------------------------
def _vcnn_fused_kernel(p1_ref, w1_ref, w2_ref, w3_ref, b3_ref, w4_ref, b4_ref,
                       out_ref, s1, sp1, spat, s2, sp2, sflat, *, k):
    B, ph1 = s1.shape[0], s1.shape[1]      # pool-padded grid of block 1 (16)
    op1 = sp1.shape[1]                     # pooled size of block 1 (8)
    ph2 = s2.shape[1]                      # pool-padded grid of block 2 (8)
    op2 = sp2.shape[1]                     # pooled size of block 2 (4)
    oh2 = op1 - k + 1                      # conv-2 output size (6)
    L = LANES
    spat_l = spat.shape[-1]                # (k*k + 1) * 128 = 1280

    # ---- Block 1: conv (+ bias + BN fused into w1) + ReLU on the pool-padded grid.
    # Padding rows of p1 are all-zero (incl. bias column) so they stay exactly 0
    # after ReLU, which is the identity element for max over ReLU'd activations.
    y1 = jnp.dot(p1_ref[...], w1_ref[...], preferred_element_type=jnp.float32)
    s1[...] = jnp.maximum(y1, 0.0).reshape(B, ph1, ph1, L)

    # ---- MaxPool2d(kernel=2, stride=2, padding=1): 4 strided corner loads + max.
    pooled1 = jnp.maximum(
        jnp.maximum(s1[:, pl.ds(0, op1, stride=2), pl.ds(0, op1, stride=2), :],
                    s1[:, pl.ds(0, op1, stride=2), pl.ds(1, op1, stride=2), :]),
        jnp.maximum(s1[:, pl.ds(1, op1, stride=2), pl.ds(0, op1, stride=2), :],
                    s1[:, pl.ds(1, op1, stride=2), pl.ds(1, op1, stride=2), :]))
    sp1[...] = pooled1

    # ---- Block-2 im2col, lane-aligned: each conv tap and the bias indicator owns a
    # full 128-lane block -> unmasked full-width stores.  Only the 1-row pool border
    # needs zeroing (interior lanes are all overwritten below).
    spat[:, 0:1, :, :] = jnp.zeros((B, 1, ph2, spat_l), jnp.float32)
    spat[:, ph2 - 1:ph2, :, :] = jnp.zeros((B, 1, ph2, spat_l), jnp.float32)
    spat[:, :, 0:1, :] = jnp.zeros((B, ph2, 1, spat_l), jnp.float32)
    spat[:, :, ph2 - 1:ph2, :] = jnp.zeros((B, ph2, 1, spat_l), jnp.float32)
    for kh in range(k):
        for kw in range(k):
            col = (kh * k + kw) * L
            spat[:, 1:1 + oh2, 1:1 + oh2, col:col + L] = (
                sp1[:, kh:kh + oh2, kw:kw + oh2, :])
    bias_col = k * k * L
    spat[:, 1:1 + oh2, 1:1 + oh2, bias_col:bias_col + L] = jnp.ones(
        (B, oh2, oh2, L), jnp.float32)

    # ---- Block 2: conv (+ bias + BN fused into w2) + ReLU, bf16 MXU operands.
    lhs2 = spat[...].reshape(B * ph2 * ph2, spat_l).astype(jnp.bfloat16)
    y2 = jnp.dot(lhs2, w2_ref[...], preferred_element_type=jnp.float32)
    s2[...] = jnp.maximum(y2, 0.0).reshape(B, ph2, ph2, L)

    # ---- MaxPool2d(kernel=2, stride=2, padding=1) again.
    pooled2 = jnp.maximum(
        jnp.maximum(s2[:, pl.ds(0, op2, stride=2), pl.ds(0, op2, stride=2), :],
                    s2[:, pl.ds(0, op2, stride=2), pl.ds(1, op2, stride=2), :]),
        jnp.maximum(s2[:, pl.ds(1, op2, stride=2), pl.ds(0, op2, stride=2), :],
                    s2[:, pl.ds(1, op2, stride=2), pl.ds(1, op2, stride=2), :]))
    sp2[...] = pooled2

    # ---- Flatten: lane-aligned 128-wide blocks per (i, j).  nn.Flatten's (c, h, w)
    # order and the channel zero-padding are absorbed in the host-side layout of w3.
    for i in range(op2):
        for j in range(op2):
            off = (i * op2 + j) * L
            sflat[:, off:off + L] = sp2[:, i, j, :]

    # ---- Dense head: Linear -> ReLU -> (Dropout = identity) -> Linear; everything
    # lane-padded to 128 so all stores / DMAs are unmasked.
    h = jnp.dot(sflat[...].astype(jnp.bfloat16), w3_ref[...],
                preferred_element_type=jnp.float32) + b3_ref[...]
    h = jnp.maximum(h, 0.0)
    out_ref[...] = jnp.dot(h.astype(jnp.bfloat16), w4_ref[...],
                           preferred_element_type=jnp.float32) + b4_ref[...]


# ----------------------------------------------------------------------------
# One-time host-side weight fusion / permutation / lane padding (hoisted out of
# the forward path per the performance review).
# ----------------------------------------------------------------------------
def prepare_params(params):
    cb1, cb2 = params["conv_blocks"]
    C1 = cb1["w"].shape[0]
    C2 = cb2["w"].shape[0]
    Cin = cb1["w"].shape[1]
    hidden = params["w1"].shape[1]
    num_labels = params["w2"].shape[1]
    OP2 = int(round((params["w1"].shape[0] // C2) ** 0.5))

    def bn_scale_shift(p):
        scale = p["gamma"] / jnp.sqrt(p["var"] + BN_EPS)
        shift = p["beta"] - p["mean"] * scale
        return scale, shift

    # conv1: (K*K*Cin + 1, 128); bias + BN folded in, out-channels zero-padded to 128.
    sc1, sh1 = bn_scale_shift(cb1)
    w1 = jnp.transpose(cb1["w"], (2, 3, 1, 0)).reshape(K * K * Cin, C1) * sc1[None, :]
    w1 = jnp.concatenate([w1, (cb1["b"] * sc1 + sh1)[None, :]], axis=0)
    w1f = jnp.pad(w1, ((0, 0), (0, LANES - C1))).astype(jnp.bfloat16)        # (28, 128)

    # conv2: lane-aligned taps -> ((K*K + 1) * 128, 128); each tap's unused input
    # lanes are zero rows, the bias block has the fused bias in its first row only.
    sc2, sh2 = bn_scale_shift(cb2)
    w2 = jnp.transpose(cb2["w"], (2, 3, 1, 0)) * sc2[None, None, None, :]    # (K,K,C1,C2)
    w2 = jnp.pad(w2, ((0, 0), (0, 0), (0, LANES - C1), (0, LANES - C2)))
    w2 = w2.reshape(K * K * LANES, LANES)
    bias_blk = jnp.zeros((LANES, LANES), jnp.float32).at[0, :C2].set(
        cb2["b"] * sc2 + sh2)
    w2f = jnp.concatenate([w2, bias_blk], axis=0).astype(jnp.bfloat16)       # (1280, 128)

    # dense1: absorb nn.Flatten's (c, h, w) order; rows grouped per (i, j) spatial
    # position, 128 lanes per group (padded channels -> zero rows), cols padded to 128.
    w3 = params["w1"].reshape(C2, OP2, OP2, hidden)
    w3 = jnp.transpose(w3, (1, 2, 0, 3))                                     # (OP2,OP2,C2,H)
    w3 = jnp.pad(w3, ((0, 0), (0, 0), (0, LANES - C2), (0, LANES - hidden)))
    w3p = w3.reshape(OP2 * OP2 * LANES, LANES).astype(jnp.bfloat16)          # (2048, 128)
    b3p = jnp.pad(params["b1"], (0, LANES - hidden)).reshape(1, LANES).astype(jnp.float32)

    # dense2: rows padded to 128 (hidden), cols padded to 128 (labels).
    w4p = jnp.pad(params["w2"], ((0, LANES - hidden),
                                 (0, LANES - num_labels))).astype(jnp.bfloat16)
    b4p = jnp.pad(params["b2"], (0, LANES - num_labels)).reshape(1, LANES).astype(jnp.float32)

    return dict(w1f=w1f, w2f=w2f, w3p=w3p, b3p=b3p, w4p=w4p, b4p=b4p)


# ----------------------------------------------------------------------------
# Jitted forward: block-1 im2col on the host (tiny at 16x16 / B=2) + pallas_call.
# ----------------------------------------------------------------------------
@functools.partial(jax.jit, static_argnames=("num_labels",))
def vcnn_forward(x_nchw, fused, num_labels=10):
    B = x_nchw.shape[0]
    x = jnp.transpose(x_nchw, (0, 2, 3, 1)).astype(jnp.float32)   # NHWC
    H, Cin = x.shape[1], x.shape[3]

    # geometry: 16 -conv-> 14 -pool-> 8 -conv-> 6 -pool-> 4
    OH1 = H - K + 1            # 14
    PH1 = OH1 + 2              # 16  (pool-padded grid, block 1)
    OP1 = PH1 // 2             # 8
    OH2 = OP1 - K + 1          # 6
    PH2 = OH2 + 2              # 8   (pool-padded grid, block 2)
    OP2 = PH2 // 2             # 4
    # Zero-padded max-pool == -inf-padded PyTorch max-pool only because ReLU precedes
    # the pool (all real activations >= 0) and, with pad=1/stride=2/kernel=2 and an
    # even conv output, every 2x2 window contains at least one real element.
    assert OH1 % 2 == 0 and OH2 % 2 == 0, "pool zero-pad identity requires even conv output"

    # block-1 im2col on the pool-padded grid, plus a bias-indicator column (bf16 MXU operand).
    cols = [x[:, kh:kh + OH1, kw:kw + OH1, :] for kh in range(K) for kw in range(K)]
    p1 = jnp.concatenate(cols + [jnp.ones((B, OH1, OH1, 1), jnp.float32)], axis=-1)
    p1 = jnp.pad(p1, ((0, 0), (1, 1), (1, 1), (0, 0)))            # zero pool border
    p1 = p1.reshape(B * PH1 * PH1, K * K * Cin + 1).astype(jnp.bfloat16)   # (512, 28)

    kernel = functools.partial(_vcnn_fused_kernel, k=K)
    out_padded = pl.pallas_call(
        kernel,
        out_shape=jax.ShapeDtypeStruct((B, LANES), jnp.float32),
        scratch_shapes=[
            pltpu.VMEM((B, PH1, PH1, LANES), jnp.float32),            # conv1 out (pool-padded)
            pltpu.VMEM((B, OP1, OP1, LANES), jnp.float32),            # pooled1
            pltpu.VMEM((B, PH2, PH2, (K * K + 1) * LANES), jnp.float32),  # block-2 taps
            pltpu.VMEM((B, PH2, PH2, LANES), jnp.float32),            # conv2 out (pool-padded)
            pltpu.VMEM((B, OP2, OP2, LANES), jnp.float32),            # pooled2
            pltpu.VMEM((B, OP2 * OP2 * LANES), jnp.float32),          # flatten buffer (B, 2048)
        ],
    )(p1, fused["w1f"], fused["w2f"], fused["w3p"], fused["b3p"],
      fused["w4p"], fused["b4p"])
    return out_padded[:, :num_labels]


# ----------------------------------------------------------------------------
# Pure-JAX reference (XLA conv / reduce_window), mirrors the PyTorch forward.
# ----------------------------------------------------------------------------
def reference_forward(x_nchw, params):
    h = x_nchw
    for p in params["conv_blocks"]:
        h = lax.conv_general_dilated(
            h, p["w"], window_strides=(1, 1), padding="VALID",
            dimension_numbers=("NCHW", "OIHW", "NCHW"),
            precision=lax.Precision.HIGHEST)
        h = h + p["b"][None, :, None, None]
        h = (h - p["mean"][None, :, None, None]) / jnp.sqrt(
            p["var"][None, :, None, None] + BN_EPS)
        h = h * p["gamma"][None, :, None, None] + p["beta"][None, :, None, None]
        h = jnp.maximum(h, 0.0)
        h = lax.reduce_window(
            h, -jnp.inf, lax.max, (1, 1, 2, 2), (1, 1, 2, 2),
            ((0, 0), (0, 0), (1, 1), (1, 1)))
    flat = h.reshape(h.shape[0], -1)
    hid = jnp.maximum(
        jnp.dot(flat, params["w1"], precision=lax.Precision.HIGHEST) + params["b1"], 0.0)
    return jnp.dot(hid, params["w2"], precision=lax.Precision.HIGHEST) + params["b2"]


# ----------------------------------------------------------------------------
# Deterministic synthetic parameter init (shapes follow VCNN.__init__)
#   img_size=16, num_conv_blocks=2, out_channels=[4, 8], conv {3, pad 0, stride 1},
#   pool {2, pad 1, stride 2}, num_dense_layers=1, lin_out_features=[32], labels=10.
# ----------------------------------------------------------------------------
def init_params():
    key = jax.random.PRNGKey(0)
    k_blocks, k_dense = jax.random.split(key)

    def init_conv(k, cin, cout, ksz=3):
        kw, kb, kg, kbe, km, kv = jax.random.split(k, 6)
        return dict(
            w=0.1 * jax.random.normal(kw, (cout, cin, ksz, ksz), jnp.float32),
            b=0.1 * jax.random.normal(kb, (cout,), jnp.float32),
            gamma=1.0 + 0.1 * jax.random.normal(kg, (cout,), jnp.float32),
            beta=0.1 * jax.random.normal(kbe, (cout,), jnp.float32),
            mean=0.1 * jax.random.normal(km, (cout,), jnp.float32),
            var=jnp.abs(1.0 + 0.1 * jax.random.normal(kv, (cout,), jnp.float32)),
        )

    channels = [3, 4, 8]
    kb1, kb2 = jax.random.split(k_blocks)
    conv_blocks = [init_conv(kb1, channels[0], channels[1]),
                   init_conv(kb2, channels[1], channels[2])]

    # spatial: 16 -conv-> 14 -pool-> 8 -conv-> 6 -pool-> 4  => flatten = 8 * 4 * 4 = 128
    flat_dim, hidden, num_labels = 8 * 4 * 4, 32, 10
    kw1, kb1_, kw2, kb2_ = jax.random.split(k_dense, 4)
    return dict(
        conv_blocks=conv_blocks,
        w1=0.1 * jax.random.normal(kw1, (flat_dim, hidden), jnp.float32),
        b1=0.1 * jax.random.normal(kb1_, (hidden,), jnp.float32),
        w2=0.1 * jax.random.normal(kw2, (hidden, num_labels), jnp.float32),
        b2=0.1 * jax.random.normal(kb2_, (num_labels,), jnp.float32),
    )


if __name__ == "__main__":
    params = init_params()
    fused = prepare_params(params)          # one-time weight fusion (hoisted off hot path)
    x = jax.random.normal(jax.random.PRNGKey(0), (2, 3, 16, 16), jnp.float32)  # NCHW

    out = jax.block_until_ready(vcnn_forward(x, fused, num_labels=10))
    ref = jax.block_until_ready(reference_forward(x, params))

    assert out.shape == (2, 10), out.shape
    assert jnp.allclose(out, ref, atol=3e-2, rtol=3e-2), (
        f"max abs diff {jnp.max(jnp.abs(out - ref))}")

    print("KERNEL_OK")
</pallas_src>

<mosaic_0001>
module attributes {stable_mosaic.version = 11 : i64} {
  func.func @_vcnn_fused_kernel(%arg0: memref<512x28xbf16, #tpu.memory_space<vmem>>, %arg1: memref<28x128xbf16, #tpu.memory_space<vmem>>, %arg2: memref<1280x128xbf16, #tpu.memory_space<vmem>>, %arg3: memref<2048x128xbf16, #tpu.memory_space<vmem>>, %arg4: memref<1x128xf32, #tpu.memory_space<vmem>>, %arg5: memref<128x128xbf16, #tpu.memory_space<vmem>>, %arg6: memref<1x128xf32, #tpu.memory_space<vmem>>, %arg7: memref<2x128xf32, #tpu.memory_space<vmem>>, %arg8: memref<2x16x16x128xf32, #tpu.memory_space<vmem>>, %arg9: memref<2x8x8x128xf32, #tpu.memory_space<vmem>>, %arg10: memref<2x8x8x1280xf32, #tpu.memory_space<vmem>>, %arg11: memref<2x8x8x128xf32, #tpu.memory_space<vmem>>, %arg12: memref<2x4x4x128xf32, #tpu.memory_space<vmem>>, %arg13: memref<2x2048xf32, #tpu.memory_space<vmem>>) attributes {dimension_semantics = [], scalar_prefetch = 0 : i64, scratch_operands = 6 : i64, tpu.core_type = #tpu.core_type<tc>} {
    %c0 = arith.constant 0 : index
    %c0_0 = arith.constant 0 : index
    %0 = vector.load %arg0[%c0, %c0_0] : memref<512x28xbf16, #tpu.memory_space<vmem>>, vector<512x28xbf16>
    %c0_1 = arith.constant 0 : index
    %c0_2 = arith.constant 0 : index
    %1 = vector.load %arg1[%c0_1, %c0_2] : memref<28x128xbf16, #tpu.memory_space<vmem>>, vector<28x128xbf16>
    %cst = arith.constant dense<0.000000e+00> : vector<512x128xf32>
    %2 = tpu.matmul %0, %1, %cst {dimension_numbers = #tpu.dot_dimension_numbers<[1], [0], [0], [1], [0, 0, 1, 1], [], []>} : vector<512x28xbf16>, vector<28x128xbf16>, vector<512x128xf32> -> vector<512x128xf32>
    %cst_3 = arith.constant 0.000000e+00 : f32
    %3 = vector.broadcast %cst_3 : f32 to vector<512x128xf32>
    %4 = arith.maximumf %2, %3 : vector<512x128xf32>
    %5 = vector.shape_cast %4 : vector<512x128xf32> to vector<2x16x16x128xf32>
    %c0_4 = arith.constant 0 : index
    %c0_5 = arith.constant 0 : index
    %c0_6 = arith.constant 0 : index
    %c0_7 = arith.constant 0 : index
    %6 = vector.load %arg8[%c0_4, %c0_5, %c0_6, %c0_7] : memref<2x16x16x128xf32, #tpu.memory_space<vmem>>, vector<2x16x16x128xf32>
    tpu.vector_store %arg8[%c0_4, %c0_5, %c0_6, %c0_7], %5 {strides = array<i32>} : memref<2x16x16x128xf32, #tpu.memory_space<vmem>>, vector<2x16x16x128xf32>,
    %c0_8 = arith.constant 0 : index
    %c0_9 = arith.constant 0 : index
    %c0_10 = arith.constant 0 : index
    %c0_11 = arith.constant 0 : index
    %7 = tpu.strided_load %arg8[%c0_8, %c0_9, %c0_10, %c0_11] {strides = array<i32: 1, 2, 2, 1>} : memref<2x16x16x128xf32, #tpu.memory_space<vmem>>, vector<2x8x8x128xf32>
    %c0_12 = arith.constant 0 : index
    %c0_13 = arith.constant 0 : index
    %c1 = arith.constant 1 : index
    %c0_14 = arith.constant 0 : index
    %8 = tpu.strided_load %arg8[%c0_12, %c0_13, %c1, %c0_14] {strides = array<i32: 1, 2, 2, 1>} : memref<2x16x16x128xf32, #tpu.memory_space<vmem>>, vector<2x8x8x128xf32>
    %9 = arith.maximumf %7, %8 : vector<2x8x8x128xf32>
    %c0_15 = arith.constant 0 : index
    %c1_16 = arith.constant 1 : index
    %c0_17 = arith.constant 0 : index
    %c0_18 = arith.constant 0 : index
    %10 = tpu.strided_load %arg8[%c0_15, %c1_16, %c0_17, %c0_18] {strides = array<i32: 1, 2, 2, 1>} : memref<2x16x16x128xf32, #tpu.memory_space<vmem>>, vector<2x8x8x128xf32>
    %c0_19 = arith.constant 0 : index
    %c1_20 = arith.constant 1 : index
    %c1_21 = arith.constant 1 : index
    %c0_22 = arith.constant 0 : index
    %11 = tpu.strided_load %arg8[%c0_19, %c1_20, %c1_21, %c0_22] {strides = array<i32: 1, 2, 2, 1>} : memref<2x16x16x128xf32, #tpu.memory_space<vmem>>, vector<2x8x8x128xf32>
    %12 = arith.maximumf %10, %11 : vector<2x8x8x128xf32>
    %13 = arith.maximumf %9, %12 : vector<2x8x8x128xf32>
    %c0_23 = arith.constant 0 : index
    %c0_24 = arith.constant 0 : index
    %c0_25 = arith.constant 0 : index
    %c0_26 = arith.constant 0 : index
    %14 = vector.load %arg9[%c0_23, %c0_24, %c0_25, %c0_26] : memref<2x8x8x128xf32, #tpu.memory_space<vmem>>, vector<2x8x8x128xf32>
    tpu.vector_store %arg9[%c0_23, %c0_24, %c0_25, %c0_26], %13 {strides = array<i32>} : memref<2x8x8x128xf32, #tpu.memory_space<vmem>>, vector<2x8x8x128xf32>,
    %cst_27 = arith.constant 0.000000e+00 : f32
    %15 = vector.broadcast %cst_27 : f32 to vector<2x1x8x1280xf32>
    %c0_28 = arith.constant 0 : index
    %c0_29 = arith.constant 0 : index
    %c0_30 = arith.constant 0 : index
    %c0_31 = arith.constant 0 : index
    %16 = vector.load %arg10[%c0_28, %c0_29, %c0_30, %c0_31] : memref<2x8x8x1280xf32, #tpu.memory_space<vmem>>, vector<2x1x8x1280xf32>
    tpu.vector_store %arg10[%c0_28, %c0_29, %c0_30, %c0_31], %15 {strides = array<i32>} : memref<2x8x8x1280xf32, #tpu.memory_space<vmem>>, vector<2x1x8x1280xf32>,
    %cst_32 = arith.constant 0.000000e+00 : f32
    %17 = vector.broadcast %cst_32 : f32 to vector<2x1x8x1280xf32>
    %c0_33 = arith.constant 0 : index
    %c7 = arith.constant 7 : index
    %c0_34 = arith.constant 0 : index
    %c0_35 = arith.constant 0 : index
    %18 = vector.load %arg10[%c0_33, %c7, %c0_34, %c0_35] : memref<2x8x8x1280xf32, #tpu.memory_space<vmem>>, vector<2x1x8x1280xf32>
    tpu.vector_store %arg10[%c0_33, %c7, %c0_34, %c0_35], %17 {strides = array<i32>} : memref<2x8x8x1280xf32, #tpu.memory_space<vmem>>, vector<2x1x8x1280xf32>,
    %cst_36 = arith.constant 0.000000e+00 : f32
    %19 = vector.broadcast %cst_36 : f32 to vector<2x8x1x1280xf32>
    %c0_37 = arith.constant 0 : index
    %c0_38 = arith.constant 0 : index
    %c0_39 = arith.constant 0 : index
    %c0_40 = arith.constant 0 : index
    %20 = vector.load %arg10[%c0_37, %c0_38, %c0_39, %c0_40] : memref<2x8x8x1280xf32, #tpu.memory_space<vmem>>, vector<2x8x1x1280xf32>
    tpu.vector_store %arg10[%c0_37, %c0_38, %c0_39, %c0_40], %19 {strides = array<i32>} : memref<2x8x8x1280xf32, #tpu.memory_space<vmem>>, vector<2x8x1x1280xf32>,
    %cst_41 = arith.constant 0.000000e+00 : f32
    %21 = vector.broadcast %cst_41 : f32 to vector<2x8x1x1280xf32>
    %c0_42 = arith.constant 0 : index
    %c0_43 = arith.constant 0 : index
    %c7_44 = arith.constant 7 : index
    %c0_45 = arith.constant 0 : index
    %22 = vector.load %arg10[%c0_42, %c0_43, %c7_44, %c0_45] : memref<2x8x8x1280xf32, #tpu.memory_space<vmem>>, vector<2x8x1x1280xf32>
    tpu.vector_store %arg10[%c0_42, %c0_43, %c7_44, %c0_45], %21 {strides = array<i32>} : memref<2x8x8x1280xf32, #tpu.memory_space<vmem>>, vector<2x8x1x1280xf32>,
    %c0_46 = arith.constant 0 : index
    %c0_47 = arith.constant 0 : index
    %c0_48 = arith.constant 0 : index
    %c0_49 = arith.constant 0 : index
    %23 = vector.load %arg9[%c0_46, %c0_47, %c0_48, %c0_49] : memref<2x8x8x128xf32, #tpu.memory_space<vmem>>, vector<2x6x6x128xf32>
    %c0_50 = arith.constant 0 : index
    %c1_51 = arith.constant 1 : index
    %c1_52 = arith.constant 1 : index
    %c0_53 = arith.constant 0 : index
    %24 = vector.load %arg10[%c0_50, %c1_51, %c1_52, %c0_53] : memref<2x8x8x1280xf32, #tpu.memory_space<vmem>>, vector<2x6x6x128xf32>
    tpu.vector_store %arg10[%c0_50, %c1_51, %c1_52, %c0_53], %23 {strides = array<i32>} : memref<2x8x8x1280xf32, #tpu.memory_space<vmem>>, vector<2x6x6x128xf32>,
    %c0_54 = arith.constant 0 : index
    %c0_55 = arith.constant 0 : index
    %c1_56 = arith.constant 1 : index
    %c0_57 = arith.constant 0 : index
    %25 = vector.load %arg9[%c0_54, %c0_55, %c1_56, %c0_57] : memref<2x8x8x128xf32, #tpu.memory_space<vmem>>, vector<2x6x6x128xf32>
    %c0_58 = arith.constant 0 : index
    %c1_59 = arith.constant 1 : index
    %c1_60 = arith.constant 1 : index
    %c128 = arith.constant 128 : index
    %26 = vector.load %arg10[%c0_58, %c1_59, %c1_60, %c128] : memref<2x8x8x1280xf32, #tpu.memory_space<vmem>>, vector<2x6x6x128xf32>
    tpu.vector_store %arg10[%c0_58, %c1_59, %c1_60, %c128], %25 {strides = array<i32>} : memref<2x8x8x1280xf32, #tpu.memory_space<vmem>>, vector<2x6x6x128xf32>,
    %c0_61 = arith.constant 0 : index
    %c0_62 = arith.constant 0 : index
    %c2 = arith.constant 2 : index
    %c0_63 = arith.constant 0 : index
    %27 = vector.load %arg9[%c0_61, %c0_62, %c2, %c0_63] : memref<2x8x8x128xf32, #tpu.memory_space<vmem>>, vector<2x6x6x128xf32>
    %c0_64 = arith.constant 0 : index
    %c1_65 = arith.constant 1 : index
    %c1_66 = arith.constant 1 : index
    %c256 = arith.constant 256 : index
    %28 = vector.load %arg10[%c0_64, %c1_65, %c1_66, %c256] : memref<2x8x8x1280xf32, #tpu.memory_space<vmem>>, vector<2x6x6x128xf32>
    tpu.vector_store %arg10[%c0_64, %c1_65, %c1_66, %c256], %27 {strides = array<i32>} : memref<2x8x8x1280xf32, #tpu.memory_space<vmem>>, vector<2x6x6x128xf32>,
    %c0_67 = arith.constant 0 : index
    %c1_68 = arith.constant 1 : index
    %c0_69 = arith.constant 0 : index
    %c0_70 = arith.constant 0 : index
    %29 = vector.load %arg9[%c0_67, %c1_68, %c0_69, %c0_70] : memref<2x8x8x128xf32, #tpu.memory_space<vmem>>, vector<2x6x6x128xf32>
    %c0_71 = arith.constant 0 : index
    %c1_72 = arith.constant 1 : index
    %c1_73 = arith.constant 1 : index
    %c384 = arith.constant 384 : index
    %30 = vector.load %arg10[%c0_71, %c1_72, %c1_73, %c384] : memref<2x8x8x1280xf32, #tpu.memory_space<vmem>>, vector<2x6x6x128xf32>
    tpu.vector_store %arg10[%c0_71, %c1_72, %c1_73, %c384], %29 {strides = array<i32>} : memref<2x8x8x1280xf32, #tpu.memory_space<vmem>>, vector<2x6x6x128xf32>,
    %c0_74 = arith.constant 0 : index
    %c1_75 = arith.constant 1 : index
    %c1_76 = arith.constant 1 : index
    %c0_77 = arith.constant 0 : index
    %31 = vector.load %arg9[%c0_74, %c1_75, %c1_76, %c0_77] : memref<2x8x8x128xf32, #tpu.memory_space<vmem>>, vector<2x6x6x128xf32>
    %c0_78 = arith.constant 0 : index
    %c1_79 = arith.constant 1 : index
    %c1_80 = arith.constant 1 : index
    %c512 = arith.constant 512 : index
    %32 = vector.load %arg10[%c0_78, %c1_79, %c1_80, %c512] : memref<2x8x8x1280xf32, #tpu.memory_space<vmem>>, vector<2x6x6x128xf32>
    tpu.vector_store %arg10[%c0_78, %c1_79, %c1_80, %c512], %31 {strides = array<i32>} : memref<2x8x8x1280xf32, #tpu.memory_space<vmem>>, vector<2x6x6x128xf32>,
    %c0_81 = arith.constant 0 : index
    %c1_82 = arith.constant 1 : index
    %c2_83 = arith.constant 2 : index
    %c0_84 = arith.constant 0 : index
    %33 = vector.load %arg9[%c0_81, %c1_82, %c2_83, %c0_84] : memref<2x8x8x128xf32, #tpu.memory_space<vmem>>, vector<2x6x6x128xf32>
    %c0_85 = arith.constant 0 : index
    %c1_86 = arith.constant 1 : index
    %c1_87 = arith.constant 1 : index
    %c640 = arith.constant 640 : index
    %34 = vector.load %arg10[%c0_85, %c1_86, %c1_87, %c640] : memref<2x8x8x1280xf32, #tpu.memory_space<vmem>>, vector<2x6x6x128xf32>
    tpu.vector_store %arg10[%c0_85, %c1_86, %c1_87, %c640], %33 {strides = array<i32>} : memref<2x8x8x1280xf32, #tpu.memory_space<vmem>>, vector<2x6x6x128xf32>,
    %c0_88 = arith.constant 0 : index
    %c2_89 = arith.constant 2 : index
    %c0_90 = arith.constant 0 : index
    %c0_91 = arith.constant 0 : index
    %35 = vector.load %arg9[%c0_88, %c2_89, %c0_90, %c0_91] : memref<2x8x8x128xf32, #tpu.memory_space<vmem>>, vector<2x6x6x128xf32>
    %c0_92 = arith.constant 0 : index
    %c1_93 = arith.constant 1 : index
    %c1_94 = arith.constant 1 : index
    %c768 = arith.constant 768 : index
    %36 = vector.load %arg10[%c0_92, %c1_93, %c1_94, %c768] : memref<2x8x8x1280xf32, #tpu.memory_space<vmem>>, vector<2x6x6x128xf32>
    tpu.vector_store %arg10[%c0_92, %c1_93, %c1_94, %c768], %35 {strides = array<i32>} : memref<2x8x8x1280xf32, #tpu.memory_space<vmem>>, vector<2x6x6x128xf32>,
    %c0_95 = arith.constant 0 : index
    %c2_96 = arith.constant 2 : index
    %c1_97 = arith.constant 1 : index
    %c0_98 = arith.constant 0 : index
    %37 = vector.load %arg9[%c0_95, %c2_96, %c1_97, %c0_98] : memref<2x8x8x128xf32, #tpu.memory_space<vmem>>, vector<2x6x6x128xf32>
    %c0_99 = arith.constant 0 : index
    %c1_100 = arith.constant 1 : index
    %c1_101 = arith.constant 1 : index
    %c896 = arith.constant 896 : index
    %38 = vector.load %arg10[%c0_99, %c1_100, %c1_101, %c896] : memref<2x8x8x1280xf32, #tpu.memory_space<vmem>>, vector<2x6x6x128xf32>
    tpu.vector_store %arg10[%c0_99, %c1_100, %c1_101, %c896], %37 {strides = array<i32>} : memref<2x8x8x1280xf32, #tpu.memory_space<vmem>>, vector<2x6x6x128xf32>,
    %c0_102 = arith.constant 0 : index
    %c2_103 = arith.constant 2 : index
    %c2_104 = arith.constant 2 : index
    %c0_105 = arith.constant 0 : index
    %39 = vector.load %arg9[%c0_102, %c2_103, %c2_104, %c0_105] : memref<2x8x8x128xf32, #tpu.memory_space<vmem>>, vector<2x6x6x128xf32>
    %c0_106 = arith.constant 0 : index
    %c1_107 = arith.constant 1 : index
    %c1_108 = arith.constant 1 : index
    %c1024 = arith.constant 1024 : index
    %40 = vector.load %arg10[%c0_106, %c1_107, %c1_108, %c1024] : memref<2x8x8x1280xf32, #tpu.memory_space<vmem>>, vector<2x6x6x128xf32>
    tpu.vector_store %arg10[%c0_106, %c1_107, %c1_108, %c1024], %39 {strides = array<i32>} : memref<2x8x8x1280xf32, #tpu.memory_space<vmem>>, vector<2x6x6x128xf32>,
    %cst_109 = arith.constant 1.000000e+00 : f32
    %41 = vector.broadcast %cst_109 : f32 to vector<2x6x6x128xf32>
    %c0_110 = arith.constant 0 : index
    %c1_111 = arith.constant 1 : index
    %c1_112 = arith.constant 1 : index
    %c1152 = arith.constant 1152 : index
    %42 = vector.load %arg10[%c0_110, %c1_111, %c1_112, %c1152] : memref<2x8x8x1280xf32, #tpu.memory_space<vmem>>, vector<2x6x6x128xf32>
    tpu.vector_store %arg10[%c0_110, %c1_111, %c1_112, %c1152], %41 {strides = array<i32>} : memref<2x8x8x1280xf32, #tpu.memory_space<vmem>>, vector<2x6x6x128xf32>,
    %c0_113 = arith.constant 0 : index
    %c0_114 = arith.constant 0 : index
    %c0_115 = arith.constant 0 : index
    %c0_116 = arith.constant 0 : index
    %43 = vector.load %arg10[%c0_113, %c0_114, %c0_115, %c0_116] : memref<2x8x8x1280xf32, #tpu.memory_space<vmem>>, vector<2x8x8x1280xf32>
    %44 = vector.shape_cast %43 : vector<2x8x8x1280xf32> to vector<128x1280xf32>
    %45 = arith.truncf %44 : vector<128x1280xf32> to vector<128x1280xbf16>
    %c0_117 = arith.constant 0 : index
    %c0_118 = arith.constant 0 : index
    %46 = vector.load %arg2[%c0_117, %c0_118] : memref<1280x128xbf16, #tpu.memory_space<vmem>>, vector<1280x128xbf16>
    %cst_119 = arith.constant dense<0.000000e+00> : vector<128x128xf32>
    %47 = tpu.matmul %45, %46, %cst_119 {dimension_numbers = #tpu.dot_dimension_numbers<[1], [0], [0], [1], [0, 0, 1, 1], [], []>} : vector<128x1280xbf16>, vector<1280x128xbf16>, vector<128x128xf32> -> vector<128x128xf32>
    %cst_120 = arith.constant 0.000000e+00 : f32
    %48 = vector.broadcast %cst_120 : f32 to vector<128x128xf32>
    %49 = arith.maximumf %47, %48 : vector<128x128xf32>
    %50 = vector.shape_cast %49 : vector<128x128xf32> to vector<2x8x8x128xf32>
    %c0_121 = arith.constant 0 : index
    %c0_122 = arith.constant 0 : index
    %c0_123 = arith.constant 0 : index
    %c0_124 = arith.constant 0 : index
    %51 = vector.load %arg11[%c0_121, %c0_122, %c0_123, %c0_124] : memref<2x8x8x128xf32, #tpu.memory_space<vmem>>, vector<2x8x8x128xf32>
    tpu.vector_store %arg11[%c0_121, %c0_122, %c0_123, %c0_124], %50 {strides = array<i32>} : memref<2x8x8x128xf32, #tpu.memory_space<vmem>>, vector<2x8x8x128xf32>,
    %c0_125 = arith.constant 0 : index
    %c0_126 = arith.constant 0 : index
    %c0_127 = arith.constant 0 : index
    %c0_128 = arith.constant 0 : index
    %52 = tpu.strided_load %arg11[%c0_125, %c0_126, %c0_127, %c0_128] {strides = array<i32: 1, 2, 2, 1>} : memref<2x8x8x128xf32, #tpu.memory_space<vmem>>, vector<2x4x4x128xf32>
    %c0_129 = arith.constant 0 : index
    %c0_130 = arith.constant 0 : index
    %c1_131 = arith.constant 1 : index
    %c0_132 = arith.constant 0 : index
    %53 = tpu.strided_load %arg11[%c0_129, %c0_130, %c1_131, %c0_132] {strides = array<i32: 1, 2, 2, 1>} : memref<2x8x8x128xf32, #tpu.memory_space<vmem>>, vector<2x4x4x128xf32>
    %54 = arith.maximumf %52, %53 : vector<2x4x4x128xf32>
    %c0_133 = arith.constant 0 : index
    %c1_134 = arith.constant 1 : index
    %c0_135 = arith.constant 0 : index
    %c0_136 = arith.constant 0 : index
    %55 = tpu.strided_load %arg11[%c0_133, %c1_134, %c0_135, %c0_136] {strides = array<i32: 1, 2, 2, 1>} : memref<2x8x8x128xf32, #tpu.memory_space<vmem>>, vector<2x4x4x128xf32>
    %c0_137 = arith.constant 0 : index
    %c1_138 = arith.constant 1 : index
    %c1_139 = arith.constant 1 : index
    %c0_140 = arith.constant 0 : index
    %56 = tpu.strided_load %arg11[%c0_137, %c1_138, %c1_139, %c0_140] {strides = array<i32: 1, 2, 2, 1>} : memref<2x8x8x128xf32, #tpu.memory_space<vmem>>, vector<2x4x4x128xf32>
    %57 = arith.maximumf %55, %56 : vector<2x4x4x128xf32>
    %58 = arith.maximumf %54, %57 : vector<2x4x4x128xf32>
    %c0_141 = arith.constant 0 : index
    %c0_142 = arith.constant 0 : index
    %c0_143 = arith.constant 0 : index
    %c0_144 = arith.constant 0 : index
    %59 = vector.load %arg12[%c0_141, %c0_142, %c0_143, %c0_144] : memref<2x4x4x128xf32, #tpu.memory_space<vmem>>, vector<2x4x4x128xf32>
    tpu.vector_store %arg12[%c0_141, %c0_142, %c0_143, %c0_144], %58 {strides = array<i32>} : memref<2x4x4x128xf32, #tpu.memory_space<vmem>>, vector<2x4x4x128xf32>,
    %c0_145 = arith.constant 0 : index
    %c0_146 = arith.constant 0 : index
    %c0_147 = arith.constant 0 : index
    %c0_148 = arith.constant 0 : index
    %60 = vector.load %arg12[%c0_145, %c0_146, %c0_147, %c0_148] : memref<2x4x4x128xf32, #tpu.memory_space<vmem>>, vector<2x1x1x128xf32>
    %61 = vector.shape_cast %60 : vector<2x1x1x128xf32> to vector<2x128xf32>
    %c0_149 = arith.constant 0 : index
    %c0_150 = arith.constant 0 : index
    %62 = vector.load %arg13[%c0_149, %c0_150] : memref<2x2048xf32, #tpu.memory_space<vmem>>, vector<2x128xf32>
    tpu.vector_store %arg13[%c0_149, %c0_150], %61 {strides = array<i32>} : memref<2x2048xf32, #tpu.memory_space<vmem>>, vector<2x128xf32>,
    %c0_151 = arith.constant 0 : index
    %c0_152 = arith.constant 0 : index
    %c1_153 = arith.constant 1 : index
    %c0_154 = arith.constant 0 : index
    %63 = vector.load %arg12[%c0_151, %c0_152, %c1_153, %c0_154] : memref<2x4x4x128xf32, #tpu.memory_space<vmem>>, vector<2x1x1x128xf32>
    %64 = vector.shape_cast %63 : vector<2x1x1x128xf32> to vector<2x128xf32>
    %c0_155 = arith.constant 0 : index
    %c128_156 = arith.constant 128 : index
    %65 = vector.load %arg13[%c0_155, %c128_156] : memref<2x2048xf32, #tpu.memory_space<vmem>>, vector<2x128xf32>
    tpu.vector_store %arg13[%c0_155, %c128_156], %64 {strides = array<i32>} : memref<2x2048xf32, #tpu.memory_space<vmem>>, vector<2x128xf32>,
    %c0_157 = arith.constant 0 : index
    %c0_158 = arith.constant 0 : index
    %c2_159 = arith.constant 2 : index
    %c0_160 = arith.constant 0 : index
    %66 = vector.load %arg12[%c0_157, %c0_158, %c2_159, %c0_160] : memref<2x4x4x128xf32, #tpu.memory_space<vmem>>, vector<2x1x1x128xf32>
    %67 = vector.shape_cast %66 : vector<2x1x1x128xf32> to vector<2x128xf32>
    %c0_161 = arith.constant 0 : index
    %c256_162 = arith.constant 256 : index
    %68 = vector.load %arg13[%c0_161, %c256_162] : memref<2x2048xf32, #tpu.memory_space<vmem>>, vector<2x128xf32>
    tpu.vector_store %arg13[%c0_161, %c256_162], %67 {strides = array<i32>} : memref<2x2048xf32, #tpu.memory_space<vmem>>, vector<2x128xf32>,
    %c0_163 = arith.constant 0 : index
    %c0_164 = arith.constant 0 : index
    %c3 = arith.constant 3 : index
    %c0_165 = arith.constant 0 : index
    %69 = vector.load %arg12[%c0_163, %c0_164, %c3, %c0_165] : memref<2x4x4x128xf32, #tpu.memory_space<vmem>>, vector<2x1x1x128xf32>
    %70 = vector.shape_cast %69 : vector<2x1x1x128xf32> to vector<2x128xf32>
    %c0_166 = arith.constant 0 : index
    %c384_167 = arith.constant 384 : index
    %71 = vector.load %arg13[%c0_166, %c384_167] : memref<2x2048xf32, #tpu.memory_space<vmem>>, vector<2x128xf32>
    tpu.vector_store %arg13[%c0_166, %c384_167], %70 {strides = array<i32>} : memref<2x2048xf32, #tpu.memory_space<vmem>>, vector<2x128xf32>,
    %c0_168 = arith.constant 0 : index
    %c1_169 = arith.constant 1 : index
    %c0_170 = arith.constant 0 : index
    %c0_171 = arith.constant 0 : index
    %72 = vector.load %arg12[%c0_168, %c1_169, %c0_170, %c0_171] : memref<2x4x4x128xf32, #tpu.memory_space<vmem>>, vector<2x1x1x128xf32>
    %73 = vector.shape_cast %72 : vector<2x1x1x128xf32> to vector<2x128xf32>
    %c0_172 = arith.constant 0 : index
    %c512_173 = arith.constant 512 : index
    %74 = vector.load %arg13[%c0_172, %c512_173] : memref<2x2048xf32, #tpu.memory_space<vmem>>, vector<2x128xf32>
    tpu.vector_store %arg13[%c0_172, %c512_173], %73 {strides = array<i32>} : memref<2x2048xf32, #tpu.memory_space<vmem>>, vector<2x128xf32>,
    %c0_174 = arith.constant 0 : index
    %c1_175 = arith.constant 1 : index
    %c1_176 = arith.constant 1 : index
    %c0_177 = arith.constant 0 : index
    %75 = vector.load %arg12[%c0_174, %c1_175, %c1_176, %c0_177] : memref<2x4x4x128xf32, #tpu.memory_space<vmem>>, vector<2x1x1x128xf32>
    %76 = vector.shape_cast %75 : vector<2x1x1x128xf32> to vector<2x128xf32>
    %c0_178 = arith.constant 0 : index
    %c640_179 = arith.constant 640 : index
    %77 = vector.load %arg13[%c0_178, %c640_179] : memref<2x2048xf32, #tpu.memory_space<vmem>>, vector<2x128xf32>
    tpu.vector_store %arg13[%c0_178, %c640_179], %76 {strides = array<i32>} : memref<2x2048xf32, #tpu.memory_space<vmem>>, vector<2x128xf32>,
    %c0_180 = arith.constant 0 : index
    %c1_181 = arith.constant 1 : index
    %c2_182 = arith.constant 2 : index
    %c0_183 = arith.constant 0 : index
    %78 = vector.load %arg12[%c0_180, %c1_181, %c2_182, %c0_183] : memref<2x4x4x128xf32, #tpu.memory_space<vmem>>, vector<2x1x1x128xf32>
    %79 = vector.shape_cast %78 : vector<2x1x1x128xf32> to vector<2x128xf32>
    %c0_184 = arith.constant 0 : index
    %c768_185 = arith.constant 768 : index
    %80 = vector.load %arg13[%c0_184, %c768_185] : memref<2x2048xf32, #tpu.memory_space<vmem>>, vector<2x128xf32>
    tpu.vector_store %arg13[%c0_184, %c768_185], %79 {strides = array<i32>} : memref<2x2048xf32, #tpu.memory_space<vmem>>, vector<2x128xf32>,
    %c0_186 = arith.constant 0 : index
    %c1_187 = arith.constant 1 : index
    %c3_188 = arith.constant 3 : index
    %c0_189 = arith.constant 0 : index
    %81 = vector.load %arg12[%c0_186, %c1_187, %c3_188, %c0_189] : memref<2x4x4x128xf32, #tpu.memory_space<vmem>>, vector<2x1x1x128xf32>
    %82 = vector.shape_cast %81 : vector<2x1x1x128xf32> to vector<2x128xf32>
    %c0_190 = arith.constant 0 : index
    %c896_191 = arith.constant 896 : index
    %83 = vector.load %arg13[%c0_190, %c896_191] : memref<2x2048xf32, #tpu.memory_space<vmem>>, vector<2x128xf32>
    tpu.vector_store %arg13[%c0_190, %c896_191], %82 {strides = array<i32>} : memref<2x2048xf32, #tpu.memory_space<vmem>>, vector<2x128xf32>,
    %c0_192 = arith.constant 0 : index
    %c2_193 = arith.constant 2 : index
    %c0_194 = arith.constant 0 : index
    %c0_195 = arith.constant 0 : index
    %84 = vector.load %arg12[%c0_192, %c2_193, %c0_194, %c0_195] : memref<2x4x4x128xf32, #tpu.memory_space<vmem>>, vector<2x1x1x128xf32>
    %85 = vector.shape_cast %84 : vector<2x1x1x128xf32> to vector<2x128xf32>
    %c0_196 = arith.constant 0 : index
    %c1024_197 = arith.constant 1024 : index
    %86 = vector.load %arg13[%c0_196, %c1024_197] : memref<2x2048xf32, #tpu.memory_space<vmem>>, vector<2x128xf32>
    tpu.vector_store %arg13[%c0_196, %c1024_197], %85 {strides = array<i32>} : memref<2x2048xf32, #tpu.memory_space<vmem>>, vector<2x128xf32>,
    %c0_198 = arith.constant 0 : index
    %c2_199 = arith.constant 2 : index
    %c1_200 = arith.constant 1 : index
    %c0_201 = arith.constant 0 : index
    %87 = vector.load %arg12[%c0_198, %c2_199, %c1_200, %c0_201] : memref<2x4x4x128xf32, #tpu.memory_space<vmem>>, vector<2x1x1x128xf32>
    %88 = vector.shape_cast %87 : vector<2x1x1x128xf32> to vector<2x128xf32>
    %c0_202 = arith.constant 0 : index
    %c1152_203 = arith.constant 1152 : index
    %89 = vector.load %arg13[%c0_202, %c1152_203] : memref<2x2048xf32, #tpu.memory_space<vmem>>, vector<2x128xf32>
    tpu.vector_store %arg13[%c0_202, %c1152_203], %88 {strides = array<i32>} : memref<2x2048xf32, #tpu.memory_space<vmem>>, vector<2x128xf32>,
    %c0_204 = arith.constant 0 : index
    %c2_205 = arith.constant 2 : index
    %c2_206 = arith.constant 2 : index
    %c0_207 = arith.constant 0 : index
    %90 = vector.load %arg12[%c0_204, %c2_205, %c2_206, %c0_207] : memref<2x4x4x128xf32, #tpu.memory_space<vmem>>, vector<2x1x1x128xf32>
    %91 = vector.shape_cast %90 : vector<2x1x1x128xf32> to vector<2x128xf32>
    %c0_208 = arith.constant 0 : index
    %c1280 = arith.constant 1280 : index
    %92 = vector.load %arg13[%c0_208, %c1280] : memref<2x2048xf32, #tpu.memory_space<vmem>>, vector<2x128xf32>
    tpu.vector_store %arg13[%c0_208, %c1280], %91 {strides = array<i32>} : memref<2x2048xf32, #tpu.memory_space<vmem>>, vector<2x128xf32>,
    %c0_209 = arith.constant 0 : index
    %c2_210 = arith.constant 2 : index
    %c3_211 = arith.constant 3 : index
    %c0_212 = arith.constant 0 : index
    %93 = vector.load %arg12[%c0_209, %c2_210, %c3_211, %c0_212] : memref<2x4x4x128xf32, #tpu.memory_space<vmem>>, vector<2x1x1x128xf32>
    %94 = vector.shape_cast %93 : vector<2x1x1x128xf32> to vector<2x128xf32>
    %c0_213 = arith.constant 0 : index
    %c1408 = arith.constant 1408 : index
    %95 = vector.load %arg13[%c0_213, %c1408] : memref<2x2048xf32, #tpu.memory_space<vmem>>, vector<2x128xf32>
    tpu.vector_store %arg13[%c0_213, %c1408], %94 {strides = array<i32>} : memref<2x2048xf32, #tpu.memory_space<vmem>>, vector<2x128xf32>,
    %c0_214 = arith.constant 0 : index
    %c3_215 = arith.constant 3 : index
    %c0_216 = arith.constant 0 : index
    %c0_217 = arith.constant 0 : index
    %96 = vector.load %arg12[%c0_214, %c3_215, %c0_216, %c0_217] : memref<2x4x4x128xf32, #tpu.memory_space<vmem>>, vector<2x1x1x128xf32>
    %97 = vector.shape_cast %96 : vector<2x1x1x128xf32> to vector<2x128xf32>
    %c0_218 = arith.constant 0 : index
    %c1536 = arith.constant 1536 : index
    %98 = vector.load %arg13[%c0_218, %c1536] : memref<2x2048xf32, #tpu.memory_space<vmem>>, vector<2x128xf32>
    tpu.vector_store %arg13[%c0_218, %c1536], %97 {strides = array<i32>} : memref<2x2048xf32, #tpu.memory_space<vmem>>, vector<2x128xf32>,
    %c0_219 = arith.constant 0 : index
    %c3_220 = arith.constant 3 : index
    %c1_221 = arith.constant 1 : index
    %c0_222 = arith.constant 0 : index
    %99 = vector.load %arg12[%c0_219, %c3_220, %c1_221, %c0_222] : memref<2x4x4x128xf32, #tpu.memory_space<vmem>>, vector<2x1x1x128xf32>
    %100 = vector.shape_cast %99 : vector<2x1x1x128xf32> to vector<2x128xf32>
    %c0_223 = arith.constant 0 : index
    %c1664 = arith.constant 1664 : index
    %101 = vector.load %arg13[%c0_223, %c1664] : memref<2x2048xf32, #tpu.memory_space<vmem>>, vector<2x128xf32>
    tpu.vector_store %arg13[%c0_223, %c1664], %100 {strides = array<i32>} : memref<2x2048xf32, #tpu.memory_space<vmem>>, vector<2x128xf32>,
    %c0_224 = arith.constant 0 : index
    %c3_225 = arith.constant 3 : index
    %c2_226 = arith.constant 2 : index
    %c0_227 = arith.constant 0 : index
    %102 = vector.load %arg12[%c0_224, %c3_225, %c2_226, %c0_227] : memref<2x4x4x128xf32, #tpu.memory_space<vmem>>, vector<2x1x1x128xf32>
    %103 = vector.shape_cast %102 : vector<2x1x1x128xf32> to vector<2x128xf32>
    %c0_228 = arith.constant 0 : index
    %c1792 = arith.constant 1792 : index
    %104 = vector.load %arg13[%c0_228, %c1792] : memref<2x2048xf32, #tpu.memory_space<vmem>>, vector<2x128xf32>
    tpu.vector_store %arg13[%c0_228, %c1792], %103 {strides = array<i32>} : memref<2x2048xf32, #tpu.memory_space<vmem>>, vector<2x128xf32>,
    %c0_229 = arith.constant 0 : index
    %c3_230 = arith.constant 3 : index
    %c3_231 = arith.constant 3 : index
    %c0_232 = arith.constant 0 : index
    %105 = vector.load %arg12[%c0_229, %c3_230, %c3_231, %c0_232] : memref<2x4x4x128xf32, #tpu.memory_space<vmem>>, vector<2x1x1x128xf32>
    %106 = vector.shape_cast %105 : vector<2x1x1x128xf32> to vector<2x128xf32>
    %c0_233 = arith.constant 0 : index
    %c1920 = arith.constant 1920 : index
    %107 = vector.load %arg13[%c0_233, %c1920] : memref<2x2048xf32, #tpu.memory_space<vmem>>, vector<2x128xf32>
    tpu.vector_store %arg13[%c0_233, %c1920], %106 {strides = array<i32>} : memref<2x2048xf32, #tpu.memory_space<vmem>>, vector<2x128xf32>,
    %c0_234 = arith.constant 0 : index
    %c0_235 = arith.constant 0 : index
    %108 = vector.load %arg13[%c0_234, %c0_235] : memref<2x2048xf32, #tpu.memory_space<vmem>>, vector<2x2048xf32>
    %109 = arith.truncf %108 : vector<2x2048xf32> to vector<2x2048xbf16>
    %c0_236 = arith.constant 0 : index
    %c0_237 = arith.constant 0 : index
    %110 = vector.load %arg3[%c0_236, %c0_237] : memref<2048x128xbf16, #tpu.memory_space<vmem>>, vector<2048x128xbf16>
    %cst_238 = arith.constant dense<0.000000e+00> : vector<2x128xf32>
    %111 = tpu.matmul %109, %110, %cst_238 {dimension_numbers = #tpu.dot_dimension_numbers<[1], [0], [0], [1], [0, 0, 1, 1], [], []>} : vector<2x2048xbf16>, vector<2048x128xbf16>, vector<2x128xf32> -> vector<2x128xf32>
    %c0_239 = arith.constant 0 : index
    %c0_240 = arith.constant 0 : index
    %112 = vector.load %arg4[%c0_239, %c0_240] : memref<1x128xf32, #tpu.memory_space<vmem>>, vector<1x128xf32>
    %113 = vector.broadcast %112 : vector<1x128xf32> to vector<2x128xf32>
    %114 = arith.addf %111, %113 : vector<2x128xf32>
    %cst_241 = arith.constant 0.000000e+00 : f32
    %115 = vector.broadcast %cst_241 : f32 to vector<2x128xf32>
    %116 = arith.maximumf %114, %115 : vector<2x128xf32>
    %117 = arith.truncf %116 : vector<2x128xf32> to vector<2x128xbf16>
    %c0_242 = arith.constant 0 : index
    %c0_243 = arith.constant 0 : index
    %118 = vector.load %arg5[%c0_242, %c0_243] : memref<128x128xbf16, #tpu.memory_space<vmem>>, vector<128x128xbf16>
    %cst_244 = arith.constant dense<0.000000e+00> : vector<2x128xf32>
    %119 = tpu.matmul %117, %118, %cst_244 {dimension_numbers = #tpu.dot_dimension_numbers<[1], [0], [0], [1], [0, 0, 1, 1], [], []>} : vector<2x128xbf16>, vector<128x128xbf16>, vector<2x128xf32> -> vector<2x128xf32>
    %c0_245 = arith.constant 0 : index
    %c0_246 = arith.constant 0 : index
    %120 = vector.load %arg6[%c0_245, %c0_246] : memref<1x128xf32, #tpu.memory_space<vmem>>, vector<1x128xf32>
    %121 = vector.broadcast %120 : vector<1x128xf32> to vector<2x128xf32>
    %122 = arith.addf %119, %121 : vector<2x128xf32>
    %c0_247 = arith.constant 0 : index
    %c0_248 = arith.constant 0 : index
    %123 = vector.load %arg7[%c0_247, %c0_248] : memref<2x128xf32, #tpu.memory_space<vmem>>, vector<2x128xf32>
    tpu.vector_store %arg7[%c0_247, %c0_248], %122 {strides = array<i32>} : memref<2x128xf32, #tpu.memory_space<vmem>>, vector<2x128xf32>,
    return
  }
}

</mosaic_0001>

<bundles_post_ra>
// kernel: vcnn_forward.1
= control target key start
LH: loop header
LB: loop body
LE: loop exit
PB: predicated region body
PF: predicated region fallthrough
CT: control target
= control target key end

     0   :  { %vm364_vm0 = vcmask 1045504   ;;  %s7426_s0 = inlined_call_operand.vmem [shape: bf16[512,28], index: 0, kind: input, shape index: {}]   ;;  %s7427_s1 = inlined_call_operand.vmem [shape: bf16[28,128], index: 1, kind: input, shape index: {}]   ;;  %s7428_s2 = inlined_call_operand.vmem [shape: bf16[1280,128], index: 2, kind: input, shape index: {}]   ;;  %s7429_s3 = inlined_call_operand.vmem [shape: bf16[2048,128], index: 3, kind: input, shape index: {}]   ;;  %s7430_s4 = inlined_call_operand.vmem [shape: f32[1,128], index: 4, kind: input, shape index: {}]   ;;  %s7431_s5 = inlined_call_operand.vmem [shape: bf16[128,128], index: 5, kind: input, shape index: {}]   ;;  %s7432_s6 = inlined_call_operand.vmem [shape: f32[1,128], index: 6, kind: input, shape index: {}]   ;;  %s7433_s7 = inlined_call_operand.hbm [shape: f32[2,128], index: 7, kind: output, shape index: {}]  }
   0x1   :  { %v4938_v0 = vld [vmem:[%s7427_s1 + $0x8] sm:$0xf]  ;;  %v5869_v1 = vld [vmem:[%s7427_s1 + $0x8] sm:$0x30] }
   0x2   :  { %v4939_v2 = vor.u32 %v5869_v1, %v4938_v0 }
   0x3   :  { %12 = vsyncpa [#allocation9], 0  ;;  %v5868_v4 = vld [vmem:[%s7427_s1] sm:$0xff]  ;;  %vm267_vm1 = vcmask 228352   ;;  %v5837_v6 = vld [vmem:[%s7426_s0 + $0x8] sm:$0xff]  ;;  %v6117_v38 = vmov 0.0  }
   0x4   :  { %v366_v3 = vsel %vm364_vm0, %v4939_v2, 0  ;;  %v5836_v5 = vld [vmem:[%s7426_s0] sm:$0xff]  ;;  %v5838_v7 = vld [vmem:[%s7426_s0 + $0x10] sm:$0xff]  ;;  %v5839_v8 = vld [vmem:[%s7426_s0 + $0x18] sm:$0xff]  ;;  %856 = vst [vmem:[#allocation4] sm:$0xff] %v6117_v38  ;;  %vm3153_vm3 = vcmask 1041409  }
   0x5   :  { %374 = vmatpush.bf16.msra.mxu0 %v366_v3  ;;  %v5840_v9 = vld [vmem:[%s7426_s0 + $0x20] sm:$0xff]  ;;  %v5841_v10 = vld [vmem:[%s7426_s0 + $0x28] sm:$0xff]  ;;  %v5842_v11 = vld [vmem:[%s7426_s0 + $0x30] sm:$0xff]  ;;  %857 = vst [vmem:[#allocation4 + $0x8] sm:$0xff] %v6117_v38  ;;  %vm3155_vm4 = vcmask 1043459   ;;  %vm3157_vm5 = vcmask 1045509  }
   0x6   :  { %v5843_v12 = vld [vmem:[%s7426_s0 + $0x38] sm:$0xff]  ;;  %v5876_v16 = vld [vmem:[%s7428_s2 + $0x30] sm:$0xff]  ;;  %v5844_v19 = vld [vmem:[%s7426_s0 + $0x40] sm:$0xff]  ;;  %858 = vst [vmem:[#allocation4 + $0x10] sm:$0xff] %v6117_v38  ;;  %vm3159_vm6 = vcmask 1047559   ;;  %s6119_s24 = smov [#allocation8]  }
   0x7   :  { %v5877_v13 = vld [vmem:[%s7428_s2 + $0x38] sm:$0xff]  ;;  %v5884_v17 = vld [vmem:[%s7428_s2 + $0x70] sm:$0xff]  ;;  %v5875_v22 = vld [vmem:[%s7428_s2 + $0x28] sm:$0xff]  ;;  %859 = vst [vmem:[#allocation4 + $0x18] sm:$0xff] %v6117_v38  ;;  %s4747_s25 = sshll.u32 %s6119_s24, 4  ;;  %s4749_s26 = sshll.u32 %s7433_s7, 4  ;;  %s4748_s25 = int_to_ptr.vmem [resolvable:$true] %s4747_s25  ;;  %s4750_s26 = int_to_ptr.hbm [resolvable:$true] %s4749_s26 }
   0x8   :  { %v5885_v14 = vld [vmem:[%s7428_s2 + $0x78] sm:$0xff]  ;;  %2527 = vmatpush.bf16.msra.mxu1 %v5877_v13  ;;  %v5892_v18 = vld [vmem:[%s7428_s2 + $0xb0] sm:$0xff]  ;;  %v5883_v23 = vld [vmem:[%s7428_s2 + $0x68] sm:$0xff]  ;;  %897 = vst [vmem:[#allocation4] ss:$8 sm:$0xf] %v6117_v38 }
   0x9   :  { %375 = vmatpush.bf16.msra.mxu0 %v5868_v4  ;;  %v5893_v15 = vld [vmem:[%s7428_s2 + $0xb8] sm:$0xff]  ;;  %2576 = vmatpush.bf16.msra.mxu2 %v5885_v14  ;;  %v5891_v24 = vld [vmem:[%s7428_s2 + $0xa8] sm:$0xff]  ;;  %v5874_v25 = vld [vmem:[%s7428_s2 + $0x20] sm:$0xff]  ;;  %907 = vst [vmem:[#allocation4 + $0x50] ss:$8 sm:$0xf] %v6117_v38 }
   0xa   :  { %2625 = vmatpush.bf16.msra.mxu3 %v5893_v15  ;;  %v5882_v26 = vld [vmem:[%s7428_s2 + $0x60] sm:$0xff]  ;;  %v5873_v30 = vld [vmem:[%s7428_s2 + $0x18] sm:$0xff]  ;;  %v5872_v33 = vld [vmem:[%s7428_s2 + $0x10] sm:$0xff]  ;;  %997 = vst [vmem:[#allocation4 + $0x7] ss:$8 sm:$0xf] %v6117_v38 }
   0xb   :  { %v5890_v27 = vld [vmem:[%s7428_s2 + $0xa0] sm:$0xff]  ;;  %v5881_v31 = vld [vmem:[%s7428_s2 + $0x58] sm:$0xff]  ;;  %v5880_v34 = vld [vmem:[%s7428_s2 + $0x50] sm:$0xff]  ;;  %1003 = vst [vmem:[#allocation4 + $0x57] ss:$8 sm:$0xf] %v6117_v38 }
   0xc   :  { %4940 = vmatmul.msk.bf16.vlgmr.msra.gmra.mxu0 %vm267_vm1, %v5836_v5  ;;  %2528 = vmatpush.bf16.msra.mxu1 %v5876_v16  ;;  %v5889_v32 = vld [vmem:[%s7428_s2 + $0x98] sm:$0xff]  ;;  %v5888_v35 = vld [vmem:[%s7428_s2 + $0x90] sm:$0xff]  ;;  %v5845_v36 = vld [vmem:[%s7426_s0 + $0x48] sm:$0xff]  ;;  %860 = vst [vmem:[#allocation4 + $0x20] sm:$0xff] %v6117_v38 }
   0xd   :  { %2577 = vmatpush.bf16.msra.mxu2 %v5884_v17  ;;  %v5871_v40 = vld [vmem:[%s7428_s2 + $0x8] sm:$0xff]  ;;  %v5870_v43 = vld [vmem:[%s7428_s2] sm:$0xff]  ;;  %861 = vst [vmem:[#allocation4 + $0x28] sm:$0xff] %v6117_v38  ;;  %v5846_v48 = vld [vmem:[%s7426_s0 + $0x50] sm:$0xff] }
   0xe   :  { %2626 = vmatpush.bf16.msra.mxu3 %v5892_v18  ;;  %v5879_v41 = vld [vmem:[%s7428_s2 + $0x48] sm:$0xff]  ;;  %v5878_v44 = vld [vmem:[%s7428_s2 + $0x40] sm:$0xff]  ;;  %862 = vst [vmem:[#allocation4 + $0x30] sm:$0xff] %v6117_v38  ;;  %v5847_v61 = vld [vmem:[%s7426_s0 + $0x58] sm:$0xff] }
   0xf   :  { %v5887_v42 = vld [vmem:[%s7428_s2 + $0x88] sm:$0xff]  ;;  %v5886_v45 = vld [vmem:[%s7428_s2 + $0x80] sm:$0xff]  ;;  %863 = vst [vmem:[#allocation4 + $0x38] sm:$0xff] %v6117_v38 }
  0x10   :  { %2529 = vmatpush.bf16.msra.mxu1 %v5875_v22  ;;  %864 = vst [vmem:[#allocation4 + $0x40] sm:$0xff] %v6117_v38  ;;  %v5848_v15 = vld [vmem:[%s7426_s0 + $0x60] sm:$0xff] }
  0x11   :  { %2578 = vmatpush.bf16.msra.mxu2 %v5883_v23  ;;  %865 = vst [vmem:[#allocation4 + $0x48] sm:$0xff] %v6117_v38  ;;  %v1647_v1 = vld [vmem:[#allocation4] sm:$0xff]  ;;  %v1648_v18 = vld [vmem:[#allocation4 + $0x8] sm:$0xff] }
  0x12   :  { %2627 = vmatpush.bf16.msra.mxu3 %v5891_v24  ;;  %866 = vst [vmem:[#allocation4 + $0x280] sm:$0xff] %v6117_v38 }
  0x13   :  { %867 = vst [vmem:[#allocation4 + $0x288] sm:$0xff] %v6117_v38 }
  0x14   :  { %2530 = vmatpush.bf16.msra.mxu1 %v5874_v25  ;;  %868 = vst [vmem:[#allocation4 + $0x290] sm:$0xff] %v6117_v38 }
  0x15   :  { %2579 = vmatpush.bf16.msra.mxu2 %v5882_v26  ;;  %869 = vst [vmem:[#allocation4 + $0x298] sm:$0xff] %v6117_v38 }
  0x16   :  { %2628 = vmatpush.bf16.msra.mxu3 %v5890_v27  ;;  %870 = vst [vmem:[#allocation4 + $0x2a0] sm:$0xff] %v6117_v38 }
  0x17   :  { %871 = vst [vmem:[#allocation4 + $0x2a8] sm:$0xff] %v6117_v38 }
  0x18   :  { %2531 = vmatpush.bf16.msra.mxu1 %v5873_v30  ;;  %872 = vst [vmem:[#allocation4 + $0x2b0] sm:$0xff] %v6117_v38 }
  0x19   :  { %2580 = vmatpush.bf16.msra.mxu2 %v5881_v31  ;;  %873 = vst [vmem:[#allocation4 + $0x2b8] sm:$0xff] %v6117_v38 }
  0x1a   :  { %2629 = vmatpush.bf16.msra.mxu3 %v5889_v32  ;;  %874 = vst [vmem:[#allocation4 + $0x2c0] sm:$0xff] %v6117_v38 }
  0x1b   :  { %875 = vst [vmem:[#allocation4 + $0x2c8] sm:$0xff] %v6117_v38 }
  0x1c   :  { %4941 = vmatmul.msk.bf16.gmra.mxu0 %vm267_vm1, %v5837_v6  ;;  %2532 = vmatpush.bf16.msra.mxu1 %v5872_v33  ;;  %877 = vst [vmem:[#allocation4 + $0x230] sm:$0xff] %v6117_v38 }
  0x1d   :  { %2581 = vmatpush.bf16.msra.mxu2 %v5880_v34  ;;  %878 = vst [vmem:[#allocation4 + $0x238] sm:$0xff] %v6117_v38 }
  0x1e   :  { %2630 = vmatpush.bf16.msra.mxu3 %v5888_v35  ;;  %879 = vst [vmem:[#allocation4 + $0x240] sm:$0xff] %v6117_v38 }
  0x1f   :  { %880 = vst [vmem:[#allocation4 + $0x248] sm:$0xff] %v6117_v38 }
  0x20   :  { %2533 = vmatpush.bf16.msra.mxu1 %v5871_v40  ;;  %881 = vst [vmem:[#allocation4 + $0x250] sm:$0xff] %v6117_v38 }
  0x21   :  { %2582 = vmatpush.bf16.msra.mxu2 %v5879_v41  ;;  %882 = vst [vmem:[#allocation4 + $0x258] sm:$0xff] %v6117_v38  ;;  %v1649_v41 = vld [vmem:[#allocation4 + $0x10] sm:$0xff] }
  0x22   :  { %2631 = vmatpush.bf16.msra.mxu3 %v5887_v42  ;;  %883 = vst [vmem:[#allocation4 + $0x260] sm:$0xff] %v6117_v38 }
  0x23   :  { %884 = vst [vmem:[#allocation4 + $0x268] sm:$0xff] %v6117_v38 }
  0x24   :  { %2534 = vmatpush.bf16.msra.mxu1 %v5870_v43  ;;  %885 = vst [vmem:[#allocation4 + $0x270] sm:$0xff] %v6117_v38 }
  0x25   :  { %2583 = vmatpush.bf16.msra.mxu2 %v5878_v44  ;;  %886 = vst [vmem:[#allocation4 + $0x278] sm:$0xff] %v6117_v38 }
  0x26   :  { %2632 = vmatpush.bf16.msra.mxu3 %v5886_v45  ;;  %887 = vst [vmem:[#allocation4 + $0x4b0] sm:$0xff] %v6117_v38 }
  0x27   :  { %888 = vst [vmem:[#allocation4 + $0x4b8] sm:$0xff] %v6117_v38 }
  0x28   :  { %889 = vst [vmem:[#allocation4 + $0x4c0] sm:$0xff] %v6117_v38 }
  0x29   :  { %890 = vst [vmem:[#allocation4 + $0x4c8] sm:$0xff] %v6117_v38 }
  0x2a   :  { %891 = vst [vmem:[#allocation4 + $0x4d0] sm:$0xff] %v6117_v38 }
  0x2b   :  { %892 = vst [vmem:[#allocation4 + $0x4d8] sm:$0xff] %v6117_v38 }
  0x2c   :  { %4942 = vmatmul.msk.bf16.gmra.mxu0 %vm267_vm1, %v5838_v7  ;;  %893 = vst [vmem:[#allocation4 + $0x4e0] sm:$0xff] %v6117_v38 }
  0x2d   :  { %894 = vst [vmem:[#allocation4 + $0x4e8] sm:$0xff] %v6117_v38 }
  0x2e   :  { %895 = vst [vmem:[#allocation4 + $0x4f0] sm:$0xff] %v6117_v38 }
  0x2f   :  { %896 = vst [vmem:[#allocation4 + $0x4f8] sm:$0xff] %v6117_v38 }
  0x30   :  { %908 = vst [vmem:[#allocation4 + $0x50] ss:$8 sm:$0xf0] %v6117_v38 }
  0x31   :  { %913 = vst [vmem:[#allocation4 + $0xa0] ss:$8 sm:$0xf] %v6117_v38 }
  0x32   :  { %914 = vst [vmem:[#allocation4 + $0xa0] ss:$8 sm:$0xf0] %v6117_v38 }
  0x33   :  { %919 = vst [vmem:[#allocation4 + $0xf0] ss:$8 sm:$0xf] %v6117_v38 }
  0x34   :  { %920 = vst [vmem:[#allocation4 + $0xf0] ss:$8 sm:$0xf0] %v6117_v38 }
  0x35   :  { %925 = vst [vmem:[#allocation4 + $0x140] ss:$8 sm:$0xf] %v6117_v38 }
  0x36   :  { %926 = vst [vmem:[#allocation4 + $0x140] ss:$8 sm:$0xf0] %v6117_v38 }
  0x37   :  { %931 = vst [vmem:[#allocation4 + $0x190] ss:$8 sm:$0xf] %v6117_v38 }
  0x38   :  { %932 = vst [vmem:[#allocation4 + $0x190] ss:$8 sm:$0xf0] %v6117_v38 }
  0x39   :  { %937 = vst [vmem:[#allocation4 + $0x1e0] ss:$8 sm:$0xf] %v6117_v38 }
  0x3a   :  { %938 = vst [vmem:[#allocation4 + $0x1e0] ss:$8 sm:$0xf0] %v6117_v38 }
  0x3b   :  { %955 = vst [vmem:[#allocation4 + $0x2d0] ss:$8 sm:$0xf] %v6117_v38 }
  0x3c   :  { %4943 = vmatmul.msk.bf16.gmra.mxu0 %vm267_vm1, %v5839_v8  ;;  %956 = vst [vmem:[#allocation4 + $0x2d0] ss:$8 sm:$0xf0] %v6117_v38 }
  0x3d   :  { %961 = vst [vmem:[#allocation4 + $0x320] ss:$8 sm:$0xf] %v6117_v38 }
  0x3e   :  { %962 = vst [vmem:[#allocation4 + $0x320] ss:$8 sm:$0xf0] %v6117_v38 }
  0x3f   :  { %967 = vst [vmem:[#allocation4 + $0x370] ss:$8 sm:$0xf] %v6117_v38 }
  0x40   :  { %968 = vst [vmem:[#allocation4 + $0x370] ss:$8 sm:$0xf0] %v6117_v38 }
  0x41   :  { %973 = vst [vmem:[#allocation4 + $0x3c0] ss:$8 sm:$0xf] %v6117_v38 }
  0x42   :  { %974 = vst [vmem:[#allocation4 + $0x3c0] ss:$8 sm:$0xf0] %v6117_v38 }
  0x43   :  { %979 = vst [vmem:[#allocation4 + $0x410] ss:$8 sm:$0xf] %v6117_v38 }
  0x44   :  { %980 = vst [vmem:[#allocation4 + $0x410] ss:$8 sm:$0xf0] %v6117_v38 }
  0x45   :  { %985 = vst [vmem:[#allocation4 + $0x460] ss:$8 sm:$0xf] %v6117_v38 }
  0x46   :  { %986 = vst [vmem:[#allocation4 + $0x460] ss:$8 sm:$0xf0] %v6117_v38 }
  0x47   :  { %1004 = vst [vmem:[#allocation4 + $0x57] ss:$8 sm:$0xf0] %v6117_v38 }
  0x48   :  { %1009 = vst [vmem:[#allocation4 + $0xa7] ss:$8 sm:$0xf] %v6117_v38 }
  0x49   :  { %1010 = vst [vmem:[#allocation4 + $0xa7] ss:$8 sm:$0xf0] %v6117_v38 }
  0x4a   :  { %1015 = vst [vmem:[#allocation4 + $0xf7] ss:$8 sm:$0xf] %v6117_v38 }
  0x4b   :  { %1016 = vst [vmem:[#allocation4 + $0xf7] ss:$8 sm:$0xf0] %v6117_v38 }
  0x4c   :  { %4944 = vmatmul.msk.bf16.gmra.mxu0 %vm267_vm1, %v5840_v9  ;;  %1021 = vst [vmem:[#allocation4 + $0x147] ss:$8 sm:$0xf] %v6117_v38 }
  0x4d   :  { %1022 = vst [vmem:[#allocation4 + $0x147] ss:$8 sm:$0xf0] %v6117_v38 }
  0x4e   :  { %1027 = vst [vmem:[#allocation4 + $0x197] ss:$8 sm:$0xf] %v6117_v38 }
  0x4f   :  { %1028 = vst [vmem:[#allocation4 + $0x197] ss:$8 sm:$0xf0] %v6117_v38 }
  0x50   :  { %1033 = vst [vmem:[#allocation4 + $0x1e7] ss:$8 sm:$0xf] %v6117_v38 }
  0x51   :  { %1034 = vst [vmem:[#allocation4 + $0x1e7] ss:$8 sm:$0xf0] %v6117_v38 }
  0x52   :  { %1051 = vst [vmem:[#allocation4 + $0x2d7] ss:$8 sm:$0xf] %v6117_v38 }
  0x53   :  { %1052 = vst [vmem:[#allocation4 + $0x2d7] ss:$8 sm:$0xf0] %v6117_v38 }
  0x54   :  { %1057 = vst [vmem:[#allocation4 + $0x327] ss:$8 sm:$0xf] %v6117_v38 }
  0x55   :  { %1058 = vst [vmem:[#allocation4 + $0x327] ss:$8 sm:$0xf0] %v6117_v38 }
  0x56   :  { %1063 = vst [vmem:[#allocation4 + $0x377] ss:$8 sm:$0xf] %v6117_v38 }
  0x57   :  { %1064 = vst [vmem:[#allocation4 + $0x377] ss:$8 sm:$0xf0] %v6117_v38 }
  0x58   :  { %1069 = vst [vmem:[#allocation4 + $0x3c7] ss:$8 sm:$0xf] %v6117_v38 }
  0x59   :  { %1070 = vst [vmem:[#allocation4 + $0x3c7] ss:$8 sm:$0xf0] %v6117_v38 }
  0x5a   :  { %1075 = vst [vmem:[#allocation4 + $0x417] ss:$8 sm:$0xf] %v6117_v38 }
  0x5b   :  { %1076 = vst [vmem:[#allocation4 + $0x417] ss:$8 sm:$0xf0] %v6117_v38 }
  0x5c   :  { %4945 = vmatmul.msk.bf16.gmra.mxu0 %vm267_vm1, %v5841_v10  ;;  %1081 = vst [vmem:[#allocation4 + $0x467] ss:$8 sm:$0xf] %v6117_v38 }
  0x5d   :  { %1082 = vst [vmem:[#allocation4 + $0x467] ss:$8 sm:$0xf0] %v6117_v38 }
  0x5e   :  { %898 = vst [vmem:[#allocation4] ss:$8 sm:$0xf0] %v6117_v38 }
  0x5f   :  { %943 = vst [vmem:[#allocation4 + $0x230] ss:$8 sm:$0xf] %v6117_v38 }
  0x60   :  { %944 = vst [vmem:[#allocation4 + $0x230] ss:$8 sm:$0xf0] %v6117_v38 }
  0x61   :  { %949 = vst [vmem:[#allocation4 + $0x280] ss:$8 sm:$0xf] %v6117_v38 }
  0x62   :  { %950 = vst [vmem:[#allocation4 + $0x280] ss:$8 sm:$0xf0] %v6117_v38 }
  0x63   :  { %991 = vst [vmem:[#allocation4 + $0x4b0] ss:$8 sm:$0xf] %v6117_v38 }
  0x64   :  { %992 = vst [vmem:[#allocation4 + $0x4b0] ss:$8 sm:$0xf0] %v6117_v38 }
  0x65   :  { %998 = vst [vmem:[#allocation4 + $0x7] ss:$8 sm:$0xf0] %v6117_v38 }
  0x66   :  { %1039 = vst [vmem:[#allocation4 + $0x237] ss:$8 sm:$0xf] %v6117_v38 }
  0x67   :  { %1040 = vst [vmem:[#allocation4 + $0x237] ss:$8 sm:$0xf0] %v6117_v38 }
  0x68   :  { %1045 = vst [vmem:[#allocation4 + $0x287] ss:$8 sm:$0xf] %v6117_v38 }
  0x69   :  { %1046 = vst [vmem:[#allocation4 + $0x287] ss:$8 sm:$0xf0] %v6117_v38 }
  0x6a   :  { %1087 = vst [vmem:[#allocation4 + $0x4b7] ss:$8 sm:$0xf] %v6117_v38 }
  0x6b   :  { %1088 = vst [vmem:[#allocation4 + $0x4b7] ss:$8 sm:$0xf0] %v6117_v38 }
  0x6c   :  { %4946 = vmatmul.msk.bf16.gmra.mxu0 %vm267_vm1, %v5842_v11 }
  0x7c   :  { %4947 = vmatmul.msk.bf16.gmra.mxu0 %vm267_vm1, %v5843_v12 }
  0x89   :  { %v377_v20 = vpop.f32.mrf.mxu0 }
  0x8a   :  { %v537_v21 = vmax.f32 %v377_v20, 0.0  ;;  %v5849_v20 = vld [vmem:[%s7426_s0 + $0x68] sm:$0xff] }
  0x8c   :  { %601 = vst [vmem:[#allocation2] sm:$0xff] %v537_v21  ;;  %4948 = vmatmul.msk.bf16.gmra.mxu0 %vm267_vm1, %v5844_v19 }
  0x91   :  { %v379_v28 = vpop.f32.mrf.mxu0 }
  0x92   :  { %v538_v29 = vmax.f32 %v379_v28, 0.0 }
  0x94   :  { %602 = vst [vmem:[#allocation2 + $0x8] sm:$0xff] %v538_v29 }
  0x99   :  { %v382_v37 = vpop.f32.mrf.mxu0 }
  0x9a   :  { %v539_v39 = vmax.f32 %v382_v37, 0.0 }
  0x9b   :  { %v665_v49 = vld [vmem:[#allocation2] ss:$2 sm:$0xff]  ;;  %v697_v50 = vld [vmem:[#allocation2 + $0x1] ss:$2 sm:$0xff] }
  0x9c   :  { %603 = vst [vmem:[#allocation2 + $0x10] sm:$0xff] %v539_v39  ;;  %4949 = vmatmul.msk.bf16.gmra.mxu0 %vm267_vm1, %v5845_v36  ;;  %v728_v55 = vmax.f32 %v665_v49, %v697_v50 }
  0xa1   :  { %v384_v46 = vpop.f32.mrf.mxu0 }
  0xa2   :  { %v540_v47 = vmax.f32 %v384_v46, 0.0  ;;  %v5850_v46 = vld [vmem:[%s7426_s0 + $0x70] sm:$0xff] }
  0xa4   :  { %604 = vst [vmem:[#allocation2 + $0x18] sm:$0xff] %v540_v47 }
  0xa9   :  { %v387_v51 = vpop.f32.mrf.mxu0 }
  0xaa   :  { %v541_v52 = vmax.f32 %v387_v51, 0.0 }
  0xab   :  { %v745_v53 = vld [vmem:[#allocation2 + $0x10] ss:$2 sm:$0xff]  ;;  %v777_v54 = vld [vmem:[#allocation2 + $0x11] ss:$2 sm:$0xff] }
  0xac   :  { %v808_v56 = vmax.f32 %v745_v53, %v777_v54  ;;  %605 = vst [vmem:[#allocation2 + $0x20] sm:$0xff] %v541_v52  ;;  %4950 = vmatmul.msk.bf16.gmra.mxu0 %vm267_vm1, %v5846_v48 }
  0xae   :  { %v824_v57 = vmax.f32 %v728_v55, %v808_v56 }
  0xb0   :  { %840 = vst [vmem:[#allocation3] sm:$0xff] %v824_v57 }
  0xb1   :  { %v389_v58 = vpop.f32.mrf.mxu0 }
  0xb2   :  { %v542_v59 = vmax.f32 %v389_v58, 0.0  ;;  %v5851_v58 = vld [vmem:[%s7426_s0 + $0x78] sm:$0xff] }
  0xb4   :  { %606 = vst [vmem:[#allocation2 + $0x28] sm:$0xff] %v542_v59 }
  0xb7   :  { %v1092_v60 = vld [vmem:[#allocation3] sm:$0x3f] }
  0xb8   :  { %v1116_v62 = vrot.slane %v1092_v60, 7  ;;  %v1153_v13 = vld [vmem:[#allocation3 + $0x1] sm:$0x3f] }
  0xb9   :  { %v392_v63 = vpop.f32.mrf.mxu0  ;;  %v1177_v16 = vrot.slane %v1153_v13, 7  ;;  %v1213_v22 = vld [vmem:[#allocation3 + $0x2] sm:$0x3f] }
  0xba   :  { %v543_v0 = vmax.f32 %v392_v63, 0.0  ;;  %1141 = vst [vmem:[#allocation4 + $0x50] sm:$0x7e] %v1116_v62  ;;  %v1237_v24 = vrot.slane %v1213_v22, 7 }
  0xbb   :  { %v667_v6 = vld [vmem:[#allocation2 + $0x20] ss:$2 sm:$0xff]  ;;  %v699_v7 = vld [vmem:[#allocation2 + $0x21] ss:$2 sm:$0xff]  ;;  %1201 = vst [vmem:[#allocation4 + $0x58] sm:$0x7e] %v1177_v16 }
  0xbc   :  { %607 = vst [vmem:[#allocation2 + $0x30] sm:$0xff] %v543_v0  ;;  %4951 = vmatmul.msk.bf16.gmra.mxu0 %vm267_vm1, %v5847_v61  ;;  %v729_v10 = vmax.f32 %v667_v6, %v699_v7 }
  0xbd   :  { %1261 = vst [vmem:[#allocation4 + $0x60] sm:$0x7e] %v1237_v24 }
  0xc1   :  { %v394_v2 = vpop.f32.mrf.mxu0  ;;  %v1657_v3 = vld [vmem:[#allocation4 + $0x50] sm:$0xff] }
  0xc2   :  { %v544_v4 = vmax.f32 %v394_v2, 0.0  ;;  %v1807_v5 = vpack.c.bf16 %v1657_v3, %v1647_v1  ;;  %v1658_v19 = vld [vmem:[#allocation4 + $0x58] sm:$0xff] }
  0xc3   :  { %v1808_v21 = vpack.c.bf16 %v1658_v19, %v1648_v18 }
  0xc4   :  { %608 = vst [vmem:[#allocation2 + $0x38] sm:$0xff] %v544_v4  ;;  %2535 = vmatmul.bf16.vlgmr.msra.gmra.mxu1 %v1807_v5  ;;  %v1659_v44 = vld [vmem:[#allocation4 + $0x60] sm:$0xff] }
  0xc5   :  { %2584 = vmatmul.bf16.vlgmr.msra.gmra.mxu2 %v1808_v21  ;;  %v1809_v45 = vpack.c.bf16 %v1659_v44, %v1649_v41  ;;  %v5853_v41 = vld [vmem:[%s7426_s0 + $0x88] sm:$0xff] }
  0xc7   :  { %2633 = vmatmul.bf16.vlgmr.msra.gmra.mxu3 %v1809_v45 }
  0xc9   :  { %v397_v14 = vpop.f32.mrf.mxu0 }
  0xca   :  { %v545_v25 = vmax.f32 %v397_v14, 0.0 }
  0xcb   :  { %v747_v8 = vld [vmem:[#allocation2 + $0x30] ss:$2 sm:$0xff]  ;;  %v779_v9 = vld [vmem:[#allocation2 + $0x31] ss:$2 sm:$0xff] }
  0xcc   :  { %v809_v11 = vmax.f32 %v747_v8, %v779_v9  ;;  %4952 = vmatmul.msk.bf16.gmra.mxu0 %vm267_vm1, %v5848_v15  ;;  %609 = vst [vmem:[#allocation2 + $0x40] sm:$0xff] %v545_v25  ;;  %v899_v8 = vlaneseq }
  0xce   :  { %v825_v12 = vmax.f32 %v729_v10, %v809_v11  ;;  %vm6409_vm2 = vcmp.lt.s32.totalorder %v899_v8, 256  ;;  %v5855_v8 = vld [vmem:[%s7426_s0 + $0x98] sm:$0xff] }
  0xcf   :  { %904 = vst.msk [vmem:[#allocation4 + $0x40] ss:$8 sm:$0x3] %vm6409_vm2, %v6117_v38 }
  0xd0   :  { %841 = vst [vmem:[#allocation3 + $0x8] sm:$0xff] %v825_v12 }
  0xd1   :  { %v399_v17 = vpop.f32.mrf.mxu0  ;;  %910 = vst.msk [vmem:[#allocation4 + $0x90] ss:$8 sm:$0x3] %vm6409_vm2, %v6117_v38 }
  0xd2   :  { %v546_v27 = vmax.f32 %v399_v17, 0.0  ;;  %1000 = vst.msk [vmem:[#allocation4 + $0x47] ss:$8 sm:$0x3] %vm6409_vm2, %v6117_v38 }
  0xd3   :  { %1006 = vst.msk [vmem:[#allocation4 + $0x97] ss:$8 sm:$0x3] %vm6409_vm2, %v6117_v38 }
  0xd4   :  { %610 = vst [vmem:[#allocation2 + $0x48] sm:$0xff] %v546_v27 }
  0xd5   :  { %916 = vst.msk [vmem:[#allocation4 + $0xe0] ss:$8 sm:$0x3] %vm6409_vm2, %v6117_v38 }
  0xd6   :  { %922 = vst.msk [vmem:[#allocation4 + $0x130] ss:$8 sm:$0x3] %vm6409_vm2, %v6117_v38 }
  0xd7   :  { %v1093_v26 = vld [vmem:[#allocation3 + $0x8] sm:$0x3f]  ;;  %928 = vst.msk [vmem:[#allocation4 + $0x180] ss:$8 sm:$0x3] %vm6409_vm2, %v6117_v38 }
  0xd8   :  { %v1154_v29 = vld [vmem:[#allocation3 + $0x9] sm:$0x3f]  ;;  %v1117_v30 = vrot.slane %v1093_v26, 7  ;;  %934 = vst.msk [vmem:[#allocation4 + $0x1d0] ss:$8 sm:$0x3] %vm6409_vm2, %v6117_v38 }
  0xd9   :  { %v402_v23 = vpop.f32.mrf.mxu0  ;;  %v1214_v31 = vld [vmem:[#allocation3 + $0xa] sm:$0x3f]  ;;  %v1178_v34 = vrot.slane %v1154_v29, 7  ;;  %940 = vst.msk [vmem:[#allocation4 + $0x220] ss:$8 sm:$0x3] %vm6409_vm2, %v6117_v38 }
  0xda   :  { %v547_v28 = vmax.f32 %v402_v23, 0.0  ;;  %v1274_v32 = vld [vmem:[#allocation3 + $0x8] sm:$0x3f]  ;;  %v1238_v37 = vrot.slane %v1214_v31, 7  ;;  %1142 = vst [vmem:[#allocation4 + $0xa0] sm:$0x7e] %v1117_v30 }
  0xdb   :  { %v1334_v35 = vld [vmem:[#allocation3 + $0x9] sm:$0x3f]  ;;  %v1298_v40 = vrot.slane %v1274_v32, 7  ;;  %1202 = vst [vmem:[#allocation4 + $0xa8] sm:$0x7e] %v1178_v34 }
  0xdc   :  { %4953 = vmatmul.msk.bf16.gmra.mxu0 %vm267_vm1, %v5849_v20  ;;  %611 = vst [vmem:[#allocation2 + $0x50] sm:$0xff] %v547_v28  ;;  %v1394_v39 = vld [vmem:[#allocation3 + $0xa] sm:$0x3f]  ;;  %v1358_v42 = vrot.slane %v1334_v35, 7  ;;  %v5852_v28 = vld [vmem:[%s7426_s0 + $0x80] sm:$0xff] }
  0xdd   :  { %v1418_v43 = vrot.slane %v1394_v39, 7  ;;  %1262 = vst [vmem:[#allocation4 + $0xb0] sm:$0x7e] %v1238_v37  ;;  %v669_v47 = vld [vmem:[#allocation2 + $0x40] ss:$2 sm:$0xff] }
  0xde   :  { %1322 = vst [vmem:[#allocation4 + $0x68] sm:$0x7e] %v1298_v40  ;;  %v701_v48 = vld [vmem:[#allocation2 + $0x41] ss:$2 sm:$0xff] }
  0xdf   :  { %1382 = vst [vmem:[#allocation4 + $0x70] sm:$0x7e] %v1358_v42  ;;  %v730_v53 = vmax.f32 %v669_v47, %v701_v48 }
  0xe0   :  { %1442 = vst [vmem:[#allocation4 + $0x78] sm:$0x7e] %v1418_v43 }
  0xe1   :  { %v404_v33 = vpop.f32.mrf.mxu0  ;;  %v1667_v15 = vld [vmem:[#allocation4 + $0xa0] sm:$0xff]  ;;  %946 = vst.msk [vmem:[#allocation4 + $0x270] ss:$8 sm:$0x3] %vm6409_vm2, %v6117_v38 }
  0xe2   :  { %v548_v36 = vmax.f32 %v404_v33, 0.0  ;;  %v1668_v17 = vld [vmem:[#allocation4 + $0xa8] sm:$0xff]  ;;  %952 = vst.msk [vmem:[#allocation4 + $0x2c0] ss:$8 sm:$0x3] %vm6409_vm2, %v6117_v38 }
  0xe3   :  { %958 = vst.msk [vmem:[#allocation4 + $0x310] ss:$8 sm:$0x3] %vm6409_vm2, %v6117_v38 }
  0xe4   :  { %612 = vst [vmem:[#allocation2 + $0x58] sm:$0xff] %v548_v36  ;;  %v1669_v24 = vld [vmem:[#allocation4 + $0xb0] sm:$0xff] }
  0xe5   :  { %964 = vst.msk [vmem:[#allocation4 + $0x360] ss:$8 sm:$0x3] %vm6409_vm2, %v6117_v38 }
  0xe6   :  { %970 = vst.msk [vmem:[#allocation4 + $0x3b0] ss:$8 sm:$0x3] %vm6409_vm2, %v6117_v38 }
  0xe7   :  { %976 = vst.msk [vmem:[#allocation4 + $0x400] ss:$8 sm:$0x3] %vm6409_vm2, %v6117_v38 }
  0xe8   :  { %982 = vst.msk [vmem:[#allocation4 + $0x450] ss:$8 sm:$0x3] %vm6409_vm2, %v6117_v38 }
  0xe9   :  { %v407_v49 = vpop.f32.mrf.mxu0  ;;  %988 = vst.msk [vmem:[#allocation4 + $0x4a0] ss:$8 sm:$0x3] %vm6409_vm2, %v6117_v38 }
  0xea   :  { %v549_v50 = vmax.f32 %v407_v49, 0.0  ;;  %994 = vst.msk [vmem:[#allocation4 + $0x4f0] ss:$8 sm:$0x3] %vm6409_vm2, %v6117_v38 }
  0xeb   :  { %v749_v51 = vld [vmem:[#allocation2 + $0x50] ss:$2 sm:$0xff]  ;;  %v781_v52 = vld [vmem:[#allocation2 + $0x51] ss:$2 sm:$0xff] }
  0xec   :  { %4954 = vmatmul.msk.bf16.gmra.mxu0 %vm267_vm1, %v5850_v46  ;;  %v810_v54 = vmax.f32 %v749_v51, %v781_v52  ;;  %613 = vst [vmem:[#allocation2 + $0x60] sm:$0xff] %v549_v50 }
  0xed   :  { %1012 = vst.msk [vmem:[#allocation4 + $0xe7] ss:$8 sm:$0x3] %vm6409_vm2, %v6117_v38 }
  0xee   :  { %v826_v55 = vmax.f32 %v730_v53, %v810_v54  ;;  %1018 = vst.msk [vmem:[#allocation4 + $0x137] ss:$8 sm:$0x3] %vm6409_vm2, %v6117_v38 }
  0xef   :  { %1024 = vst.msk [vmem:[#allocation4 + $0x187] ss:$8 sm:$0x3] %vm6409_vm2, %v6117_v38 }
  0xf0   :  { %842 = vst [vmem:[#allocation3 + $0x10] sm:$0xff] %v826_v55 }
  0xf1   :  { %v409_v56 = vpop.f32.mrf.mxu0  ;;  %1030 = vst.msk [vmem:[#allocation4 + $0x1d7] ss:$8 sm:$0x3] %vm6409_vm2, %v6117_v38 }
  0xf2   :  { %v550_v57 = vmax.f32 %v409_v56, 0.0  ;;  %1036 = vst.msk [vmem:[#allocation4 + $0x227] ss:$8 sm:$0x3] %vm6409_vm2, %v6117_v38 }
  0xf3   :  { %1042 = vst.msk [vmem:[#allocation4 + $0x277] ss:$8 sm:$0x3] %vm6409_vm2, %v6117_v38 }
  0xf4   :  { %614 = vst [vmem:[#allocation2 + $0x68] sm:$0xff] %v550_v57 }
  0xf5   :  { %1048 = vst.msk [vmem:[#allocation4 + $0x2c7] ss:$8 sm:$0x3] %vm6409_vm2, %v6117_v38 }
  0xf6   :  { %1054 = vst.msk [vmem:[#allocation4 + $0x317] ss:$8 sm:$0x3] %vm6409_vm2, %v6117_v38 }
  0xf7   :  { %v1094_v59 = vld [vmem:[#allocation3 + $0x10] sm:$0x3f]  ;;  %1060 = vst.msk [vmem:[#allocation4 + $0x367] ss:$8 sm:$0x3] %vm6409_vm2, %v6117_v38 }
  0xf8   :  { %v1155_v60 = vld [vmem:[#allocation3 + $0x11] sm:$0x3f]  ;;  %v1118_v62 = vrot.slane %v1094_v59, 7  ;;  %v5854_v59 = vld [vmem:[%s7426_s0 + $0x90] sm:$0xff] }
  0xf9   :  { %v1215_v61 = vld [vmem:[#allocation3 + $0x12] sm:$0x3f]  ;;  %v1179_v63 = vrot.slane %v1155_v60, 7  ;;  %v412_v0 = vpop.f32.mrf.mxu0  ;;  %1066 = vst.msk [vmem:[#allocation4 + $0x3b7] ss:$8 sm:$0x3] %vm6409_vm2, %v6117_v38 }
  0xfa   :  { %v1239_v1 = vrot.slane %v1215_v61, 7  ;;  %v551_v2 = vmax.f32 %v412_v0, 0.0  ;;  %1143 = vst [vmem:[#allocation4 + $0xf0] sm:$0x7e] %v1118_v62  ;;  %v1275_v3 = vld [vmem:[#allocation3 + $0x10] sm:$0x3f] }
  0xfb   :  { %1203 = vst [vmem:[#allocation4 + $0xf8] sm:$0x7e] %v1179_v63  ;;  %v1335_v4 = vld [vmem:[#allocation3 + $0x11] sm:$0x3f]  ;;  %v1299_v5 = vrot.slane %v1275_v3, 7 }
  0xfc   :  { %4955 = vmatmul.msk.bf16.gmra.mxu0 %vm267_vm1, %v5851_v58  ;;  %615 = vst [vmem:[#allocation2 + $0x70] sm:$0xff] %v551_v2  ;;  %v1359_v6 = vrot.slane %v1335_v4, 7  ;;  %v1395_v7 = vld [vmem:[#allocation3 + $0x12] sm:$0x3f]  ;;  %v671_v29 = vld [vmem:[#allocation2 + $0x60] ss:$2 sm:$0xff] }
  0xfd   :  { %1263 = vst [vmem:[#allocation4 + $0x100] sm:$0x7e] %v1239_v1  ;;  %v1419_v9 = vrot.slane %v1395_v7, 7  ;;  %v1455_v10 = vld [vmem:[#allocation3 + $0x10] sm:$0x3f] }
  0xfe   :  { %v1515_v11 = vld [vmem:[#allocation3 + $0x11] sm:$0x3f]  ;;  %1323 = vst [vmem:[#allocation4 + $0xb8] sm:$0x7e] %v1299_v5  ;;  %v1479_v12 = vrot.slane %v1455_v10, 7 }
  0xff   :  { %v1539_v13 = vrot.slane %v1515_v11, 7  ;;  %1383 = vst [vmem:[#allocation4 + $0xc0] sm:$0x7e] %v1359_v6  ;;  %v1575_v22 = vld [vmem:[#allocation3 + $0x12] sm:$0x3f] }
 0x100   :  { %1443 = vst [vmem:[#allocation4 + $0xc8] sm:$0x7e] %v1419_v9  ;;  %v1599_v27 = vrot.slane %v1575_v22, 7  ;;  %v703_v30 = vld [vmem:[#allocation2 + $0x61] ss:$2 sm:$0xff] }
 0x101   :  { %v414_v14 = vpop.f32.mrf.mxu0  ;;  %v1677_v16 = vld [vmem:[#allocation4 + $0xf0] sm:$0xff]  ;;  %1503 = vst [vmem:[#allocation4 + $0x80] sm:$0x7e] %v1479_v12  ;;  %v731_v35 = vmax.f32 %v671_v29, %v703_v30 }
 0x102   :  { %v552_v19 = vmax.f32 %v414_v14, 0.0  ;;  %v1817_v20 = vpack.c.bf16 %v1677_v16, %v1667_v15  ;;  %v1678_v21 = vld [vmem:[#allocation4 + $0xf8] sm:$0xff]  ;;  %1563 = vst [vmem:[#allocation4 + $0x88] sm:$0x7e] %v1539_v13 }
 0x103   :  { %v1818_v23 = vpack.c.bf16 %v1678_v21, %v1668_v17  ;;  %1623 = vst [vmem:[#allocation4 + $0x90] sm:$0x7e] %v1599_v27 }
 0x104   :  { %616 = vst [vmem:[#allocation2 + $0x78] sm:$0xff] %v552_v19  ;;  %2540 = vmatmul.bf16.gmra.mxu1 %v1817_v20  ;;  %v1679_v25 = vld [vmem:[#allocation4 + $0x100] sm:$0xff] }
 0x105   :  { %2589 = vmatmul.bf16.gmra.mxu2 %v1818_v23  ;;  %v1819_v26 = vpack.c.bf16 %v1679_v25, %v1669_v24  ;;  %1072 = vst.msk [vmem:[#allocation4 + $0x407] ss:$8 sm:$0x3] %vm6409_vm2, %v6117_v38 }
 0x106   :  { %1078 = vst.msk [vmem:[#allocation4 + $0x457] ss:$8 sm:$0x3] %vm6409_vm2, %v6117_v38 }
 0x107   :  { %2638 = vmatmul.bf16.gmra.mxu3 %v1819_v26  ;;  %1084 = vst.msk [vmem:[#allocation4 + $0x4a7] ss:$8 sm:$0x3] %vm6409_vm2, %v6117_v38 }
 0x108   :  { %1090 = vst.msk [vmem:[#allocation4 + $0x4f7] ss:$8 sm:$0x3] %vm6409_vm2, %v6117_v38 }
 0x109   :  { %v417_v31 = vpop.f32.mrf.mxu0 }
 0x10a   :  { %v553_v32 = vmax.f32 %v417_v31, 0.0 }
 0x10b   :  { %v751_v33 = vld [vmem:[#allocation2 + $0x70] ss:$2 sm:$0xff]  ;;  %v783_v34 = vld [vmem:[#allocation2 + $0x71] ss:$2 sm:$0xff] }
 0x10c   :  { %4956 = vmatmul.msk.bf16.gmra.mxu0 %vm267_vm1, %v5852_v28  ;;  %v811_v36 = vmax.f32 %v751_v33, %v783_v34  ;;  %617 = vst [vmem:[#allocation2 + $0x80] sm:$0xff] %v553_v32 }
 0x10e   :  { %v827_v37 = vmax.f32 %v731_v35, %v811_v36 }
 0x110   :  { %843 = vst [vmem:[#allocation3 + $0x18] sm:$0xff] %v827_v37 }
 0x111   :  { %v419_v39 = vpop.f32.mrf.mxu0 }
 0x112   :  { %v554_v40 = vmax.f32 %v419_v39, 0.0 }
 0x114   :  { %618 = vst [vmem:[#allocation2 + $0x88] sm:$0xff] %v554_v40 }
 0x117   :  { %v1095_v44 = vld [vmem:[#allocation3 + $0x18] sm:$0x3f] }
 0x118   :  { %v1156_v45 = vld [vmem:[#allocation3 + $0x19] sm:$0x3f]  ;;  %v1119_v46 = vrot.slane %v1095_v44, 7 }
 0x119   :  { %v422_v42 = vpop.f32.mrf.mxu0  ;;  %v1180_v47 = vrot.slane %v1156_v45, 7  ;;  %v1216_v48 = vld [vmem:[#allocation3 + $0x1a] sm:$0x3f] }
 0x11a   :  { %v555_v43 = vmax.f32 %v422_v42, 0.0  ;;  %v1276_v49 = vld [vmem:[#allocation3 + $0x18] sm:$0x3f]  ;;  %v1240_v50 = vrot.slane %v1216_v48, 7  ;;  %1144 = vst [vmem:[#allocation4 + $0x140] sm:$0x7e] %v1119_v46 }
 0x11b   :  { %v1300_v51 = vrot.slane %v1276_v49, 7  ;;  %v1336_v52 = vld [vmem:[#allocation3 + $0x19] sm:$0x3f]  ;;  %1204 = vst [vmem:[#allocation4 + $0x148] sm:$0x7e] %v1180_v47 }
 0x11c   :  { %4957 = vmatmul.msk.bf16.gmra.mxu0 %vm267_vm1, %v5853_v41  ;;  %619 = vst [vmem:[#allocation2 + $0x90] sm:$0xff] %v555_v43  ;;  %v1396_v53 = vld [vmem:[#allocation3 + $0x1a] sm:$0x3f]  ;;  %v1360_v54 = vrot.slane %v1336_v52, 7  ;;  %v673_v61 = vld [vmem:[#allocation2 + $0x80] ss:$2 sm:$0xff] }
 0x11d   :  { %1264 = vst [vmem:[#allocation4 + $0x150] sm:$0x7e] %v1240_v50  ;;  %v1420_v56 = vrot.slane %v1396_v53, 7  ;;  %v1456_v58 = vld [vmem:[#allocation3 + $0x18] sm:$0x3f] }
 0x11e   :  { %1324 = vst [vmem:[#allocation4 + $0x108] sm:$0x7e] %v1300_v51  ;;  %v1480_v60 = vrot.slane %v1456_v58, 7  ;;  %v705_v62 = vld [vmem:[#allocation2 + $0x81] ss:$2 sm:$0xff]  ;;  %v5856_v51 = vld [vmem:[%s7426_s0 + $0xa0] sm:$0xff] }
 0x11f   :  { %1384 = vst [vmem:[#allocation4 + $0x110] sm:$0x7e] %v1360_v54  ;;  %v732_v3 = vmax.f32 %v673_v61, %v705_v62  ;;  %v1516_v17 = vld [vmem:[#allocation3 + $0x19] sm:$0x3f]  ;;  %v5857_v62 = vld [vmem:[%s7426_s0 + $0xa8] sm:$0xff] }
 0x120   :  { %1444 = vst [vmem:[#allocation4 + $0x118] sm:$0x7e] %v1420_v56  ;;  %v1540_v18 = vrot.slane %v1516_v17, 7  ;;  %v1576_v38 = vld [vmem:[#allocation3 + $0x1a] sm:$0x3f] }
 0x121   :  { %v424_v55 = vpop.f32.mrf.mxu0  ;;  %1504 = vst [vmem:[#allocation4 + $0xd0] sm:$0x7e] %v1480_v60  ;;  %v1687_v30 = vld [vmem:[#allocation4 + $0x140] sm:$0xff]  ;;  %v1600_v37 = vrot.slane %v1576_v38, 7 }
 0x122   :  { %v556_v57 = vmax.f32 %v424_v55, 0.0  ;;  %v1688_v35 = vld [vmem:[#allocation4 + $0x148] sm:$0xff]  ;;  %1564 = vst [vmem:[#allocation4 + $0xd8] sm:$0x7e] %v1540_v18 }
 0x123   :  { %1624 = vst [vmem:[#allocation4 + $0xe0] sm:$0x7e] %v1600_v37  ;;  %v5858_v18 = vld [vmem:[%s7426_s0 + $0xb0] sm:$0xff] }
 0x124   :  { %620 = vst [vmem:[#allocation2 + $0x98] sm:$0xff] %v556_v57  ;;  %v1689_v41 = vld [vmem:[#allocation4 + $0x150] sm:$0xff] }
 0x129   :  { %v427_v63 = vpop.f32.mrf.mxu0 }
 0x12a   :  { %v557_v0 = vmax.f32 %v427_v63, 0.0 }
 0x12b   :  { %v753_v1 = vld [vmem:[#allocation2 + $0x90] ss:$2 sm:$0xff]  ;;  %v785_v2 = vld [vmem:[#allocation2 + $0x91] ss:$2 sm:$0xff] }
 0x12c   :  { %4958 = vmatmul.msk.bf16.gmra.mxu0 %vm267_vm1, %v5854_v59  ;;  %v812_v4 = vmax.f32 %v753_v1, %v785_v2  ;;  %621 = vst [vmem:[#allocation2 + $0xa0] sm:$0xff] %v557_v0 }
 0x12e   :  { %v828_v5 = vmax.f32 %v732_v3, %v812_v4 }
 0x130   :  { %844 = vst [vmem:[#allocation3 + $0x20] sm:$0xff] %v828_v5 }
 0x131   :  { %v429_v6 = vpop.f32.mrf.mxu0 }
 0x132   :  { %v558_v7 = vmax.f32 %v429_v6, 0.0 }
 0x134   :  { %622 = vst [vmem:[#allocation2 + $0xa8] sm:$0xff] %v558_v7 }
 0x137   :  { %v1096_v9 = vld [vmem:[#allocation3 + $0x20] sm:$0x3f] }
 0x138   :  { %v1157_v10 = vld [vmem:[#allocation3 + $0x21] sm:$0x3f]  ;;  %v1120_v12 = vrot.slane %v1096_v9, 7 }
 0x139   :  { %v1217_v11 = vld [vmem:[#allocation3 + $0x22] sm:$0x3f]  ;;  %v1181_v13 = vrot.slane %v1157_v10, 7  ;;  %v432_v14 = vpop.f32.mrf.mxu0  ;;  %v1717_v10 = vld [vmem:[#allocation4 + $0x230] sm:$0xff] }
 0x13a   :  { %v1241_v15 = vrot.slane %v1217_v11, 7  ;;  %v559_v16 = vmax.f32 %v432_v14, 0.0  ;;  %1145 = vst [vmem:[#allocation4 + $0x190] sm:$0x7e] %v1120_v12  ;;  %v1277_v19 = vld [vmem:[#allocation3 + $0x20] sm:$0x3f] }
 0x13b   :  { %1205 = vst [vmem:[#allocation4 + $0x198] sm:$0x7e] %v1181_v13  ;;  %v1337_v20 = vld [vmem:[#allocation3 + $0x21] sm:$0x3f]  ;;  %v1301_v21 = vrot.slane %v1277_v19, 7  ;;  %v1718_v11 = vld [vmem:[#allocation4 + $0x238] sm:$0xff] }
 0x13c   :  { %4959 = vmatmul.msk.bf16.gmra.mxu0 %vm267_vm1, %v5855_v8  ;;  %623 = vst [vmem:[#allocation2 + $0xb0] sm:$0xff] %v559_v16  ;;  %v1361_v22 = vrot.slane %v1337_v20, 7  ;;  %v1397_v23 = vld [vmem:[#allocation3 + $0x22] sm:$0x3f] }
 0x13d   :  { %1265 = vst [vmem:[#allocation4 + $0x1a0] sm:$0x7e] %v1241_v15  ;;  %v1421_v24 = vrot.slane %v1397_v23, 7  ;;  %v1457_v25 = vld [vmem:[#allocation3 + $0x20] sm:$0x3f] }
 0x13e   :  { %v1517_v26 = vld [vmem:[#allocation3 + $0x21] sm:$0x3f]  ;;  %1325 = vst [vmem:[#allocation4 + $0x158] sm:$0x7e] %v1301_v21  ;;  %v1481_v27 = vrot.slane %v1457_v25, 7 }
 0x13f   :  { %1385 = vst [vmem:[#allocation4 + $0x160] sm:$0x7e] %v1361_v22  ;;  %v1577_v28 = vld [vmem:[#allocation3 + $0x22] sm:$0x3f]  ;;  %v1541_v32 = vrot.slane %v1517_v26, 7 }
 0x140   :  { %1445 = vst [vmem:[#allocation4 + $0x168] sm:$0x7e] %v1421_v24  ;;  %v1601_v40 = vrot.slane %v1577_v28, 7  ;;  %v675_v44 = vld [vmem:[#allocation2 + $0xa0] ss:$2 sm:$0xff] }
 0x141   :  { %v434_v29 = vpop.f32.mrf.mxu0  ;;  %v1697_v31 = vld [vmem:[#allocation4 + $0x190] sm:$0xff]  ;;  %1505 = vst [vmem:[#allocation4 + $0x120] sm:$0x7e] %v1481_v27  ;;  %v707_v45 = vld [vmem:[#allocation2 + $0xa1] ss:$2 sm:$0xff]  ;;  %v2536_v63 = vpop.f32.mrf.mxu1 }
 0x142   :  { %v560_v33 = vmax.f32 %v434_v29, 0.0  ;;  %v1827_v34 = vpack.c.bf16 %v1697_v31, %v1687_v30  ;;  %v1698_v36 = vld [vmem:[#allocation4 + $0x198] sm:$0xff]  ;;  %1565 = vst [vmem:[#allocation4 + $0x128] sm:$0x7e] %v1541_v32  ;;  %v733_v48 = vmax.f32 %v675_v44, %v707_v45  ;;  %v1719_v13 = vld [vmem:[#allocation4 + $0x240] sm:$0xff] }
 0x143   :  { %v1828_v39 = vpack.c.bf16 %v1698_v36, %v1688_v35  ;;  %1625 = vst [vmem:[#allocation4 + $0x130] sm:$0x7e] %v1601_v40 }
 0x144   :  { %624 = vst [vmem:[#allocation2 + $0xb8] sm:$0xff] %v560_v33  ;;  %2545 = vmatmul.bf16.gmra.mxu1 %v1827_v34  ;;  %v1699_v42 = vld [vmem:[#allocation4 + $0x1a0] sm:$0xff] }
 0x145   :  { %2594 = vmatmul.bf16.gmra.mxu2 %v1828_v39  ;;  %v1829_v43 = vpack.c.bf16 %v1699_v42, %v1689_v41  ;;  %v5859_v41 = vld [vmem:[%s7426_s0 + $0xb8] sm:$0xff] }
 0x147   :  { %2643 = vmatmul.bf16.gmra.mxu3 %v1829_v43 }
 0x148   :  { %v2585_v2 = vpop.f32.mrf.mxu2 }
 0x149   :  { %v437_v50 = vpop.f32.mrf.mxu0  ;;  %v2586_v7 = vadd.f32 %v2585_v2, %v2536_v63  ;;  %v5860_v2 = vld [vmem:[%s7426_s0 + $0xc0] sm:$0xff] }
 0x14a   :  { %v561_v53 = vmax.f32 %v437_v50, 0.0  ;;  %v2634_v38 = vpop.f32.mrf.mxu3  ;;  %v6543_v50 = vpop.f32.mrf.mxu1 }
 0x14b   :  { %v755_v46 = vld [vmem:[#allocation2 + $0xb0] ss:$2 sm:$0xff]  ;;  %v787_v47 = vld [vmem:[#allocation2 + $0xb1] ss:$2 sm:$0xff]  ;;  %v6536_v28 = vadd.f32 %v2634_v38, %v2586_v7 }
 0x14c   :  { %v813_v49 = vmax.f32 %v755_v46, %v787_v47  ;;  %4960 = vmatmul.msk.bf16.gmra.mxu0 %vm267_vm1, %v5856_v51  ;;  %625 = vst [vmem:[#allocation2 + $0xc0] sm:$0xff] %v561_v53 }
 0x14e   :  { %v829_v52 = vmax.f32 %v733_v48, %v813_v49 }
 0x150   :  { %845 = vst [vmem:[#allocation3 + $0x28] sm:$0xff] %v829_v52  ;;  %v6545_v51 = vpop.f32.mrf.mxu2 }
 0x151   :  { %v439_v54 = vpop.f32.mrf.mxu0 }
 0x152   :  { %v562_v55 = vmax.f32 %v439_v54, 0.0  ;;  %v6547_v52 = vpop.f32.mrf.mxu3 }
 0x154   :  { %626 = vst [vmem:[#allocation2 + $0xc8] sm:$0xff] %v562_v55 }
 0x157   :  { %v1097_v56 = vld [vmem:[#allocation3 + $0x28] sm:$0x3f] }
 0x158   :  { %v1158_v57 = vld [vmem:[#allocation3 + $0x29] sm:$0x3f]  ;;  %v1121_v59 = vrot.slane %v1097_v56, 7 }
 0x159   :  { %v1218_v58 = vld [vmem:[#allocation3 + $0x2a] sm:$0x3f]  ;;  %v1182_v60 = vrot.slane %v1158_v57, 7  ;;  %v442_v3 = vpop.f32.mrf.mxu0 }
 0x15a   :  { %v1242_v61 = vrot.slane %v1218_v58, 7  ;;  %1146 = vst [vmem:[#allocation4 + $0x1e0] sm:$0x7e] %v1121_v59  ;;  %v1278_v0 = vld [vmem:[#allocation3 + $0x28] sm:$0x3f]  ;;  %v563_v8 = vmax.f32 %v442_v3, 0.0 }
 0x15b   :  { %1206 = vst [vmem:[#allocation4 + $0x1e8] sm:$0x7e] %v1182_v60  ;;  %v1338_v1 = vld [vmem:[#allocation3 + $0x29] sm:$0x3f]  ;;  %v1302_v4 = vrot.slane %v1278_v0, 7 }
 0x15c   :  { %1266 = vst [vmem:[#allocation4 + $0x1f0] sm:$0x7e] %v1242_v61  ;;  %v1362_v5 = vrot.slane %v1338_v1, 7  ;;  %v1398_v6 = vld [vmem:[#allocation3 + $0x2a] sm:$0x3f]  ;;  %4961 = vmatmul.msk.bf16.gmra.mxu0 %vm267_vm1, %v5857_v62 }
 0x15d   :  { %v1422_v9 = vrot.slane %v1398_v6, 7  ;;  %1326 = vst [vmem:[#allocation4 + $0x1a8] sm:$0x7e] %v1302_v4  ;;  %v1458_v19 = vld [vmem:[#allocation3 + $0x28] sm:$0x3f] }
 0x15e   :  { %627 = vst [vmem:[#allocation2 + $0xd0] sm:$0xff] %v563_v8  ;;  %v1518_v20 = vld [vmem:[#allocation3 + $0x29] sm:$0x3f]  ;;  %v1482_v22 = vrot.slane %v1458_v19, 7 }
 0x15f   :  { %1386 = vst [vmem:[#allocation4 + $0x1b0] sm:$0x7e] %v1362_v5  ;;  %v1542_v23 = vrot.slane %v1518_v20, 7  ;;  %v1578_v24 = vld [vmem:[#allocation3 + $0x2a] sm:$0x3f] }
 0x160   :  { %1446 = vst [vmem:[#allocation4 + $0x1b8] sm:$0x7e] %v1422_v9  ;;  %v1602_v26 = vrot.slane %v1578_v24, 7  ;;  %v677_v29 = vld [vmem:[#allocation2 + $0xc0] ss:$2 sm:$0xff] }
 0x161   :  { %v1707_v12 = vld [vmem:[#allocation4 + $0x1e0] sm:$0xff]  ;;  %v444_v25 = vpop.f32.mrf.mxu0  ;;  %1506 = vst [vmem:[#allocation4 + $0x170] sm:$0x7e] %v1482_v22 }
 0x162   :  { %v1837_v14 = vpack.c.bf16 %v1717_v10, %v1707_v12  ;;  %v1708_v15 = vld [vmem:[#allocation4 + $0x1e8] sm:$0xff]  ;;  %v564_v27 = vmax.f32 %v444_v25, 0.0  ;;  %1566 = vst [vmem:[#allocation4 + $0x178] sm:$0x7e] %v1542_v23 }
 0x163   :  { %v1838_v16 = vpack.c.bf16 %v1718_v11, %v1708_v15  ;;  %v1709_v17 = vld [vmem:[#allocation4 + $0x1f0] sm:$0xff]  ;;  %1626 = vst [vmem:[#allocation4 + $0x180] sm:$0x7e] %v1602_v26  ;;  %v709_v30 = vld [vmem:[#allocation2 + $0xc1] ss:$2 sm:$0xff] }
 0x164   :  { %2550 = vmatmul.bf16.gmra.mxu1 %v1837_v14  ;;  %v1839_v21 = vpack.c.bf16 %v1719_v13, %v1709_v17  ;;  %628 = vst [vmem:[#allocation2 + $0xd8] sm:$0xff] %v564_v27  ;;  %v734_v35 = vmax.f32 %v677_v29, %v709_v30  ;;  %v5861_v14 = vld [vmem:[%s7426_s0 + $0xc8] sm:$0xff]  ;;  %v5862_v26 = vld [vmem:[%s7426_s0 + $0xd0] sm:$0xff] }
 0x165   :  { %2599 = vmatmul.bf16.gmra.mxu2 %v1838_v16 }
 0x166   :  { %2648 = vmatmul.bf16.gmra.mxu3 %v1839_v21 }
 0x169   :  { %v447_v31 = vpop.f32.mrf.mxu0 }
 0x16a   :  { %v565_v32 = vmax.f32 %v447_v31, 0.0 }
 0x16b   :  { %v757_v33 = vld [vmem:[#allocation2 + $0xd0] ss:$2 sm:$0xff]  ;;  %v789_v34 = vld [vmem:[#allocation2 + $0xd1] ss:$2 sm:$0xff] }
 0x16c   :  { %4962 = vmatmul.msk.bf16.gmra.mxu0 %vm267_vm1, %v5858_v18  ;;  %v814_v36 = vmax.f32 %v757_v33, %v789_v34  ;;  %629 = vst [vmem:[#allocation2 + $0xe0] sm:$0xff] %v565_v32 }
 0x16e   :  { %v830_v37 = vmax.f32 %v734_v35, %v814_v36 }
 0x170   :  { %846 = vst [vmem:[#allocation3 + $0x30] sm:$0xff] %v830_v37  ;;  %v5863_v37 = vld [vmem:[%s7426_s0 + $0xd8] sm:$0xff] }
 0x171   :  { %v449_v39 = vpop.f32.mrf.mxu0 }
 0x172   :  { %v566_v40 = vmax.f32 %v449_v39, 0.0 }
 0x174   :  { %630 = vst [vmem:[#allocation2 + $0xe8] sm:$0xff] %v566_v40 }
 0x177   :  { %v1279_v42 = vld [vmem:[#allocation3 + $0x30] sm:$0x3f] }
 0x178   :  { %v1339_v43 = vld [vmem:[#allocation3 + $0x31] sm:$0x3f]  ;;  %v1303_v46 = vrot.slane %v1279_v42, 7 }
 0x179   :  { %v1399_v44 = vld [vmem:[#allocation3 + $0x32] sm:$0x3f]  ;;  %v452_v45 = vpop.f32.mrf.mxu0  ;;  %v1363_v47 = vrot.slane %v1339_v43, 7 }
 0x17a   :  { %v567_v48 = vmax.f32 %v452_v45, 0.0  ;;  %v1423_v49 = vrot.slane %v1399_v44, 7  ;;  %1327 = vst [vmem:[#allocation4 + $0x1f8] sm:$0x7e] %v1303_v46  ;;  %v1459_v53 = vld [vmem:[#allocation3 + $0x30] sm:$0x3f] }
 0x17b   :  { %1387 = vst [vmem:[#allocation4 + $0x200] sm:$0x7e] %v1363_v47  ;;  %v1519_v54 = vld [vmem:[#allocation3 + $0x31] sm:$0x3f]  ;;  %v1483_v56 = vrot.slane %v1459_v53, 7  ;;  %v1727_v53 = vld [vmem:[#allocation4 + $0x280] sm:$0xff] }
 0x17c   :  { %4963 = vmatmul.msk.bf16.gmra.mxu0 %vm267_vm1, %v5859_v41  ;;  %631 = vst [vmem:[#allocation2 + $0xf0] sm:$0xff] %v567_v48  ;;  %v1579_v55 = vld [vmem:[#allocation3 + $0x32] sm:$0x3f]  ;;  %v1543_v57 = vrot.slane %v1519_v54, 7  ;;  %v679_v3 = vld [vmem:[#allocation2 + $0xe0] ss:$2 sm:$0xff] }
 0x17d   :  { %1447 = vst [vmem:[#allocation4 + $0x208] sm:$0x7e] %v1423_v49  ;;  %v1603_v59 = vrot.slane %v1579_v55, 7  ;;  %v711_v4 = vld [vmem:[#allocation2 + $0xe1] ss:$2 sm:$0xff] }
 0x17e   :  { %1507 = vst [vmem:[#allocation4 + $0x1c0] sm:$0x7e] %v1483_v56  ;;  %v735_v9 = vmax.f32 %v679_v3, %v711_v4  ;;  %v1728_v54 = vld [vmem:[#allocation4 + $0x288] sm:$0xff] }
 0x17f   :  { %1567 = vst [vmem:[#allocation4 + $0x1c8] sm:$0x7e] %v1543_v57 }
 0x180   :  { %1627 = vst [vmem:[#allocation4 + $0x1d0] sm:$0x7e] %v1603_v59 }
 0x181   :  { %v454_v58 = vpop.f32.mrf.mxu0  ;;  %v2541_v61 = vpop.f32.mrf.mxu1 }
 0x182   :  { %v568_v60 = vmax.f32 %v454_v58, 0.0 }
 0x184   :  { %632 = vst [vmem:[#allocation2 + $0xf8] sm:$0xff] %v568_v60  ;;  %v1729_v60 = vld [vmem:[#allocation4 + $0x290] sm:$0xff] }
 0x188   :  { %v2590_v62 = vpop.f32.mrf.mxu2 }
 0x189   :  { %v2591_v63 = vadd.f32 %v2590_v62, %v2541_v61  ;;  %v457_v5 = vpop.f32.mrf.mxu0  ;;  %v6567_v47 = vpop.f32.mrf.mxu1 }
 0x18a   :  { %v2639_v0 = vpop.f32.mrf.mxu3  ;;  %v569_v6 = vmax.f32 %v457_v5, 0.0 }
 0x18b   :  { %v6549_v1 = vadd.f32 %v2639_v0, %v2591_v63  ;;  %v759_v7 = vld [vmem:[#allocation2 + $0xf0] ss:$2 sm:$0xff]  ;;  %v791_v8 = vld [vmem:[#allocation2 + $0xf1] ss:$2 sm:$0xff] }
 0x18c   :  { %4964 = vmatmul.msk.bf16.gmra.mxu0 %vm267_vm1, %v5860_v2  ;;  %v815_v10 = vmax.f32 %v759_v7, %v791_v8  ;;  %633 = vst [vmem:[#allocation2 + $0x100] sm:$0xff] %v569_v6  ;;  %v5864_v6 = vld [vmem:[%s7426_s0 + $0xe0] sm:$0xff] }
 0x18e   :  { %v831_v11 = vmax.f32 %v735_v9, %v815_v10 }
 0x190   :  { %847 = vst [vmem:[#allocation3 + $0x38] sm:$0xff] %v831_v11  ;;  %v6569_v48 = vpop.f32.mrf.mxu2 }
 0x191   :  { %v459_v12 = vpop.f32.mrf.mxu0 }
 0x192   :  { %v570_v13 = vmax.f32 %v459_v12, 0.0  ;;  %v6571_v49 = vpop.f32.mrf.mxu3 }
 0x194   :  { %634 = vst [vmem:[#allocation2 + $0x108] sm:$0xff] %v570_v13 }
 0x197   :  { %v1460_v17 = vld [vmem:[#allocation3 + $0x38] sm:$0x3f] }
 0x198   :  { %v1520_v19 = vld [vmem:[#allocation3 + $0x39] sm:$0x3f]  ;;  %v1484_v21 = vrot.slane %v1460_v17, 7 }
 0x199   :  { %v462_v15 = vpop.f32.mrf.mxu0  ;;  %v1580_v20 = vld [vmem:[#allocation3 + $0x3a] sm:$0x3f]  ;;  %v1544_v22 = vrot.slane %v1520_v19, 7  ;;  %v5865_v19 = vld [vmem:[%s7426_s0 + $0xe8] sm:$0xff] }
 0x19a   :  { %v571_v16 = vmax.f32 %v462_v15, 0.0  ;;  %v1604_v24 = vrot.slane %v1580_v20, 7  ;;  %1508 = vst [vmem:[#allocation4 + $0x210] sm:$0x7e] %v1484_v21 }
 0x19b   :  { %1568 = vst [vmem:[#allocation4 + $0x218] sm:$0x7e] %v1544_v22  ;;  %v681_v27 = vld [vmem:[#allocation2 + $0x100] ss:$2 sm:$0xff]  ;;  %v713_v18 = vld [vmem:[#allocation2 + $0x101] ss:$2 sm:$0xff] }
 0x19c   :  { %4965 = vmatmul.msk.bf16.gmra.mxu0 %vm267_vm1, %v5861_v14  ;;  %635 = vst [vmem:[#allocation2 + $0x110] sm:$0xff] %v571_v16  ;;  %v736_v32 = vmax.f32 %v681_v27, %v713_v18 }
 0x19d   :  { %1628 = vst [vmem:[#allocation4 + $0x220] sm:$0x7e] %v1604_v24 }
 0x1a1   :  { %v464_v23 = vpop.f32.mrf.mxu0 }
 0x1a2   :  { %v572_v25 = vmax.f32 %v464_v23, 0.0 }
 0x1a4   :  { %636 = vst [vmem:[#allocation2 + $0x118] sm:$0xff] %v572_v25 }
 0x1a9   :  { %v467_v38 = vpop.f32.mrf.mxu0 }
 0x1aa   :  { %v573_v29 = vmax.f32 %v467_v38, 0.0 }
 0x1ab   :  { %v761_v30 = vld [vmem:[#allocation2 + $0x110] ss:$2 sm:$0xff]  ;;  %v793_v31 = vld [vmem:[#allocation2 + $0x111] ss:$2 sm:$0xff] }
 0x1ac   :  { %4966 = vmatmul.msk.bf16.gmra.mxu0 %vm267_vm1, %v5862_v26  ;;  %v816_v33 = vmax.f32 %v761_v30, %v793_v31  ;;  %637 = vst [vmem:[#allocation2 + $0x120] sm:$0xff] %v573_v29 }
 0x1ae   :  { %v832_v34 = vmax.f32 %v736_v32, %v816_v33 }
 0x1b0   :  { %848 = vst [vmem:[#allocation3 + $0x40] sm:$0xff] %v832_v34 }
 0x1b1   :  { %v469_v35 = vpop.f32.mrf.mxu0 }
 0x1b2   :  { %v574_v36 = vmax.f32 %v469_v35, 0.0 }
 0x1b4   :  { %638 = vst [vmem:[#allocation2 + $0x128] sm:$0xff] %v574_v36 }
 0x1b7   :  { %v1098_v39 = vld [vmem:[#allocation3 + $0x40] sm:$0x3f] }
 0x1b8   :  { %v1159_v40 = vld [vmem:[#allocation3 + $0x41] sm:$0x3f]  ;;  %v1122_v42 = vrot.slane %v1098_v39, 7 }
 0x1b9   :  { %v1219_v41 = vld [vmem:[#allocation3 + $0x42] sm:$0x3f]  ;;  %v1183_v43 = vrot.slane %v1159_v40, 7  ;;  %v472_v44 = vpop.f32.mrf.mxu0 }
 0x1ba   :  { %v1243_v45 = vrot.slane %v1219_v41, 7  ;;  %v575_v46 = vmax.f32 %v472_v44, 0.0  ;;  %1147 = vst [vmem:[#allocation4 + $0x2d0] sm:$0x7e] %v1122_v42 }
 0x1bb   :  { %1207 = vst [vmem:[#allocation4 + $0x2d8] sm:$0x7e] %v1183_v43  ;;  %v683_v7 = vld [vmem:[#allocation2 + $0x120] ss:$2 sm:$0xff]  ;;  %v715_v8 = vld [vmem:[#allocation2 + $0x121] ss:$2 sm:$0xff] }
 0x1bc   :  { %4967 = vmatmul.msk.bf16.gmra.mxu0 %vm267_vm1, %v5863_v37  ;;  %639 = vst [vmem:[#allocation2 + $0x130] sm:$0xff] %v575_v46  ;;  %v737_v13 = vmax.f32 %v683_v7, %v715_v8 }
 0x1bd   :  { %1267 = vst [vmem:[#allocation4 + $0x2e0] sm:$0x7e] %v1243_v45 }
 0x1c1   :  { %v474_v55 = vpop.f32.mrf.mxu0  ;;  %v1737_v56 = vld [vmem:[#allocation4 + $0x2d0] sm:$0xff]  ;;  %v2546_v62 = vpop.f32.mrf.mxu1 }
 0x1c2   :  { %v576_v57 = vmax.f32 %v474_v55, 0.0  ;;  %v1847_v58 = vpack.c.bf16 %v1737_v56, %v1727_v53  ;;  %v1738_v59 = vld [vmem:[#allocation4 + $0x2d8] sm:$0xff] }
 0x1c3   :  { %v1848_v61 = vpack.c.bf16 %v1738_v59, %v1728_v54 }
 0x1c4   :  { %640 = vst [vmem:[#allocation2 + $0x138] sm:$0xff] %v576_v57  ;;  %2555 = vmatmul.bf16.gmra.mxu1 %v1847_v58  ;;  %v1739_v63 = vld [vmem:[#allocation4 + $0x2e0] sm:$0xff] }
 0x1c5   :  { %2604 = vmatmul.bf16.gmra.mxu2 %v1848_v61  ;;  %v1849_v2 = vpack.c.bf16 %v1739_v63, %v1729_v60 }
 0x1c7   :  { %2653 = vmatmul.bf16.gmra.mxu3 %v1849_v2 }
 0x1c8   :  { %v2595_v0 = vpop.f32.mrf.mxu2 }
 0x1c9   :  { %v2596_v3 = vadd.f32 %v2595_v0, %v2546_v62  ;;  %v477_v9 = vpop.f32.mrf.mxu0  ;;  %v6583_v31 = vpop.f32.mrf.mxu1 }
 0x1ca   :  { %v2644_v4 = vpop.f32.mrf.mxu3  ;;  %v577_v10 = vmax.f32 %v477_v9, 0.0 }
 0x1cb   :  { %v6573_v5 = vadd.f32 %v2644_v4, %v2596_v3  ;;  %v763_v11 = vld [vmem:[#allocation2 + $0x130] ss:$2 sm:$0xff]  ;;  %v795_v12 = vld [vmem:[#allocation2 + $0x131] ss:$2 sm:$0xff] }
 0x1cc   :  { %4968 = vmatmul.msk.bf16.gmra.mxu0 %vm267_vm1, %v5864_v6  ;;  %v817_v14 = vmax.f32 %v763_v11, %v795_v12  ;;  %641 = vst [vmem:[#allocation2 + $0x140] sm:$0xff] %v577_v10  ;;  %v5901_v12 = vld [vmem:[%s7428_s2 + $0xf8] sm:$0xff] }
 0x1cd   :  { %2674 = vmatpush.bf16.msrb.mxu1 %v5901_v12 }
 0x1ce   :  { %v833_v15 = vmax.f32 %v737_v13, %v817_v14 }
 0x1d0   :  { %849 = vst [vmem:[#allocation3 + $0x48] sm:$0xff] %v833_v15  ;;  %v6585_v32 = vpop.f32.mrf.mxu2 }
 0x1d1   :  { %v479_v16 = vpop.f32.mrf.mxu0 }
 0x1d2   :  { %v578_v17 = vmax.f32 %v479_v16, 0.0  ;;  %v6587_v35 = vpop.f32.mrf.mxu3 }
 0x1d4   :  { %642 = vst [vmem:[#allocation2 + $0x148] sm:$0xff] %v578_v17 }
 0x1d7   :  { %v1099_v20 = vld [vmem:[#allocation3 + $0x48] sm:$0x3f] }
 0x1d8   :  { %v1160_v21 = vld [vmem:[#allocation3 + $0x49] sm:$0x3f]  ;;  %v1123_v24 = vrot.slane %v1099_v20, 7 }
 0x1d9   :  { %v1220_v22 = vld [vmem:[#allocation3 + $0x4a] sm:$0x3f]  ;;  %v482_v23 = vpop.f32.mrf.mxu0  ;;  %v1184_v25 = vrot.slane %v1160_v21, 7 }
 0x1da   :  { %v1280_v26 = vld [vmem:[#allocation3 + $0x48] sm:$0x3f]  ;;  %v579_v27 = vmax.f32 %v482_v23, 0.0  ;;  %v1244_v18 = vrot.slane %v1220_v22, 7  ;;  %1148 = vst [vmem:[#allocation4 + $0x320] sm:$0x7e] %v1123_v24 }
 0x1db   :  { %v1340_v38 = vld [vmem:[#allocation3 + $0x49] sm:$0x3f]  ;;  %v1304_v30 = vrot.slane %v1280_v26, 7  ;;  %1208 = vst [vmem:[#allocation4 + $0x328] sm:$0x7e] %v1184_v25 }
 0x1dc   :  { %v1400_v29 = vld [vmem:[#allocation3 + $0x4a] sm:$0x3f]  ;;  %4969 = vmatmul.msk.bf16.gmra.mxu0 %vm267_vm1, %v5865_v19  ;;  %643 = vst [vmem:[#allocation2 + $0x150] sm:$0xff] %v579_v27  ;;  %v1364_v33 = vrot.slane %v1340_v38, 7 }
 0x1dd   :  { %v1424_v34 = vrot.slane %v1400_v29, 7  ;;  %1268 = vst [vmem:[#allocation4 + $0x330] sm:$0x7e] %v1244_v18  ;;  %v685_v44 = vld [vmem:[#allocation2 + $0x140] ss:$2 sm:$0xff] }
 0x1de   :  { %1328 = vst [vmem:[#allocation4 + $0x2e8] sm:$0x7e] %v1304_v30  ;;  %v717_v45 = vld [vmem:[#allocation2 + $0x141] ss:$2 sm:$0xff] }
 0x1df   :  { %1388 = vst [vmem:[#allocation4 + $0x2f0] sm:$0x7e] %v1364_v33  ;;  %v738_v56 = vmax.f32 %v685_v44, %v717_v45  ;;  %v5900_v45 = vld [vmem:[%s7428_s2 + $0xf0] sm:$0xff] }
 0x1e0   :  { %1448 = vst [vmem:[#allocation4 + $0x2f8] sm:$0x7e] %v1424_v34  ;;  %2675 = vmatpush.bf16.msrb.mxu1 %v5900_v45  ;;  %v5909_v45 = vld [vmem:[%s7428_s2 + $0x138] sm:$0xff] }
 0x1e1   :  { %v484_v36 = vpop.f32.mrf.mxu0  ;;  %v2551_v39 = vpop.f32.mrf.mxu1  ;;  %v1747_v21 = vld [vmem:[#allocation4 + $0x320] sm:$0xff]  ;;  %2723 = vmatpush.bf16.msrb.mxu2 %v5909_v45  ;;  %v5912_v45 = vld [vmem:[%s7428_s2 + $0x150] sm:$0xff] }
 0x1e2   :  { %v580_v37 = vmax.f32 %v484_v36, 0.0  ;;  %v1748_v26 = vld [vmem:[#allocation4 + $0x328] sm:$0xff] }
 0x1e4   :  { %644 = vst [vmem:[#allocation2 + $0x158] sm:$0xff] %v580_v37  ;;  %v1749_v38 = vld [vmem:[#allocation4 + $0x330] sm:$0xff] }
 0x1e8   :  { %v2600_v40 = vpop.f32.mrf.mxu2 }
 0x1e9   :  { %v2601_v41 = vadd.f32 %v2600_v40, %v2551_v39  ;;  %v2649_v42 = vpop.f32.mrf.mxu3  ;;  %v487_v46 = vpop.f32.mrf.mxu0 }
 0x1ea   :  { %v581_v53 = vmax.f32 %v487_v46, 0.0 }
 0x1eb   :  { %v6589_v43 = vadd.f32 %v2649_v42, %v2601_v41  ;;  %v765_v54 = vld [vmem:[#allocation2 + $0x150] ss:$2 sm:$0xff]  ;;  %v797_v55 = vld [vmem:[#allocation2 + $0x151] ss:$2 sm:$0xff] }
 0x1ec   :  { %v818_v57 = vmax.f32 %v765_v54, %v797_v55  ;;  %645 = vst [vmem:[#allocation2 + $0x160] sm:$0xff] %v581_v53 }
 0x1ee   :  { %v834_v58 = vmax.f32 %v738_v56, %v818_v57 }
 0x1f0   :  { %850 = vst [vmem:[#allocation3 + $0x50] sm:$0xff] %v834_v58 }
 0x1f1   :  { %v489_v59 = vpop.f32.mrf.mxu0 }
 0x1f2   :  { %v582_v60 = vmax.f32 %v489_v59, 0.0 }
 0x1f4   :  { %646 = vst [vmem:[#allocation2 + $0x168] sm:$0xff] %v582_v60 }
 0x1f7   :  { %v1100_v61 = vld [vmem:[#allocation3 + $0x50] sm:$0x3f] }
 0x1f8   :  { %v1161_v62 = vld [vmem:[#allocation3 + $0x51] sm:$0x3f]  ;;  %v1124_v0 = vrot.slane %v1100_v61, 7 }
 0x1f9   :  { %v1221_v63 = vld [vmem:[#allocation3 + $0x52] sm:$0x3f]  ;;  %v1185_v2 = vrot.slane %v1161_v62, 7  ;;  %v492_v4 = vpop.f32.mrf.mxu0 }
 0x1fa   :  { %v1281_v3 = vld [vmem:[#allocation3 + $0x50] sm:$0x3f]  ;;  %v1245_v6 = vrot.slane %v1221_v63, 7  ;;  %v583_v9 = vmax.f32 %v492_v4, 0.0  ;;  %1149 = vst [vmem:[#allocation4 + $0x370] sm:$0x7e] %v1124_v0 }
 0x1fb   :  { %v1341_v7 = vld [vmem:[#allocation3 + $0x51] sm:$0x3f]  ;;  %v1305_v10 = vrot.slane %v1281_v3, 7  ;;  %1209 = vst [vmem:[#allocation4 + $0x378] sm:$0x7e] %v1185_v2  ;;  %v5899_v3 = vld [vmem:[%s7428_s2 + $0xe8] sm:$0xff] }
 0x1fc   :  { %v1401_v8 = vld [vmem:[#allocation3 + $0x52] sm:$0x3f]  ;;  %v1365_v11 = vrot.slane %v1341_v7, 7  ;;  %647 = vst [vmem:[#allocation2 + $0x170] sm:$0xff] %v583_v9  ;;  %v687_v33 = vld [vmem:[#allocation2 + $0x160] ss:$2 sm:$0xff]  ;;  %2676 = vmatpush.bf16.msrb.mxu1 %v5899_v3 }
 0x1fd   :  { %v1425_v13 = vrot.slane %v1401_v8, 7  ;;  %1269 = vst [vmem:[#allocation4 + $0x380] sm:$0x7e] %v1245_v6  ;;  %v1461_v14 = vld [vmem:[#allocation3 + $0x50] sm:$0x3f] }
 0x1fe   :  { %1329 = vst [vmem:[#allocation4 + $0x338] sm:$0x7e] %v1305_v10  ;;  %v1521_v15 = vld [vmem:[#allocation3 + $0x51] sm:$0x3f]  ;;  %v1485_v16 = vrot.slane %v1461_v14, 7 }
 0x1ff   :  { %1389 = vst [vmem:[#allocation4 + $0x340] sm:$0x7e] %v1365_v11  ;;  %v1545_v17 = vrot.slane %v1521_v15, 7  ;;  %v1581_v19 = vld [vmem:[#allocation3 + $0x52] sm:$0x3f] }
 0x200   :  { %1449 = vst [vmem:[#allocation4 + $0x348] sm:$0x7e] %v1425_v13  ;;  %v1605_v23 = vrot.slane %v1581_v19, 7  ;;  %v719_v34 = vld [vmem:[#allocation2 + $0x161] ss:$2 sm:$0xff] }
 0x201   :  { %v494_v20 = vpop.f32.mrf.mxu0  ;;  %v1757_v22 = vld [vmem:[#allocation4 + $0x370] sm:$0xff]  ;;  %1509 = vst [vmem:[#allocation4 + $0x300] sm:$0x7e] %v1485_v16  ;;  %v739_v41 = vmax.f32 %v687_v33, %v719_v34 }
 0x202   :  { %v584_v24 = vmax.f32 %v494_v20, 0.0  ;;  %v1857_v25 = vpack.c.bf16 %v1757_v22, %v1747_v21  ;;  %v1758_v27 = vld [vmem:[#allocation4 + $0x378] sm:$0xff]  ;;  %1569 = vst [vmem:[#allocation4 + $0x308] sm:$0x7e] %v1545_v17 }
 0x203   :  { %v1858_v18 = vpack.c.bf16 %v1758_v27, %v1748_v26  ;;  %1629 = vst [vmem:[#allocation4 + $0x310] sm:$0x7e] %v1605_v23 }
 0x204   :  { %648 = vst [vmem:[#allocation2 + $0x178] sm:$0xff] %v584_v24  ;;  %2560 = vmatmul.bf16.gmra.mxu1 %v1857_v25  ;;  %v1759_v29 = vld [vmem:[#allocation4 + $0x380] sm:$0xff]  ;;  %v5898_v25 = vld [vmem:[%s7428_s2 + $0xe0] sm:$0xff] }
 0x205   :  { %2609 = vmatmul.bf16.gmra.mxu2 %v1858_v18  ;;  %v1859_v30 = vpack.c.bf16 %v1759_v29, %v1749_v38  ;;  %2677 = vmatpush.bf16.msrb.mxu1 %v5898_v25 }
 0x207   :  { %2658 = vmatmul.bf16.gmra.mxu3 %v1859_v30 }
 0x209   :  { %v497_v36 = vpop.f32.mrf.mxu0 }
 0x20a   :  { %v585_v37 = vmax.f32 %v497_v36, 0.0 }
 0x20b   :  { %v767_v39 = vld [vmem:[#allocation2 + $0x170] ss:$2 sm:$0xff]  ;;  %v799_v40 = vld [vmem:[#allocation2 + $0x171] ss:$2 sm:$0xff] }
 0x20c   :  { %v819_v42 = vmax.f32 %v767_v39, %v799_v40  ;;  %649 = vst [vmem:[#allocation2 + $0x180] sm:$0xff] %v585_v37 }
 0x20e   :  { %v835_v44 = vmax.f32 %v739_v41, %v819_v42 }
 0x210   :  { %851 = vst [vmem:[#allocation3 + $0x58] sm:$0xff] %v835_v44 }
 0x211   :  { %v499_v46 = vpop.f32.mrf.mxu0 }
 0x212   :  { %v586_v53 = vmax.f32 %v499_v46, 0.0  ;;  %v5917_v46 = vld [vmem:[%s7428_s2 + $0x178] sm:$0xff] }
 0x213   :  { %2772 = vmatpush.bf16.msrb.mxu3 %v5917_v46 }
 0x214   :  { %650 = vst [vmem:[#allocation2 + $0x188] sm:$0xff] %v586_v53 }
 0x217   :  { %v1101_v54 = vld [vmem:[#allocation3 + $0x58] sm:$0x3f] }
 0x218   :  { %v1162_v55 = vld [vmem:[#allocation3 + $0x59] sm:$0x3f]  ;;  %v1125_v58 = vrot.slane %v1101_v54, 7  ;;  %v5897_v54 = vld [vmem:[%s7428_s2 + $0xd8] sm:$0xff] }
 0x219   :  { %v1222_v56 = vld [vmem:[#allocation3 + $0x5a] sm:$0x3f]  ;;  %v502_v57 = vpop.f32.mrf.mxu0  ;;  %v1186_v59 = vrot.slane %v1162_v55, 7  ;;  %v5908_v55 = vld [vmem:[%s7428_s2 + $0x130] sm:$0xff]  ;;  %2678 = vmatpush.bf16.msrb.mxu1 %v5897_v54 }
 0x21a   :  { %v1282_v60 = vld [vmem:[#allocation3 + $0x58] sm:$0x3f]  ;;  %v587_v61 = vmax.f32 %v502_v57, 0.0  ;;  %v1246_v62 = vrot.slane %v1222_v56, 7  ;;  %1150 = vst [vmem:[#allocation4 + $0x3c0] sm:$0x7e] %v1125_v58  ;;  %2724 = vmatpush.bf16.msrb.mxu2 %v5908_v55 }
 0x21b   :  { %v1342_v63 = vld [vmem:[#allocation3 + $0x59] sm:$0x3f]  ;;  %v1306_v2 = vrot.slane %v1282_v60, 7  ;;  %1210 = vst [vmem:[#allocation4 + $0x3c8] sm:$0x7e] %v1186_v59  ;;  %v5916_v56 = vld [vmem:[%s7428_s2 + $0x170] sm:$0xff]  ;;  %v6618_v59 = vpop.f32.mrf.mxu1  ;;  %v6620_v60 = vpop.f32.mrf.mxu2 }
 0x21c   :  { %v1402_v0 = vld [vmem:[#allocation3 + $0x5a] sm:$0x3f]  ;;  %651 = vst [vmem:[#allocation2 + $0x190] sm:$0xff] %v587_v61  ;;  %v1366_v4 = vrot.slane %v1342_v63, 7  ;;  %v689_v15 = vld [vmem:[#allocation2 + $0x180] ss:$2 sm:$0xff]  ;;  %2773 = vmatpush.bf16.msrb.mxu3 %v5916_v56 }
 0x21d   :  { %v1426_v6 = vrot.slane %v1402_v0, 7  ;;  %1270 = vst [vmem:[#allocation4 + $0x3d0] sm:$0x7e] %v1246_v62  ;;  %v1462_v7 = vld [vmem:[#allocation3 + $0x58] sm:$0x3f] }
 0x21e   :  { %1330 = vst [vmem:[#allocation4 + $0x388] sm:$0x7e] %v1306_v2  ;;  %v1522_v8 = vld [vmem:[#allocation3 + $0x59] sm:$0x3f]  ;;  %v1486_v9 = vrot.slane %v1462_v7, 7  ;;  %v6622_v7 = vpop.f32.mrf.mxu3 }
 0x21f   :  { %1390 = vst [vmem:[#allocation4 + $0x390] sm:$0x7e] %v1366_v4  ;;  %v1546_v10 = vrot.slane %v1522_v8, 7  ;;  %v1582_v11 = vld [vmem:[#allocation3 + $0x5a] sm:$0x3f] }
 0x220   :  { %1450 = vst [vmem:[#allocation4 + $0x398] sm:$0x7e] %v1426_v6  ;;  %v1606_v13 = vrot.slane %v1582_v11, 7  ;;  %v721_v16 = vld [vmem:[#allocation2 + $0x181] ss:$2 sm:$0xff] }
 0x221   :  { %v504_v12 = vpop.f32.mrf.mxu0  ;;  %1510 = vst [vmem:[#allocation4 + $0x350] sm:$0x7e] %v1486_v9  ;;  %v740_v22 = vmax.f32 %v689_v15, %v721_v16  ;;  %v1767_v2 = vld [vmem:[#allocation4 + $0x3c0] sm:$0xff] }
 0x222   :  { %v588_v14 = vmax.f32 %v504_v12, 0.0  ;;  %1570 = vst [vmem:[#allocation4 + $0x358] sm:$0x7e] %v1546_v10  ;;  %v1768_v4 = vld [vmem:[#allocation4 + $0x3c8] sm:$0xff]  ;;  %v5907_v11 = vld [vmem:[%s7428_s2 + $0x128] sm:$0xff] }
 0x223   :  { %1630 = vst [vmem:[#allocation4 + $0x360] sm:$0x7e] %v1606_v13  ;;  %v5915_v12 = vld [vmem:[%s7428_s2 + $0x168] sm:$0xff]  ;;  %2725 = vmatpush.bf16.msrb.mxu2 %v5907_v11  ;;  %v1798_v11 = vld [vmem:[#allocation4 + $0x4b8] sm:$0xff] }
 0x224   :  { %652 = vst [vmem:[#allocation2 + $0x198] sm:$0xff] %v588_v14  ;;  %v1769_v14 = vld [vmem:[#allocation4 + $0x3d0] sm:$0xff]  ;;  %2774 = vmatpush.bf16.msrb.mxu3 %v5915_v12  ;;  %v5902_v12 = vld [vmem:[%s7428_s2 + $0x100] sm:$0xff] }
 0x229   :  { %v507_v17 = vpop.f32.mrf.mxu0 }
 0x22a   :  { %v589_v19 = vmax.f32 %v507_v17, 0.0 }
 0x22b   :  { %v769_v20 = vld [vmem:[#allocation2 + $0x190] ss:$2 sm:$0xff]  ;;  %v801_v21 = vld [vmem:[#allocation2 + $0x191] ss:$2 sm:$0xff] }
 0x22c   :  { %v820_v23 = vmax.f32 %v769_v20, %v801_v21  ;;  %653 = vst [vmem:[#allocation2 + $0x1a0] sm:$0xff] %v589_v19 }
 0x22e   :  { %v836_v24 = vmax.f32 %v740_v22, %v820_v23 }
 0x230   :  { %852 = vst [vmem:[#allocation3 + $0x60] sm:$0xff] %v836_v24 }
 0x231   :  { %v509_v26 = vpop.f32.mrf.mxu0 }
 0x232   :  { %v590_v27 = vmax.f32 %v509_v26, 0.0 }
 0x234   :  { %654 = vst [vmem:[#allocation2 + $0x1a8] sm:$0xff] %v590_v27 }
 0x237   :  { %v1102_v18 = vld [vmem:[#allocation3 + $0x60] sm:$0x3f] }
 0x238   :  { %v1163_v38 = vld [vmem:[#allocation3 + $0x61] sm:$0x3f]  ;;  %v1126_v30 = vrot.slane %v1102_v18, 7 }
 0x239   :  { %v1223_v29 = vld [vmem:[#allocation3 + $0x62] sm:$0x3f]  ;;  %v1187_v33 = vrot.slane %v1163_v38, 7  ;;  %v512_v36 = vpop.f32.mrf.mxu0 }
 0x23a   :  { %v1283_v34 = vld [vmem:[#allocation3 + $0x60] sm:$0x3f]  ;;  %v1247_v37 = vrot.slane %v1223_v29, 7  ;;  %v591_v41 = vmax.f32 %v512_v36, 0.0  ;;  %1151 = vst [vmem:[#allocation4 + $0x410] sm:$0x7e] %v1126_v30 }
 0x23b   :  { %v1343_v39 = vld [vmem:[#allocation3 + $0x61] sm:$0x3f]  ;;  %v1307_v42 = vrot.slane %v1283_v34, 7  ;;  %1211 = vst [vmem:[#allocation4 + $0x418] sm:$0x7e] %v1187_v33  ;;  %v5906_v33 = vld [vmem:[%s7428_s2 + $0x120] sm:$0xff] }
 0x23c   :  { %v1403_v40 = vld [vmem:[#allocation3 + $0x62] sm:$0x3f]  ;;  %v1367_v44 = vrot.slane %v1343_v39, 7  ;;  %655 = vst [vmem:[#allocation2 + $0x1b0] sm:$0xff] %v591_v41  ;;  %v5914_v34 = vld [vmem:[%s7428_s2 + $0x160] sm:$0xff]  ;;  %2726 = vmatpush.bf16.msrb.mxu2 %v5906_v33  ;;  %v5905_v39 = vld [vmem:[%s7428_s2 + $0x118] sm:$0xff] }
 0x23d   :  { %v1427_v53 = vrot.slane %v1403_v40, 7  ;;  %1271 = vst [vmem:[#allocation4 + $0x420] sm:$0x7e] %v1247_v37  ;;  %v1463_v57 = vld [vmem:[#allocation3 + $0x60] sm:$0x3f]  ;;  %2775 = vmatpush.bf16.msrb.mxu3 %v5914_v34  ;;  %v5913_v40 = vld [vmem:[%s7428_s2 + $0x158] sm:$0xff] }
 0x23e   :  { %1331 = vst [vmem:[#allocation4 + $0x3d8] sm:$0x7e] %v1307_v42  ;;  %v1523_v58 = vld [vmem:[#allocation3 + $0x61] sm:$0x3f]  ;;  %v1487_v61 = vrot.slane %v1463_v57, 7  ;;  %v5896_v41 = vld [vmem:[%s7428_s2 + $0xd0] sm:$0xff] }
 0x23f   :  { %1391 = vst [vmem:[#allocation4 + $0x3e0] sm:$0x7e] %v1367_v44  ;;  %v1547_v62 = vrot.slane %v1523_v58, 7  ;;  %v1583_v63 = vld [vmem:[#allocation3 + $0x62] sm:$0x3f]  ;;  %2679 = vmatpush.bf16.msrb.mxu1 %v5896_v41  ;;  %v5904_v44 = vld [vmem:[%s7428_s2 + $0x110] sm:$0xff] }
 0x240   :  { %1451 = vst [vmem:[#allocation4 + $0x3e8] sm:$0x7e] %v1427_v53  ;;  %v1607_v6 = vrot.slane %v1583_v63, 7  ;;  %v691_v20 = vld [vmem:[#allocation2 + $0x1a0] ss:$2 sm:$0xff]  ;;  %2727 = vmatpush.bf16.msrb.mxu2 %v5905_v39  ;;  %v5894_v57 = vld [vmem:[%s7428_s2 + $0xc0] sm:$0xff] }
 0x241   :  { %v514_v0 = vpop.f32.mrf.mxu0  ;;  %v1777_v3 = vld [vmem:[#allocation4 + $0x410] sm:$0xff]  ;;  %1511 = vst [vmem:[#allocation4 + $0x3a0] sm:$0x7e] %v1487_v61  ;;  %v2556_v17 = vpop.f32.mrf.mxu1  ;;  %v723_v21 = vld [vmem:[#allocation2 + $0x1a1] ss:$2 sm:$0xff]  ;;  %2776 = vmatpush.bf16.msrb.mxu3 %v5913_v40  ;;  %v1650_v41 = vld [vmem:[#allocation4 + $0x18] sm:$0xff] }
 0x242   :  { %v592_v8 = vmax.f32 %v514_v0, 0.0  ;;  %v1867_v9 = vpack.c.bf16 %v1777_v3, %v1767_v2  ;;  %v1778_v10 = vld [vmem:[#allocation4 + $0x418] sm:$0xff]  ;;  %1571 = vst [vmem:[#allocation4 + $0x3a8] sm:$0x7e] %v1547_v62  ;;  %v741_v38 = vmax.f32 %v691_v20, %v723_v21  ;;  %v5895_v42 = vld [vmem:[%s7428_s2 + $0xc8] sm:$0xff] }
 0x243   :  { %v1868_v13 = vpack.c.bf16 %v1778_v10, %v1768_v4  ;;  %1631 = vst [vmem:[#allocation4 + $0x3b0] sm:$0x7e] %v1607_v6  ;;  %2680 = vmatpush.bf16.msrb.mxu1 %v5895_v42  ;;  %v5903_v3 = vld [vmem:[%s7428_s2 + $0x108] sm:$0xff]  ;;  %v1797_v10 = vld [vmem:[#allocation4 + $0x4b0] sm:$0xff]  ;;  %v1660_v42 = vld [vmem:[#allocation4 + $0x68] sm:$0xff] }
 0x244   :  { %656 = vst [vmem:[#allocation2 + $0x1b8] sm:$0xff] %v592_v8  ;;  %2565 = vmatmul.bf16.gmra.mxu1 %v1867_v9  ;;  %v1779_v15 = vld [vmem:[#allocation4 + $0x420] sm:$0xff]  ;;  %2728 = vmatpush.bf16.msrb.mxu2 %v5904_v44 }
 0x245   :  { %2614 = vmatmul.bf16.gmra.mxu2 %v1868_v13  ;;  %v1869_v16 = vpack.c.bf16 %v1779_v15, %v1769_v14  ;;  %2777 = vmatpush.bf16.msrb.mxu3 %v5912_v45  ;;  %v5911_v4 = vld [vmem:[%s7428_s2 + $0x148] sm:$0xff]  ;;  %v5910_v13 = vld [vmem:[%s7428_s2 + $0x140] sm:$0xff]  ;;  %v1661_v45 = vld [vmem:[#allocation4 + $0x70] sm:$0xff] }
 0x246   :  { %v1651_v44 = vld [vmem:[#allocation4 + $0x20] sm:$0xff] }
 0x247   :  { %2663 = vmatmul.bf16.gmra.mxu3 %v1869_v16  ;;  %2681 = vmatpush.bf16.msrb.mxu1 %v5894_v57 }
 0x248   :  { %v2605_v19 = vpop.f32.mrf.mxu2  ;;  %2729 = vmatpush.bf16.msrb.mxu2 %v5903_v3 }
 0x249   :  { %v2606_v22 = vadd.f32 %v2605_v19, %v2556_v17  ;;  %v517_v23 = vpop.f32.mrf.mxu0  ;;  %2778 = vmatpush.bf16.msrb.mxu3 %v5911_v4  ;;  %v1681_v4 = vld [vmem:[#allocation4 + $0x110] sm:$0xff] }
 0x24a   :  { %v2654_v24 = vpop.f32.mrf.mxu3  ;;  %v593_v25 = vmax.f32 %v517_v23, 0.0 }
 0x24b   :  { %v771_v26 = vld [vmem:[#allocation2 + $0x1b0] ss:$2 sm:$0xff]  ;;  %v803_v27 = vld [vmem:[#allocation2 + $0x1b1] ss:$2 sm:$0xff]  ;;  %v6630_v18 = vadd.f32 %v2654_v24, %v2606_v22 }
 0x24c   :  { %v821_v29 = vmax.f32 %v771_v26, %v803_v27  ;;  %657 = vst [vmem:[#allocation2 + $0x1c0] sm:$0xff] %v593_v25  ;;  %v1799_v26 = vld [vmem:[#allocation4 + $0x4c0] sm:$0xff]  ;;  %2730 = vmatpush.bf16.msrb.mxu2 %v5902_v12 }
 0x24d   :  { %2779 = vmatpush.bf16.msrb.mxu3 %v5910_v13 }
 0x24e   :  { %v837_v30 = vmax.f32 %v741_v38, %v821_v29 }
 0x250   :  { %853 = vst [vmem:[#allocation3 + $0x68] sm:$0xff] %v837_v30  ;;  %v6680_v3 = vpop.f32.mrf.mxu2 }
 0x251   :  { %v519_v36 = vpop.f32.mrf.mxu0 }
 0x252   :  { %v594_v37 = vmax.f32 %v519_v36, 0.0  ;;  %v6685_v12 = vpop.f32.mrf.mxu3 }
 0x254   :  { %658 = vst [vmem:[#allocation2 + $0x1c8] sm:$0xff] %v594_v37 }
 0x257   :  { %v1103_v46 = vld [vmem:[#allocation3 + $0x68] sm:$0x3f] }
 0x258   :  { %v1164_v53 = vld [vmem:[#allocation3 + $0x69] sm:$0x3f]  ;;  %v1127_v55 = vrot.slane %v1103_v46, 7  ;;  %v1810_v46 = vpack.c.bf16 %v1660_v42, %v1650_v41  ;;  %v1711_v42 = vld [vmem:[#allocation4 + $0x200] sm:$0xff] }
 0x259   :  { %v1224_v54 = vld [vmem:[#allocation3 + $0x6a] sm:$0x3f]  ;;  %v1188_v56 = vrot.slane %v1164_v53, 7  ;;  %v522_v61 = vpop.f32.mrf.mxu0 }
 0x25a   :  { %v1284_v58 = vld [vmem:[#allocation3 + $0x68] sm:$0x3f]  ;;  %v1248_v62 = vrot.slane %v1224_v54, 7  ;;  %v595_v2 = vmax.f32 %v522_v61, 0.0  ;;  %1152 = vst [vmem:[#allocation4 + $0x460] sm:$0x7e] %v1127_v55  ;;  %v1811_v55 = vpack.c.bf16 %v1661_v45, %v1651_v44 }
 0x25b   :  { %v1344_v63 = vld [vmem:[#allocation3 + $0x69] sm:$0x3f]  ;;  %v1308_v6 = vrot.slane %v1284_v58, 7  ;;  %1212 = vst [vmem:[#allocation4 + $0x468] sm:$0x7e] %v1188_v56  ;;  %v1662_v54 = vld [vmem:[#allocation4 + $0x78] sm:$0xff] }
 0x25c   :  { %v1404_v0 = vld [vmem:[#allocation3 + $0x6a] sm:$0x3f]  ;;  %v1368_v8 = vrot.slane %v1344_v63, 7  ;;  %659 = vst [vmem:[#allocation2 + $0x1d0] sm:$0xff] %v595_v2  ;;  %v5925_v58 = vld [vmem:[%s7428_s2 + $0x1b8] sm:$0xff]  ;;  %v6678_v2 = vpop.f32.mrf.mxu1 }
 0x25d   :  { %v1428_v9 = vrot.slane %v1404_v0, 7  ;;  %1272 = vst [vmem:[#allocation4 + $0x470] sm:$0x7e] %v1248_v62  ;;  %v1464_v14 = vld [vmem:[#allocation3 + $0x68] sm:$0x3f]  ;;  %2821 = vmatpush.bf16.msra.mxu1 %v5925_v58  ;;  %v1721_v44 = vld [vmem:[#allocation4 + $0x250] sm:$0xff] }
 0x25e   :  { %1332 = vst [vmem:[#allocation4 + $0x428] sm:$0x7e] %v1308_v6  ;;  %v1524_v15 = vld [vmem:[#allocation3 + $0x69] sm:$0x3f]  ;;  %v1488_v16 = vrot.slane %v1464_v14, 7  ;;  %v1671_v14 = vld [vmem:[#allocation4 + $0xc0] sm:$0xff] }
 0x25f   :  { %1392 = vst [vmem:[#allocation4 + $0x430] sm:$0x7e] %v1368_v8  ;;  %v1548_v17 = vrot.slane %v1524_v15, 7  ;;  %v1584_v19 = vld [vmem:[#allocation3 + $0x6a] sm:$0x3f]  ;;  %v1682_v15 = vld [vmem:[#allocation4 + $0x118] sm:$0xff] }
 0x260   :  { %1452 = vst [vmem:[#allocation4 + $0x438] sm:$0x7e] %v1428_v9  ;;  %v1608_v22 = vrot.slane %v1584_v19, 7  ;;  %v693_v30 = vld [vmem:[#allocation2 + $0x1c0] ss:$2 sm:$0xff] }
 0x261   :  { %v524_v20 = vpop.f32.mrf.mxu0  ;;  %v1787_v21 = vld [vmem:[#allocation4 + $0x460] sm:$0xff]  ;;  %1512 = vst [vmem:[#allocation4 + $0x3f0] sm:$0x7e] %v1488_v16  ;;  %v1652_v53 = vld [vmem:[#allocation4 + $0x28] sm:$0xff]  ;;  %v1821_v16 = vpack.c.bf16 %v1681_v4, %v1671_v14  ;;  %v1742_v4 = vld [vmem:[#allocation4 + $0x2f8] sm:$0xff] }
 0x262   :  { %v596_v23 = vmax.f32 %v524_v20, 0.0  ;;  %v1877_v24 = vpack.c.bf16 %v1797_v10, %v1787_v21  ;;  %v1788_v25 = vld [vmem:[#allocation4 + $0x468] sm:$0xff]  ;;  %1572 = vst [vmem:[#allocation4 + $0x3f8] sm:$0x7e] %v1548_v17  ;;  %v1812_v57 = vpack.c.bf16 %v1662_v54, %v1652_v53  ;;  %v1670_v10 = vld [vmem:[#allocation4 + $0xb8] sm:$0xff]  ;;  %v1841_v54 = vpack.c.bf16 %v1721_v44, %v1711_v42 }
 0x263   :  { %v1878_v27 = vpack.c.bf16 %v1798_v11, %v1788_v25  ;;  %1632 = vst [vmem:[#allocation4 + $0x400] sm:$0x7e] %v1608_v22  ;;  %v725_v33 = vld [vmem:[#allocation2 + $0x1c1] ss:$2 sm:$0xff]  ;;  %v5867_v11 = vld [vmem:[%s7426_s0 + $0xf8] sm:$0xff]  ;;  %v1722_v53 = vld [vmem:[#allocation4 + $0x258] sm:$0xff] }
 0x264   :  { %660 = vst [vmem:[#allocation2 + $0x1d8] sm:$0xff] %v596_v23  ;;  %2570 = vmatmul.bf16.gmra.mxu1 %v1877_v24  ;;  %v1789_v38 = vld [vmem:[#allocation4 + $0x470] sm:$0xff]  ;;  %v742_v34 = vmax.f32 %v693_v30, %v725_v33  ;;  %v5866_v56 = vld [vmem:[%s7426_s0 + $0xf0] sm:$0xff]  ;;  %v1691_v30 = vld [vmem:[#allocation4 + $0x160] sm:$0xff] }
 0x265   :  { %2619 = vmatmul.bf16.gmra.mxu2 %v1878_v27  ;;  %v1879_v29 = vpack.c.bf16 %v1799_v26, %v1789_v38  ;;  %4970 = vmatmul.msk.bf16.gmra.mxu0 %vm267_vm1, %v5866_v56  ;;  %v1680_v61 = vld [vmem:[#allocation4 + $0x108] sm:$0xff]  ;;  %v1701_v27 = vld [vmem:[#allocation4 + $0x1b0] sm:$0xff]  ;;  %v1690_v38 = vld [vmem:[#allocation4 + $0x158] sm:$0xff] }
 0x266   :  { %v1820_v13 = vpack.c.bf16 %v1680_v61, %v1670_v10  ;;  %v1672_v17 = vld [vmem:[#allocation4 + $0xc8] sm:$0xff]  ;;  %v1702_v33 = vld [vmem:[#allocation4 + $0x1b8] sm:$0xff]  ;;  %v1731_v61 = vld [vmem:[#allocation4 + $0x2a0] sm:$0xff] }
 0x267   :  { %2668 = vmatmul.bf16.gmra.mxu3 %v1879_v29  ;;  %v1822_v19 = vpack.c.bf16 %v1682_v15, %v1672_v17  ;;  %v5924_v20 = vld [vmem:[%s7428_s2 + $0x1b0] sm:$0xff]  ;;  %v5922_v56 = vld [vmem:[%s7428_s2 + $0x1a0] sm:$0xff]  ;;  %v5933_v10 = vld [vmem:[%s7428_s2 + $0x1f8] sm:$0xff] }
 0x268   :  { %2822 = vmatpush.bf16.msra.mxu1 %v5924_v20  ;;  %v1700_v26 = vld [vmem:[#allocation4 + $0x1a8] sm:$0xff]  ;;  %2870 = vmatpush.bf16.msra.mxu2 %v5933_v10  ;;  %v5939_v17 = vld [vmem:[%s7428_s2 + $0x228] sm:$0xff]  ;;  %v1761_v20 = vld [vmem:[#allocation4 + $0x390] sm:$0xff] }
 0x269   :  { %v1830_v29 = vpack.c.bf16 %v1700_v26, %v1690_v38  ;;  %v1720_v41 = vld [vmem:[#allocation4 + $0x248] sm:$0xff]  ;;  %v5938_v38 = vld [vmem:[%s7428_s2 + $0x220] sm:$0xff] }
 0x26a   :  { %v1740_v58 = vld [vmem:[#allocation4 + $0x2e8] sm:$0xff] }
 0x26b   :  { %v773_v36 = vld [vmem:[#allocation2 + $0x1d0] ss:$2 sm:$0xff]  ;;  %v805_v37 = vld [vmem:[#allocation2 + $0x1d1] ss:$2 sm:$0xff]  ;;  %v5932_v14 = vld [vmem:[%s7428_s2 + $0x1f0] sm:$0xff] }
 0x26c   :  { %v822_v39 = vmax.f32 %v773_v36, %v805_v37  ;;  %v1692_v36 = vld [vmem:[#allocation4 + $0x168] sm:$0xff]  ;;  %2871 = vmatpush.bf16.msra.mxu2 %v5932_v14 }
 0x26d   :  { %v1832_v37 = vpack.c.bf16 %v1702_v33, %v1692_v36  ;;  %v5940_v15 = vld [vmem:[%s7428_s2 + $0x230] sm:$0xff] }
 0x26e   :  { %v838_v40 = vmax.f32 %v742_v34, %v822_v39  ;;  %v1831_v34 = vpack.c.bf16 %v1701_v27, %v1691_v30  ;;  %v5923_v39 = vld [vmem:[%s7428_s2 + $0x1a8] sm:$0xff]  ;;  %v1750_v27 = vld [vmem:[#allocation4 + $0x338] sm:$0xff]  ;;  %v1752_v42 = vld [vmem:[#allocation4 + $0x348] sm:$0xff] }
 0x26f   :  { %2823 = vmatpush.bf16.msra.mxu1 %v5923_v39  ;;  %v1762_v39 = vld [vmem:[#allocation4 + $0x398] sm:$0xff] }
 0x270   :  { %854 = vst [vmem:[#allocation3 + $0x70] sm:$0xff] %v838_v40  ;;  %v1710_v40 = vld [vmem:[#allocation4 + $0x1f8] sm:$0xff]  ;;  %v1862_v44 = vpack.c.bf16 %v1762_v39, %v1752_v42 }
 0x271   :  { %v1840_v45 = vpack.c.bf16 %v1720_v41, %v1710_v40  ;;  %v5930_v40 = vld [vmem:[%s7428_s2 + $0x1e0] sm:$0xff] }
 0x272   :  { %v1802_v39 = vld [vmem:[#allocation4 + $0x4d8] sm:$0xff] }
 0x273   :  { %2824 = vmatpush.bf16.msra.mxu1 %v5922_v56 }
 0x274   :  { %2682 = vmatmul.bf16.vlgmr.msrb.gmra.mxu1 %v1810_v46  ;;  %v1712_v46 = vld [vmem:[#allocation4 + $0x208] sm:$0xff] }
 0x275   :  { %2731 = vmatmul.bf16.vlgmr.msrb.gmra.mxu2 %v1811_v55  ;;  %4971 = vmatmul.msk.bf16.gmra.mxu0 %vm267_vm1, %v5867_v11  ;;  %v1842_v55 = vpack.c.bf16 %v1722_v53, %v1712_v46  ;;  %v5941_v11 = vld [vmem:[%s7428_s2 + $0x238] sm:$0xff] }
 0x276   :  { %2919 = vmatpush.bf16.msra.mxu3 %v5941_v11  ;;  %v5937_v46 = vld [vmem:[%s7428_s2 + $0x218] sm:$0xff]  ;;  %v1771_v11 = vld [vmem:[#allocation4 + $0x3e0] sm:$0xff] }
 0x277   :  { %2780 = vmatmul.bf16.vlgmr.msrb.gmra.mxu3 %v1812_v57  ;;  %v1465_v62 = vld [vmem:[#allocation3 + $0x70] sm:$0x3f]  ;;  %v1730_v57 = vld [vmem:[#allocation4 + $0x298] sm:$0xff] }
 0x278   :  { %v1525_v63 = vld [vmem:[#allocation3 + $0x71] sm:$0x3f]  ;;  %v1489_v6 = vrot.slane %v1465_v62, 7 }
 0x279   :  { %v1585_v0 = vld [vmem:[#allocation3 + $0x72] sm:$0x3f]  ;;  %v1549_v8 = vrot.slane %v1525_v63, 7  ;;  %v1850_v63 = vpack.c.bf16 %v1740_v58, %v1730_v57  ;;  %v5920_v58 = vld [vmem:[%s7428_s2 + $0x190] sm:$0xff] }
 0x27a   :  { %v1609_v9 = vrot.slane %v1585_v0, 7  ;;  %1513 = vst [vmem:[#allocation4 + $0x440] sm:$0x7e] %v1489_v6  ;;  %v1741_v62 = vld [vmem:[#allocation4 + $0x2f0] sm:$0xff]  ;;  %v1732_v0 = vld [vmem:[#allocation4 + $0x2a8] sm:$0xff]  ;;  %2920 = vmatpush.bf16.msra.mxu3 %v5940_v15  ;;  %v5918_v15 = vld [vmem:[%s7428_s2 + $0x180] sm:$0xff] }
 0x27b   :  { %1573 = vst [vmem:[#allocation4 + $0x448] sm:$0x7e] %v1549_v8  ;;  %v1851_v6 = vpack.c.bf16 %v1741_v62, %v1731_v61  ;;  %v6021_v8 = vld [vmem:[%s7429_s3 + $0x238] sm:$0xff]  ;;  %v5928_v61 = vld [vmem:[%s7428_s2 + $0x1d0] sm:$0xff] }
 0x27c   :  { %1633 = vst [vmem:[#allocation4 + $0x450] sm:$0x7e] %v1609_v9  ;;  %v1852_v9 = vpack.c.bf16 %v1742_v4, %v1732_v0  ;;  %4554 = vmatpush.bf16.msrb.mxu0 %v6021_v8  ;;  %v1405_v26 = vld [vmem:[#allocation3 + $0x72] sm:$0x3f]  ;;  %v5936_v62 = vld [vmem:[%s7428_s2 + $0x210] sm:$0xff]  ;;  %v5927_v0 = vld [vmem:[%s7428_s2 + $0x1c8] sm:$0xff] }
 0x27d   :  { %v1429_v33 = vrot.slane %v1405_v26, 7  ;;  %v5935_v4 = vld [vmem:[%s7428_s2 + $0x208] sm:$0xff]  ;;  %v1781_v8 = vld [vmem:[#allocation4 + $0x430] sm:$0xff]  ;;  %v1800_v26 = vld [vmem:[#allocation4 + $0x4c8] sm:$0xff] }
 0x27e   :  { %2921 = vmatpush.bf16.msra.mxu3 %v5939_v17  ;;  %v1871_v14 = vpack.c.bf16 %v1781_v8, %v1771_v11  ;;  %v5934_v17 = vld [vmem:[%s7428_s2 + $0x200] sm:$0xff]  ;;  %v1655_v8 = vld [vmem:[#allocation4 + $0x40] sm:$0xff] }
 0x27f   :  { %1453 = vst [vmem:[#allocation4 + $0x488] sm:$0x7e] %v1429_v33 }
 0x281   :  { %v2561_v21 = vpop.f32.mrf.mxu1 }
 0x282   :  { %2922 = vmatpush.bf16.msra.mxu3 %v5938_v38 }
 0x284   :  { %2687 = vmatmul.bf16.gmra.mxu1 %v1820_v13  ;;  %v5921_v13 = vld [vmem:[%s7428_s2 + $0x198] sm:$0xff] }
 0x285   :  { %2736 = vmatmul.bf16.gmra.mxu2 %v1821_v16  ;;  %2825 = vmatpush.bf16.msra.mxu1 %v5921_v13  ;;  %v5931_v16 = vld [vmem:[%s7428_s2 + $0x1e8] sm:$0xff]  ;;  %v1782_v13 = vld [vmem:[#allocation4 + $0x438] sm:$0xff] }
 0x286   :  { %2872 = vmatpush.bf16.msra.mxu2 %v5931_v16  ;;  %2923 = vmatpush.bf16.msra.mxu3 %v5937_v46  ;;  %v5926_v16 = vld [vmem:[%s7428_s2 + $0x1c0] sm:$0xff] }
 0x287   :  { %2785 = vmatmul.bf16.gmra.mxu3 %v1822_v19  ;;  %v1760_v19 = vld [vmem:[#allocation4 + $0x388] sm:$0xff] }
 0x288   :  { %v2610_v22 = vpop.f32.mrf.mxu2  ;;  %v1860_v36 = vpack.c.bf16 %v1760_v19, %v1750_v27  ;;  %v1772_v19 = vld [vmem:[#allocation4 + $0x3e8] sm:$0xff] }
 0x289   :  { %v2611_v23 = vadd.f32 %v2610_v22, %v2561_v21  ;;  %v6723_v21 = vpop.f32.mrf.mxu1  ;;  %2826 = vmatpush.bf16.msra.mxu1 %v5920_v58  ;;  %v1654_v58 = vld [vmem:[#allocation4 + $0x38] sm:$0xff] }
 0x28a   :  { %v2659_v24 = vpop.f32.mrf.mxu3  ;;  %2873 = vmatpush.bf16.msra.mxu2 %v5930_v40  ;;  %2924 = vmatpush.bf16.msra.mxu3 %v5936_v62 }
 0x28b   :  { %v6691_v25 = vadd.f32 %v2659_v24, %v2611_v23  ;;  %v1285_v23 = vld [vmem:[#allocation3 + $0x70] sm:$0x3f] }
 0x28c   :  { %v1345_v24 = vld [vmem:[#allocation3 + $0x71] sm:$0x3f] }
 0x28d   :  { %v1369_v30 = vrot.slane %v1345_v24, 7 }
 0x28e   :  { %2925 = vmatpush.bf16.msra.mxu3 %v5935_v4 }
 0x28f   :  { %1393 = vst [vmem:[#allocation4 + $0x480] sm:$0x7e] %v1369_v30 }
 0x290   :  { %v6725_v22 = vpop.f32.mrf.mxu2 }
 0x292   :  { %2926 = vmatpush.bf16.msra.mxu3 %v5934_v17 }
 0x294   :  { %2692 = vmatmul.bf16.gmra.mxu1 %v1830_v29  ;;  %v1309_v29 = vrot.slane %v1285_v23, 7 }
 0x295   :  { %2741 = vmatmul.bf16.gmra.mxu2 %v1831_v34  ;;  %v6730_v34 = vpop.f32.mrf.mxu3 }
 0x296   :  { %1333 = vst [vmem:[#allocation4 + $0x478] sm:$0x7e] %v1309_v29  ;;  %v1791_v38 = vld [vmem:[#allocation4 + $0x480] sm:$0xff]  ;;  %v1801_v29 = vld [vmem:[#allocation4 + $0x4d0] sm:$0xff] }
 0x297   :  { %2790 = vmatmul.bf16.gmra.mxu3 %v1832_v37  ;;  %v1751_v37 = vld [vmem:[#allocation4 + $0x340] sm:$0xff]  ;;  %v1881_v40 = vpack.c.bf16 %v1801_v29, %v1791_v38  ;;  %v5949_v29 = vld [vmem:[%s7428_s2 + $0x278] sm:$0xff] }
 0x298   :  { %v1861_v41 = vpack.c.bf16 %v1761_v20, %v1751_v37  ;;  %v1872_v20 = vpack.c.bf16 %v1782_v13, %v1772_v19  ;;  %v1792_v37 = vld [vmem:[#allocation4 + $0x488] sm:$0xff] }
 0x29d   :  { %v1790_v24 = vld [vmem:[#allocation4 + $0x478] sm:$0xff] }
 0x2a4   :  { %2697 = vmatmul.bf16.gmra.mxu1 %v1840_v45  ;;  %v5929_v45 = vld [vmem:[%s7428_s2 + $0x1d8] sm:$0xff] }
 0x2a5   :  { %2746 = vmatmul.bf16.gmra.mxu2 %v1841_v54 }
 0x2a6   :  { %2874 = vmatpush.bf16.msra.mxu2 %v5929_v45 }
 0x2a7   :  { %2795 = vmatmul.bf16.gmra.mxu3 %v1842_v55 }
 0x2aa   :  { %2875 = vmatpush.bf16.msra.mxu2 %v5928_v61  ;;  %v1664_v61 = vld [vmem:[#allocation4 + $0x88] sm:$0xff] }
 0x2ab   :  { %v1814_v11 = vpack.c.bf16 %v1664_v61, %v1654_v58 }
 0x2ae   :  { %2876 = vmatpush.bf16.msra.mxu2 %v5927_v0 }
 0x2b2   :  { %2877 = vmatpush.bf16.msra.mxu2 %v5926_v16 }
 0x2b4   :  { %2702 = vmatmul.bf16.gmra.mxu1 %v1850_v63  ;;  %v5919_v63 = vld [vmem:[%s7428_s2 + $0x188] sm:$0xff] }
 0x2b5   :  { %2751 = vmatmul.bf16.gmra.mxu2 %v1851_v6  ;;  %v1780_v6 = vld [vmem:[#allocation4 + $0x428] sm:$0xff]  ;;  %2827 = vmatpush.bf16.msra.mxu1 %v5919_v63 }
 0x2b7   :  { %2800 = vmatmul.bf16.gmra.mxu3 %v1852_v9  ;;  %v1770_v9 = vld [vmem:[#allocation4 + $0x3d8] sm:$0xff] }
 0x2b8   :  { %v1870_v10 = vpack.c.bf16 %v1780_v6, %v1770_v9  ;;  %v1665_v9 = vld [vmem:[#allocation4 + $0x90] sm:$0xff] }
 0x2b9   :  { %2828 = vmatpush.bf16.msra.mxu1 %v5918_v15  ;;  %v1815_v16 = vpack.c.bf16 %v1665_v9, %v1655_v8 }
 0x2bd   :  { %2968 = vmatpush.bf16.msrb.mxu1 %v5949_v29 }
 0x2c1   :  { %v2566_v53 = vpop.f32.mrf.mxu1 }
 0x2c4   :  { %2707 = vmatmul.bf16.gmra.mxu1 %v1860_v36  ;;  %v1880_v36 = vpack.c.bf16 %v1800_v26, %v1790_v24 }
 0x2c5   :  { %2756 = vmatmul.bf16.gmra.mxu2 %v1861_v41  ;;  %v1882_v41 = vpack.c.bf16 %v1802_v39, %v1792_v37  ;;  %v1683_v39 = vld [vmem:[#allocation4 + $0x120] sm:$0xff] }
 0x2c7   :  { %2805 = vmatmul.bf16.gmra.mxu3 %v1862_v44 }
 0x2c8   :  { %v2615_v54 = vpop.f32.mrf.mxu2 }
 0x2c9   :  { %v2616_v55 = vadd.f32 %v2615_v54, %v2566_v53  ;;  %v6770_v23 = vpop.f32.mrf.mxu1  ;;  %v1653_v54 = vld [vmem:[#allocation4 + $0x30] sm:$0xff] }
 0x2ca   :  { %v2664_v56 = vpop.f32.mrf.mxu3 }
 0x2cb   :  { %v6741_v57 = vadd.f32 %v2664_v56, %v2616_v55  ;;  %v1663_v55 = vld [vmem:[#allocation4 + $0x80] sm:$0xff] }
 0x2cc   :  { %v1813_v6 = vpack.c.bf16 %v1663_v55, %v1653_v54  ;;  %v1674_v54 = vld [vmem:[#allocation4 + $0xd8] sm:$0xff]  ;;  %v1685_v55 = vld [vmem:[#allocation4 + $0x130] sm:$0xff] }
 0x2d0   :  { %v6772_v27 = vpop.f32.mrf.mxu2 }
 0x2d2   :  { %v6774_v33 = vpop.f32.mrf.mxu3 }
 0x2d4   :  { %2712 = vmatmul.bf16.gmra.mxu1 %v1870_v10 }
 0x2d5   :  { %2761 = vmatmul.bf16.gmra.mxu2 %v1871_v14  ;;  %v6020_v14 = vld [vmem:[%s7429_s3 + $0x230] sm:$0xff] }
 0x2d6   :  { %4555 = vmatpush.bf16.msrb.mxu0 %v6020_v14 }
 0x2d7   :  { %2810 = vmatmul.bf16.gmra.mxu3 %v1872_v20 }
 0x2e1   :  { %v2571_v30 = vpop.f32.mrf.mxu1 }
 0x2e2   :  { %v527_v13 = vpop.f32.mrf.mxu0 }
 0x2e3   :  { %v597_v15 = vmax.f32 %v527_v13, 0.0  ;;  %v5948_v13 = vld [vmem:[%s7428_s2 + $0x270] sm:$0xff] }
 0x2e4   :  { %2717 = vmatmul.bf16.gmra.mxu1 %v1880_v36 }
 0x2e5   :  { %2766 = vmatmul.bf16.gmra.mxu2 %v1881_v40  ;;  %661 = vst [vmem:[#allocation2 + $0x1e0] sm:$0xff] %v597_v15  ;;  %2969 = vmatpush.bf16.msrb.mxu1 %v5948_v13 }
 0x2e7   :  { %2815 = vmatmul.bf16.gmra.mxu3 %v1882_v41  ;;  %v1684_v41 = vld [vmem:[#allocation4 + $0x128] sm:$0xff] }
 0x2e8   :  { %v2620_v42 = vpop.f32.mrf.mxu2  ;;  %v1824_v58 = vpack.c.bf16 %v1684_v41, %v1674_v54  ;;  %v1695_v41 = vld [vmem:[#allocation4 + $0x180] sm:$0xff] }
 0x2e9   :  { %v2621_v44 = vadd.f32 %v2620_v42, %v2571_v30  ;;  %v2573_v45 = vpop.f32.mrf.mxu1  ;;  %v1673_v42 = vld [vmem:[#allocation4 + $0xd0] sm:$0xff] }
 0x2ea   :  { %v2669_v46 = vpop.f32.mrf.mxu3  ;;  %v529_v38 = vpop.f32.mrf.mxu0 }
 0x2eb   :  { %v6776_v53 = vadd.f32 %v2669_v46, %v2621_v44  ;;  %v598_v30 = vmax.f32 %v529_v38, 0.0  ;;  %v1823_v46 = vpack.c.bf16 %v1683_v39, %v1673_v42  ;;  %v1705_v39 = vld [vmem:[#allocation4 + $0x1d0] sm:$0xff] }
 0x2ed   :  { %662 = vst [vmem:[#allocation2 + $0x1e8] sm:$0xff] %v598_v30 }
 0x2f0   :  { %v2622_v56 = vpop.f32.mrf.mxu2 }
 0x2f1   :  { %v2623_v62 = vadd.f32 %v2622_v56, %v2573_v45  ;;  %v2683_v63 = vpop.f32.mrf.mxu1 }
 0x2f2   :  { %v2671_v0 = vpop.f32.mrf.mxu3  ;;  %v2684_v4 = vadd.f32 %v2683_v63, %v6536_v28  ;;  %v2588_v28 = vadd.f32 %v6545_v51, %v6543_v50  ;;  %v532_v61 = vpop.f32.mrf.mxu0 }
 0x2f3   :  { %v6779_v10 = vadd.f32 %v2671_v0, %v2623_v62  ;;  %v599_v62 = vmax.f32 %v532_v61, 0.0 }
 0x2f4   :  { %2829 = vmatmul.bf16.vlgmr.msra.gmra.mxu1 %v1813_v6  ;;  %v2637_v36 = vadd.f32 %v6547_v52, %v2588_v28  ;;  %v1675_v52 = vld [vmem:[#allocation4 + $0xe0] sm:$0xff] }
 0x2f5   :  { %2878 = vmatmul.bf16.vlgmr.msra.gmra.mxu2 %v1814_v11  ;;  %v1825_v63 = vpack.c.bf16 %v1685_v55, %v1675_v52  ;;  %663 = vst [vmem:[#allocation2 + $0x1f0] sm:$0xff] %v599_v62  ;;  %v727_v38 = vld [vmem:[#allocation2 + $0x1e1] ss:$2 sm:$0xff] }
 0x2f6   :  { %v5947_v62 = vld [vmem:[%s7428_s2 + $0x268] sm:$0xff] }
 0x2f7   :  { %2927 = vmatmul.bf16.vlgmr.msra.gmra.mxu3 %v1815_v16  ;;  %2970 = vmatpush.bf16.msrb.mxu1 %v5947_v62 }
 0x2f8   :  { %v2732_v17 = vpop.f32.mrf.mxu2 }
 0x2f9   :  { %v2733_v19 = vadd.f32 %v2732_v17, %v2684_v4  ;;  %v2685_v20 = vpop.f32.mrf.mxu1  ;;  %v2593_v4 = vadd.f32 %v6569_v48, %v6567_v47  ;;  %v1703_v17 = vld [vmem:[#allocation4 + $0x1c0] sm:$0xff] }
 0x2fa   :  { %v2781_v24 = vpop.f32.mrf.mxu3  ;;  %v2686_v37 = vadd.f32 %v2685_v20, %v2637_v36  ;;  %v534_v11 = vpop.f32.mrf.mxu0  ;;  %v1693_v20 = vld [vmem:[#allocation4 + $0x170] sm:$0xff] }
 0x2fb   :  { %v6786_v26 = vadd.f32 %v2781_v24, %v2733_v19  ;;  %v600_v14 = vmax.f32 %v534_v11, 0.0  ;;  %v2642_v15 = vadd.f32 %v6571_v49, %v2593_v4  ;;  %v1704_v19 = vld [vmem:[#allocation4 + $0x1c8] sm:$0xff]  ;;  %v1833_v36 = vpack.c.bf16 %v1703_v17, %v1693_v20  ;;  %v1713_v4 = vld [vmem:[#allocation4 + $0x210] sm:$0xff] }
 0x2fc   :  { %v695_v24 = vld [vmem:[#allocation2 + $0x1e0] ss:$2 sm:$0xff]  ;;  %v1725_v17 = vld [vmem:[#allocation4 + $0x270] sm:$0xff] }
 0x2fd   :  { %664 = vst [vmem:[#allocation2 + $0x1f8] sm:$0xff] %v600_v14  ;;  %v1724_v11 = vld [vmem:[#allocation4 + $0x268] sm:$0xff] }
 0x300   :  { %v2734_v40 = vpop.f32.mrf.mxu2 }
 0x301   :  { %v2735_v50 = vadd.f32 %v2734_v40, %v2686_v37  ;;  %v2688_v51 = vpop.f32.mrf.mxu1  ;;  %v1694_v37 = vld [vmem:[#allocation4 + $0x178] sm:$0xff] }
 0x302   :  { %v2783_v44 = vpop.f32.mrf.mxu3  ;;  %v2689_v45 = vadd.f32 %v2688_v51, %v6549_v1  ;;  %v1834_v49 = vpack.c.bf16 %v1704_v19, %v1694_v37  ;;  %v1835_v51 = vpack.c.bf16 %v1705_v39, %v1695_v41  ;;  %v1733_v37 = vld [vmem:[#allocation4 + $0x2b0] sm:$0xff]  ;;  %v1743_v39 = vld [vmem:[#allocation4 + $0x300] sm:$0xff]  ;;  %v1734_v41 = vld [vmem:[#allocation4 + $0x2b8] sm:$0xff] }
 0x303   :  { %v6793_v56 = vadd.f32 %v2783_v44, %v2735_v50  ;;  %v743_v50 = vmax.f32 %v695_v24, %v727_v38 }
 0x304   :  { %2834 = vmatmul.bf16.gmra.mxu1 %v1823_v46  ;;  %v775_v42 = vld [vmem:[#allocation2 + $0x1f0] ss:$2 sm:$0xff]  ;;  %v807_v44 = vld [vmem:[#allocation2 + $0x1f1] ss:$2 sm:$0xff] }
 0x305   :  { %2883 = vmatmul.bf16.gmra.mxu2 %v1824_v58 }
 0x307   :  { %2932 = vmatmul.bf16.gmra.mxu3 %v1825_v63 }
 0x308   :  { %v2737_v0 = vpop.f32.mrf.mxu2 }
 0x309   :  { %v2738_v6 = vadd.f32 %v2737_v0, %v2689_v45  ;;  %v2690_v1 = vpop.f32.mrf.mxu1  ;;  %v823_v45 = vmax.f32 %v775_v42, %v807_v44  ;;  %v1853_v44 = vpack.c.bf16 %v1743_v39, %v1733_v37  ;;  %v5944_v39 = vld [vmem:[%s7428_s2 + $0x250] sm:$0xff] }
 0x30a   :  { %v2786_v8 = vpop.f32.mrf.mxu3  ;;  %v2691_v16 = vadd.f32 %v2690_v1, %v2642_v15 }
 0x30b   :  { %v6797_v9 = vadd.f32 %v2786_v8, %v2738_v6  ;;  %v839_v54 = vmax.f32 %v743_v50, %v823_v45  ;;  %v1723_v6 = vld [vmem:[#allocation4 + $0x260] sm:$0xff]  ;;  %v1714_v8 = vld [vmem:[#allocation4 + $0x218] sm:$0xff]  ;;  %v1744_v50 = vld [vmem:[#allocation4 + $0x308] sm:$0xff] }
 0x30c   :  { %v1843_v15 = vpack.c.bf16 %v1723_v6, %v1713_v4  ;;  %v1844_v19 = vpack.c.bf16 %v1724_v11, %v1714_v8  ;;  %v1735_v45 = vld [vmem:[#allocation4 + $0x2c0] sm:$0xff]  ;;  %v1753_v11 = vld [vmem:[#allocation4 + $0x350] sm:$0xff] }
 0x30d   :  { %855 = vst [vmem:[#allocation3 + $0x78] sm:$0xff] %v839_v54  ;;  %v1763_v4 = vld [vmem:[#allocation4 + $0x3a0] sm:$0xff] }
 0x310   :  { %v2739_v28 = vpop.f32.mrf.mxu2 }
 0x311   :  { %v2740_v47 = vadd.f32 %v2739_v28, %v2691_v16  ;;  %v2693_v48 = vpop.f32.mrf.mxu1  ;;  %v1715_v16 = vld [vmem:[#allocation4 + $0x220] sm:$0xff] }
 0x312   :  { %v2788_v29 = vpop.f32.mrf.mxu3  ;;  %v2694_v30 = vadd.f32 %v2693_v48, %v6573_v5  ;;  %v2598_v5 = vadd.f32 %v6585_v32, %v6583_v31  ;;  %v2603_v48 = vadd.f32 %v6620_v60, %v6618_v59 }
 0x313   :  { %v6804_v40 = vadd.f32 %v2788_v29, %v2740_v47 }
 0x314   :  { %2839 = vmatmul.bf16.gmra.mxu1 %v1833_v36  ;;  %v2647_v63 = vadd.f32 %v6587_v35, %v2598_v5  ;;  %v1845_v35 = vpack.c.bf16 %v1725_v17, %v1715_v16  ;;  %v1854_v5 = vpack.c.bf16 %v1744_v50, %v1734_v41  ;;  %v1466_v17 = vld [vmem:[#allocation3 + $0x78] sm:$0x3f]  ;;  %v1783_v41 = vld [vmem:[#allocation4 + $0x440] sm:$0xff] }
 0x315   :  { %2888 = vmatmul.bf16.gmra.mxu2 %v1834_v49 }
 0x317   :  { %2937 = vmatmul.bf16.gmra.mxu3 %v1835_v51 }
 0x318   :  { %v2742_v46 = vpop.f32.mrf.mxu2 }
 0x319   :  { %v2743_v55 = vadd.f32 %v2742_v46, %v2694_v30  ;;  %v2695_v58 = vpop.f32.mrf.mxu1  ;;  %v2652_v30 = vadd.f32 %v6622_v7, %v2603_v48  ;;  %v1745_v46 = vld [vmem:[#allocation4 + $0x310] sm:$0xff]  ;;  %v6019_v7 = vld [vmem:[%s7429_s3 + $0x228] sm:$0xff] }
 0x31a   :  { %v2791_v61 = vpop.f32.mrf.mxu3  ;;  %v2696_v0 = vadd.f32 %v2695_v58, %v2647_v63  ;;  %4556 = vmatpush.bf16.msrb.mxu0 %v6019_v7 }
 0x31b   :  { %v6808_v52 = vadd.f32 %v2791_v61, %v2743_v55  ;;  %v1855_v55 = vpack.c.bf16 %v1745_v46, %v1735_v45  ;;  %v1774_v46 = vld [vmem:[#allocation4 + $0x3f8] sm:$0xff] }
 0x320   :  { %v2744_v1 = vpop.f32.mrf.mxu2 }
 0x321   :  { %v2745_v31 = vadd.f32 %v2744_v1, %v2696_v0  ;;  %v2698_v32 = vpop.f32.mrf.mxu1  ;;  %v5945_v0 = vld [vmem:[%s7428_s2 + $0x258] sm:$0xff]  ;;  %v1764_v1 = vld [vmem:[#allocation4 + $0x3a8] sm:$0xff] }
 0x322   :  { %v2793_v13 = vpop.f32.mrf.mxu3  ;;  %v2699_v14 = vadd.f32 %v2698_v32, %v6589_v43  ;;  %v5946_v43 = vld [vmem:[%s7428_s2 + $0x260] sm:$0xff] }
 0x323   :  { %v6815_v28 = vadd.f32 %v2793_v13, %v2745_v31  ;;  %2971 = vmatpush.bf16.msrb.mxu1 %v5946_v43  ;;  %v1863_v13 = vpack.c.bf16 %v1763_v4, %v1753_v11 }
 0x324   :  { %2844 = vmatmul.bf16.gmra.mxu1 %v1843_v15  ;;  %v1765_v15 = vld [vmem:[#allocation4 + $0x3b0] sm:$0xff] }
 0x325   :  { %2893 = vmatmul.bf16.gmra.mxu2 %v1844_v19  ;;  %v1755_v19 = vld [vmem:[#allocation4 + $0x360] sm:$0xff] }
 0x326   :  { %v1865_v48 = vpack.c.bf16 %v1765_v15, %v1755_v19  ;;  %v1804_v15 = vld [vmem:[#allocation4 + $0x4e8] sm:$0xff] }
 0x327   :  { %2942 = vmatmul.bf16.gmra.mxu3 %v1845_v35  ;;  %2972 = vmatpush.bf16.msrb.mxu1 %v5945_v0  ;;  %v1490_v35 = vrot.slane %v1466_v17, 7 }
 0x328   :  { %v2747_v47 = vpop.f32.mrf.mxu2 }
 0x329   :  { %v2748_v20 = vadd.f32 %v2747_v47, %v2699_v14  ;;  %v2700_v24 = vpop.f32.mrf.mxu1  ;;  %v1754_v14 = vld [vmem:[#allocation4 + $0x358] sm:$0xff]  ;;  %1514 = vst [vmem:[#allocation4 + $0x490] sm:$0x7e] %v1490_v35 }
 0x32a   :  { %v2796_v38 = vpop.f32.mrf.mxu3  ;;  %v2701_v36 = vadd.f32 %v2700_v24, %v2652_v30  ;;  %v1864_v16 = vpack.c.bf16 %v1764_v1, %v1754_v14  ;;  %v1526_v47 = vld [vmem:[#allocation3 + $0x79] sm:$0x3f] }
 0x32b   :  { %v6819_v29 = vadd.f32 %v2796_v38, %v2748_v20  ;;  %v1550_v20 = vrot.slane %v1526_v47, 7  ;;  %v1586_v24 = vld [vmem:[#allocation3 + $0x7a] sm:$0x3f]  ;;  %2973 = vmatpush.bf16.msrb.mxu1 %v5944_v39 }
 0x32c   :  { %v1610_v38 = vrot.slane %v1586_v24, 7 }
 0x32d   :  { %1574 = vst [vmem:[#allocation4 + $0x498] sm:$0x7e] %v1550_v20 }
 0x32e   :  { %1634 = vst [vmem:[#allocation4 + $0x4a0] sm:$0x7e] %v1610_v38 }
 0x330   :  { %v2749_v49 = vpop.f32.mrf.mxu2  ;;  %v1793_v11 = vld [vmem:[#allocation4 + $0x490] sm:$0xff] }
 0x331   :  { %v2750_v51 = vadd.f32 %v2749_v49, %v2701_v36  ;;  %v2703_v59 = vpop.f32.mrf.mxu1  ;;  %v5943_v49 = vld [vmem:[%s7428_s2 + $0x248] sm:$0xff] }
 0x332   :  { %v2798_v60 = vpop.f32.mrf.mxu3  ;;  %v2704_v42 = vadd.f32 %v2703_v59, %v6630_v18  ;;  %2974 = vmatpush.bf16.msrb.mxu1 %v5943_v49 }
 0x333   :  { %v6826_v54 = vadd.f32 %v2798_v60, %v2750_v51  ;;  %v1784_v51 = vld [vmem:[#allocation4 + $0x448] sm:$0xff]  ;;  %v1773_v60 = vld [vmem:[#allocation4 + $0x3f0] sm:$0xff] }
 0x334   :  { %2849 = vmatmul.bf16.gmra.mxu1 %v1853_v44  ;;  %v1873_v45 = vpack.c.bf16 %v1783_v41, %v1773_v60  ;;  %v1874_v7 = vpack.c.bf16 %v1784_v51, %v1774_v46  ;;  %v1794_v14 = vld [vmem:[#allocation4 + $0x498] sm:$0xff]  ;;  %v1656_v41 = vld [vmem:[#allocation4 + $0x48] sm:$0xff] }
 0x335   :  { %2898 = vmatmul.bf16.gmra.mxu2 %v1854_v5  ;;  %v1785_v5 = vld [vmem:[#allocation4 + $0x450] sm:$0xff]  ;;  %v1795_v47 = vld [vmem:[#allocation4 + $0x4a0] sm:$0xff]  ;;  %v1884_v20 = vpack.c.bf16 %v1804_v15, %v1794_v14 }
 0x337   :  { %2947 = vmatmul.bf16.gmra.mxu3 %v1855_v55  ;;  %v5942_v55 = vld [vmem:[%s7428_s2 + $0x240] sm:$0xff] }
 0x338   :  { %v2752_v58 = vpop.f32.mrf.mxu2  ;;  %2975 = vmatpush.bf16.msrb.mxu1 %v5942_v55 }
 0x339   :  { %v2753_v61 = vadd.f32 %v2752_v58, %v2704_v42  ;;  %v6831_v62 = vpop.f32.mrf.mxu1  ;;  %v1775_v58 = vld [vmem:[#allocation4 + $0x400] sm:$0xff] }
 0x33a   :  { %v2801_v18 = vpop.f32.mrf.mxu3 }
 0x33b   :  { %v6833_v63 = vadd.f32 %v2801_v18, %v2753_v61  ;;  %v6118_v61 = vmov 1.0   ;;  %v1875_v18 = vpack.c.bf16 %v1785_v5, %v1775_v58 }
 0x33c   :  { %1635 = vst [vmem:[#allocation4 + $0x98] sm:$0x7e] %v6118_v61 }
 0x33d   :  { %1636 = vst [vmem:[#allocation4 + $0xe8] sm:$0x7e] %v6118_v61 }
 0x33e   :  { %1637 = vst [vmem:[#allocation4 + $0x138] sm:$0x7e] %v6118_v61 }
 0x33f   :  { %1638 = vst [vmem:[#allocation4 + $0x188] sm:$0x7e] %v6118_v61 }
 0x340   :  { %v6838_v6 = vpop.f32.mrf.mxu2  ;;  %1639 = vst [vmem:[#allocation4 + $0x1d8] sm:$0x7e] %v6118_v61 }
 0x341   :  { %v2708_v8 = vpop.f32.mrf.mxu1  ;;  %1640 = vst [vmem:[#allocation4 + $0x228] sm:$0x7e] %v6118_v61 }
 0x342   :  { %v6840_v31 = vpop.f32.mrf.mxu3  ;;  %v2709_v32 = vadd.f32 %v2708_v8, %v6691_v25  ;;  %1641 = vst [vmem:[#allocation4 + $0x318] sm:$0x7e] %v6118_v61 }
 0x343   :  { %1642 = vst [vmem:[#allocation4 + $0x368] sm:$0x7e] %v6118_v61  ;;  %v1666_v51 = vld [vmem:[#allocation4 + $0x98] sm:$0xff] }
 0x344   :  { %2854 = vmatmul.bf16.gmra.mxu1 %v1863_v13  ;;  %1643 = vst [vmem:[#allocation4 + $0x3b8] sm:$0x7e] %v6118_v61 }
 0x345   :  { %2903 = vmatmul.bf16.gmra.mxu2 %v1864_v16  ;;  %1644 = vst [vmem:[#allocation4 + $0x408] sm:$0x7e] %v6118_v61  ;;  %v1686_v5 = vld [vmem:[#allocation4 + $0x138] sm:$0xff] }
 0x346   :  { %1645 = vst [vmem:[#allocation4 + $0x458] sm:$0x7e] %v6118_v61 }
 0x347   :  { %2952 = vmatmul.bf16.gmra.mxu3 %v1865_v48  ;;  %1646 = vst [vmem:[#allocation4 + $0x4a8] sm:$0x7e] %v6118_v61  ;;  %v1805_v48 = vld [vmem:[#allocation4 + $0x4f0] sm:$0xff] }
 0x348   :  { %v2757_v43 = vpop.f32.mrf.mxu2  ;;  %v1885_v24 = vpack.c.bf16 %v1805_v48, %v1795_v47  ;;  %v1716_v14 = vld [vmem:[#allocation4 + $0x228] sm:$0xff] }
 0x349   :  { %v2758_v25 = vadd.f32 %v2757_v43, %v2709_v32  ;;  %v6843_v30 = vpop.f32.mrf.mxu1  ;;  %v1803_v32 = vld [vmem:[#allocation4 + $0x4e0] sm:$0xff]  ;;  %v1736_v47 = vld [vmem:[#allocation4 + $0x2c8] sm:$0xff] }
 0x34a   :  { %v2806_v36 = vpop.f32.mrf.mxu3  ;;  %v1883_v35 = vpack.c.bf16 %v1803_v32, %v1793_v11 }
 0x34b   :  { %v6845_v37 = vadd.f32 %v2806_v36, %v2758_v25 }
 0x350   :  { %v6853_v50 = vpop.f32.mrf.mxu2 }
 0x351   :  { %v2713_v59 = vpop.f32.mrf.mxu1 }
 0x352   :  { %v6855_v42 = vpop.f32.mrf.mxu3  ;;  %v2714_v44 = vadd.f32 %v2713_v59, %v6741_v57 }
 0x354   :  { %2859 = vmatmul.bf16.gmra.mxu1 %v1873_v45 }
 0x355   :  { %2908 = vmatmul.bf16.gmra.mxu2 %v1874_v7 }
 0x357   :  { %2957 = vmatmul.bf16.gmra.mxu3 %v1875_v18  ;;  %v1696_v18 = vld [vmem:[#allocation4 + $0x188] sm:$0xff] }
 0x358   :  { %v2762_v57 = vpop.f32.mrf.mxu2 }
 0x359   :  { %v2763_v0 = vadd.f32 %v2762_v57, %v2714_v44  ;;  %v6861_v4 = vpop.f32.mrf.mxu1  ;;  %v6018_v44 = vld [vmem:[%s7429_s3 + $0x220] sm:$0xff] }
 0x35a   :  { %v2811_v1 = vpop.f32.mrf.mxu3  ;;  %4557 = vmatpush.bf16.msrb.mxu0 %v6018_v44  ;;  %v1706_v57 = vld [vmem:[#allocation4 + $0x1d8] sm:$0xff]  ;;  %v1776_v44 = vld [vmem:[#allocation4 + $0x408] sm:$0xff] }
 0x35b   :  { %v6863_v8 = vadd.f32 %v2811_v1, %v2763_v0  ;;  %v1836_v0 = vpack.c.bf16 %v1706_v57, %v1696_v18 }
 0x360   :  { %v6865_v13 = vpop.f32.mrf.mxu2 }
 0x361   :  { %v2718_v16 = vpop.f32.mrf.mxu1 }
 0x362   :  { %v6867_v17 = vpop.f32.mrf.mxu3  ;;  %v2719_v19 = vadd.f32 %v2718_v16, %v6776_v53  ;;  %v1816_v53 = vpack.c.bf16 %v1666_v51, %v1656_v41 }
 0x364   :  { %2864 = vmatmul.bf16.gmra.mxu1 %v1883_v35 }
 0x365   :  { %2913 = vmatmul.bf16.gmra.mxu2 %v1884_v20 }
 0x367   :  { %2962 = vmatmul.bf16.gmra.mxu3 %v1885_v24 }
 0x368   :  { %v2767_v38 = vpop.f32.mrf.mxu2 }
 0x369   :  { %v2768_v43 = vadd.f32 %v2767_v38, %v2719_v19  ;;  %v2720_v25 = vpop.f32.mrf.mxu1  ;;  %v1756_v38 = vld [vmem:[#allocation4 + $0x368] sm:$0xff] }
 0x36a   :  { %v2816_v36 = vpop.f32.mrf.mxu3  ;;  %v6871_v39 = vadd.f32 %v2720_v25, %v6779_v10  ;;  %v1676_v10 = vld [vmem:[#allocation4 + $0xe8] sm:$0xff] }
 0x36b   :  { %v6873_v49 = vadd.f32 %v2816_v36, %v2768_v43  ;;  %v1826_v7 = vpack.c.bf16 %v1686_v5, %v1676_v10  ;;  %v1766_v43 = vld [vmem:[#allocation4 + $0x3b8] sm:$0xff] }
 0x370   :  { %v2769_v25 = vpop.f32.mrf.mxu2 }
 0x371   :  { %v2830_v59 = vpop.f32.mrf.mxu1 }
 0x372   :  { %v6876_v60 = vadd.f32 %v2830_v59, %v6786_v26  ;;  %v2818_v51 = vpop.f32.mrf.mxu3  ;;  %v2618_v59 = vadd.f32 %v6772_v27, %v6770_v23 }
 0x374   :  { %2976 = vmatmul.bf16.vlgmr.msrb.gmra.mxu1 %v1816_v53  ;;  %v2667_v5 = vadd.f32 %v6774_v33, %v2618_v59  ;;  %v1806_v33 = vld [vmem:[#allocation4 + $0x4f8] sm:$0xff] }
 0x379   :  { %v2832_v45 = vpop.f32.mrf.mxu1 }
 0x37a   :  { %v6882_v46 = vadd.f32 %v2832_v45, %v6793_v56  ;;  %v1786_v45 = vld [vmem:[#allocation4 + $0x458] sm:$0xff]  ;;  %v2928_v10 = vpop.f32.mrf.mxu3 }
 0x381   :  { %v2835_v55 = vpop.f32.mrf.mxu1 }
 0x382   :  { %v6885_v58 = vadd.f32 %v2835_v55, %v6797_v9  ;;  %v1726_v9 = vld [vmem:[#allocation4 + $0x278] sm:$0xff] }
 0x383   :  { %v1846_v15 = vpack.c.bf16 %v1726_v9, %v1716_v14  ;;  %v1796_v14 = vld [vmem:[#allocation4 + $0x4a8] sm:$0xff] }
 0x384   :  { %2981 = vmatmul.bf16.gmra.mxu1 %v1826_v7  ;;  %v1876_v7 = vpack.c.bf16 %v1786_v45, %v1776_v44  ;;  %v1886_v9 = vpack.c.bf16 %v1806_v33, %v1796_v14 }
 0x389   :  { %v2837_v26 = vpop.f32.mrf.mxu1 }
 0x38a   :  { %v6888_v61 = vadd.f32 %v2837_v26, %v6804_v40  ;;  %v2716_v26 = vadd.f32 %v6861_v4, %v2667_v5 }
 0x38c   :  { %v2765_v57 = vadd.f32 %v6865_v13, %v2716_v26 }
 0x391   :  { %v2840_v1 = vpop.f32.mrf.mxu1 }
 0x392   :  { %v6891_v11 = vadd.f32 %v2840_v1, %v6808_v52  ;;  %v1746_v52 = vld [vmem:[#allocation4 + $0x318] sm:$0xff]  ;;  %v2930_v1 = vpop.f32.mrf.mxu3 }
 0x393   :  { %v1856_v48 = vpack.c.bf16 %v1746_v52, %v1736_v47 }
 0x394   :  { %2986 = vmatmul.bf16.gmra.mxu1 %v1836_v0  ;;  %v2814_v0 = vadd.f32 %v6867_v17, %v2765_v57 }
 0x399   :  { %v2842_v56 = vpop.f32.mrf.mxu1 }
 0x39a   :  { %v6894_v32 = vadd.f32 %v2842_v56, %v6815_v28  ;;  %v6017_v28 = vld [vmem:[%s7429_s3 + $0x218] sm:$0xff] }
 0x39b   :  { %4558 = vmatpush.bf16.msrb.mxu0 %v6017_v28 }
 0x3a1   :  { %v2845_v16 = vpop.f32.mrf.mxu1 }
 0x3a2   :  { %v6897_v19 = vadd.f32 %v2845_v16, %v6819_v29  ;;  %v2933_v16 = vpop.f32.mrf.mxu3 }
 0x3a4   :  { %2991 = vmatmul.bf16.gmra.mxu1 %v1846_v15 }
 0x3a9   :  { %v2847_v40 = vpop.f32.mrf.mxu1 }
 0x3aa   :  { %v6900_v35 = vadd.f32 %v2847_v40, %v6826_v54  ;;  %v1866_v54 = vpack.c.bf16 %v1766_v43, %v1756_v38 }
 0x3b1   :  { %v2850_v20 = vpop.f32.mrf.mxu1 }
 0x3b2   :  { %v6903_v24 = vadd.f32 %v2850_v20, %v6833_v63  ;;  %v2879_v63 = vpop.f32.mrf.mxu2 }
 0x3b3   :  { %v2880_v52 = vadd.f32 %v2879_v63, %v6876_v60 }
 0x3b4   :  { %2996 = vmatmul.bf16.gmra.mxu1 %v1856_v48  ;;  %v2935_v48 = vpop.f32.mrf.mxu3 }
 0x3b5   :  { %v2929_v20 = vadd.f32 %v2928_v10, %v2880_v52 }
 0x3b9   :  { %v6908_v29 = vpop.f32.mrf.mxu1 }
 0x3ba   :  { %v2881_v18 = vpop.f32.mrf.mxu2 }
 0x3c1   :  { %v2855_v36 = vpop.f32.mrf.mxu1 }
 0x3c2   :  { %v6911_v41 = vadd.f32 %v2855_v36, %v6845_v37  ;;  %v2884_v56 = vpop.f32.mrf.mxu2 }
 0x3c4   :  { %3001 = vmatmul.bf16.gmra.mxu1 %v1866_v54  ;;  %v2882_v54 = vadd.f32 %v2881_v18, %v6882_v46  ;;  %v5965_v46 = vld [vmem:[%s7429_s3 + $0x78] sm:$0xff] }
 0x3c5   :  { %4463 = vmatpush.bf16.msrb.mxu3 %v5965_v46 }
 0x3c6   :  { %v2931_v59 = vadd.f32 %v2930_v1, %v2882_v54 }
 0x3c9   :  { %v6913_v53 = vpop.f32.mrf.mxu1 }
 0x3ca   :  { %v2886_v13 = vpop.f32.mrf.mxu2 }
 0x3cb   :  { %v2887_v18 = vadd.f32 %v2886_v13, %v6888_v61 }
 0x3cd   :  { %v2936_v33 = vadd.f32 %v2935_v48, %v2887_v18  ;;  %v5964_v48 = vld [vmem:[%s7429_s3 + $0x70] sm:$0xff]  ;;  %v5955_v18 = vld [vmem:[%s7429_s3 + $0x28] sm:$0xff] }
 0x3ce   :  { %4464 = vmatpush.bf16.msrb.mxu3 %v5964_v48 }
 0x3d1   :  { %v2860_v55 = vpop.f32.mrf.mxu1 }
 0x3d2   :  { %v6920_v37 = vadd.f32 %v2860_v55, %v6863_v8  ;;  %v2770_v8 = vadd.f32 %v2769_v25, %v6871_v39  ;;  %v2889_v28 = vpop.f32.mrf.mxu2  ;;  %v6016_v55 = vld [vmem:[%s7429_s3 + $0x210] sm:$0xff] }
 0x3d3   :  { %4559 = vmatpush.bf16.msrb.mxu0 %v6016_v55 }
 0x3d4   :  { %3006 = vmatmul.bf16.gmra.mxu1 %v1876_v7  ;;  %v2819_v40 = vadd.f32 %v2818_v51, %v2770_v8  ;;  %v2885_v51 = vadd.f32 %v2884_v56, %v6885_v58  ;;  %v5957_v7 = vld [vmem:[%s7429_s3 + $0x38] sm:$0xff] }
 0x3d5   :  { %4450 = vmatpush.bf16.msrb.mxu2 %v5957_v7 }
 0x3d6   :  { %v2934_v5 = vadd.f32 %v2933_v16, %v2885_v51 }
 0x3d9   :  { %v2862_v23 = vpop.f32.mrf.mxu1 }
 0x3da   :  { %v6924_v27 = vadd.f32 %v2862_v23, %v2814_v0  ;;  %v2891_v25 = vpop.f32.mrf.mxu2 }
 0x3e1   :  { %v2865_v15 = vpop.f32.mrf.mxu1 }
 0x3e2   :  { %v6927_v4 = vadd.f32 %v2865_v15, %v6873_v49  ;;  %v2938_v49 = vpop.f32.mrf.mxu3  ;;  %v2894_v57 = vpop.f32.mrf.mxu2 }
 0x3e3   :  { %v2895_v7 = vadd.f32 %v2894_v57, %v6897_v19  ;;  %v2608_v19 = vadd.f32 %v6680_v3, %v6678_v2 }
 0x3e4   :  { %3011 = vmatmul.bf16.gmra.mxu1 %v1886_v9 }
 0x3e9   :  { %v2867_v47 = vpop.f32.mrf.mxu1 }
 0x3ea   :  { %v6930_v17 = vadd.f32 %v2867_v47, %v2819_v40  ;;  %v2940_v60 = vpop.f32.mrf.mxu3  ;;  %v2890_v40 = vadd.f32 %v2889_v28, %v6891_v11  ;;  %v2896_v61 = vpop.f32.mrf.mxu2 }
 0x3eb   :  { %v2897_v57 = vadd.f32 %v2896_v61, %v6900_v35 }
 0x3ec   :  { %v2939_v13 = vadd.f32 %v2938_v49, %v2890_v40 }
 0x3f1   :  { %v2977_v38 = vpop.f32.mrf.mxu1 }
 0x3f2   :  { %v2978_v43 = vadd.f32 %v2977_v38, %v2929_v20  ;;  %v2943_v16 = vpop.f32.mrf.mxu3  ;;  %v5956_v38 = vld [vmem:[%s7429_s3 + $0x30] sm:$0xff] }
 0x3f3   :  { %4451 = vmatpush.bf16.msrb.mxu2 %v5956_v38 }
 0x3f4   :  { %v3017_v36 = vmax.f32 %v2978_v43, 0.0 }
 0x3f6   :  { %3033 = vst [vmem:[#allocation5] sm:$0xff] %v3017_v36  ;;  %v2892_v36 = vadd.f32 %v2891_v25, %v6894_v32  ;;  %v2944_v32 = vadd.f32 %v2943_v16, %v2895_v7 }
 0x3f7   :  { %4452 = vmatpush.bf16.msrb.mxu2 %v5955_v18 }
 0x3f8   :  { %v2941_v51 = vadd.f32 %v2940_v60, %v2892_v36  ;;  %v5963_v60 = vld [vmem:[%s7429_s3 + $0x68] sm:$0xff] }
 0x3f9   :  { %v2979_v39 = vpop.f32.mrf.mxu1  ;;  %4465 = vmatpush.bf16.msrb.mxu3 %v5963_v60 }
 0x3fa   :  { %v2980_v44 = vadd.f32 %v2979_v39, %v2931_v59  ;;  %v2945_v59 = vpop.f32.mrf.mxu3 }
 0x3fb   :  { %v2946_v16 = vadd.f32 %v2945_v59, %v2897_v57  ;;  %v5951_v57 = vld [vmem:[%s7429_s3 + $0x8] sm:$0xff] }
 0x3fc   :  { %v3018_v45 = vmax.f32 %v2980_v44, 0.0 }
 0x3fd   :  { %v3049_v26 = vld [vmem:[#allocation5] ss:$2 sm:$0xf]  ;;  %v3065_v58 = vld [vmem:[#allocation5 + $0x1] ss:$2 sm:$0xf] }
 0x3fe   :  { %3034 = vst [vmem:[#allocation5 + $0x8] sm:$0xff] %v3018_v45  ;;  %v3080_v56 = vmax.f32 %v3049_v26, %v3065_v58  ;;  %v2899_v45 = vpop.f32.mrf.mxu2 }
 0x3ff   :  { %v2900_v35 = vadd.f32 %v2899_v45, %v6903_v24 }
 0x401   :  { %v2982_v63 = vpop.f32.mrf.mxu1 }
 0x402   :  { %v2983_v10 = vadd.f32 %v2982_v63, %v2934_v5  ;;  %v2948_v55 = vpop.f32.mrf.mxu3 }
 0x403   :  { %v2949_v38 = vadd.f32 %v2948_v55, %v2900_v35  ;;  %v5961_v55 = vld [vmem:[%s7429_s3 + $0x58] sm:$0xff]  ;;  %v5958_v35 = vld [vmem:[%s7429_s3 + $0x40] sm:$0xff] }
 0x404   :  { %v3019_v0 = vmax.f32 %v2983_v10, 0.0 }
 0x405   :  { %v3089_v1 = vld [vmem:[#allocation5 + $0x8] ss:$2 sm:$0xf]  ;;  %v3105_v23 = vld [vmem:[#allocation5 + $0x9] ss:$2 sm:$0xf] }
 0x406   :  { %v3120_v14 = vmax.f32 %v3089_v1, %v3105_v23  ;;  %3035 = vst [vmem:[#allocation5 + $0x10] sm:$0xff] %v3019_v0  ;;  %v2901_v26 = vpop.f32.mrf.mxu2 }
 0x408   :  { %v3128_v9 = vmax.f32 %v3080_v56, %v3120_v14 }
 0x409   :  { %v2984_v15 = vpop.f32.mrf.mxu1 }
 0x40a   :  { %3136 = vst [vmem:[#allocation6] sm:$0xf] %v3128_v9  ;;  %v2985_v8 = vadd.f32 %v2984_v15, %v2936_v33  ;;  %v2657_v15 = vadd.f32 %v6685_v12, %v2608_v19 }
 0x40c   :  { %v3020_v47 = vmax.f32 %v2985_v8, 0.0  ;;  %v2950_v8 = vpop.f32.mrf.mxu3 }
 0x40d   :  { %v3051_v43 = vld [vmem:[#allocation5 + $0x10] ss:$2 sm:$0xf]  ;;  %v3067_v54 = vld [vmem:[#allocation5 + $0x11] ss:$2 sm:$0xf] }
 0x40e   :  { %3036 = vst [vmem:[#allocation5 + $0x18] sm:$0xff] %v3020_v47  ;;  %v3081_v39 = vmax.f32 %v3051_v43, %v3067_v54  ;;  %v2904_v61 = vpop.f32.mrf.mxu2 }
 0x40f   :  { %v2905_v7 = vadd.f32 %v2904_v61, %v6911_v41  ;;  %v5952_v41 = vld [vmem:[%s7429_s3 + $0x10] sm:$0xff]  ;;  %v5973_v61 = vld [vmem:[%s7429_s3 + $0xb8] sm:$0xff] }
 0x411   :  { %v2987_v52 = vpop.f32.mrf.mxu1 }
 0x412   :  { %v2988_v20 = vadd.f32 %v2987_v52, %v2939_v13  ;;  %v2706_v13 = vadd.f32 %v6831_v62, %v2657_v15  ;;  %v2613_v62 = vadd.f32 %v6725_v22, %v6723_v21  ;;  %v5954_v21 = vld [vmem:[%s7429_s3 + $0x20] sm:$0xff] }
 0x413   :  { %v5962_v22 = vld [vmem:[%s7429_s3 + $0x60] sm:$0xff]  ;;  %4453 = vmatpush.bf16.msrb.mxu2 %v5954_v21 }
 0x414   :  { %v3021_v11 = vmax.f32 %v2988_v20, 0.0  ;;  %v2755_v3 = vadd.f32 %v6838_v6, %v2706_v13  ;;  %v2953_v43 = vpop.f32.mrf.mxu3  ;;  %4466 = vmatpush.bf16.msrb.mxu3 %v5962_v22 }
 0x415   :  { %v3091_v28 = vld [vmem:[#allocation5 + $0x18] ss:$2 sm:$0xf]  ;;  %v3107_v49 = vld [vmem:[#allocation5 + $0x19] ss:$2 sm:$0xf] }
 0x416   :  { %v3121_v44 = vmax.f32 %v3091_v28, %v3107_v49  ;;  %3037 = vst [vmem:[#allocation5 + $0x20] sm:$0xff] %v3021_v11  ;;  %v2804_v20 = vadd.f32 %v6840_v31, %v2755_v3  ;;  %v2906_v49 = vpop.f32.mrf.mxu2  ;;  %v2662_v31 = vadd.f32 %v6730_v34, %v2613_v62  ;;  %v5950_v3 = vld [vmem:[%s7429_s3] sm:$0xff] }
 0x418   :  { %v3129_v5 = vmax.f32 %v3081_v39, %v3121_v44  ;;  %v2853_v12 = vadd.f32 %v6908_v29, %v2804_v20  ;;  %4467 = vmatpush.bf16.msrb.mxu3 %v5961_v55 }
 0x419   :  { %v2989_v63 = vpop.f32.mrf.mxu1 }
 0x41a   :  { %3137 = vst [vmem:[#allocation6 + $0x4] sm:$0xf] %v3129_v5  ;;  %v2990_v10 = vadd.f32 %v2989_v63, %v2941_v51  ;;  %v2902_v11 = vadd.f32 %v2901_v26, %v2853_v12  ;;  %v2711_v5 = vadd.f32 %v6843_v30, %v2662_v31  ;;  %v5953_v30 = vld [vmem:[%s7429_s3 + $0x18] sm:$0xff] }
 0x41b   :  { %4454 = vmatpush.bf16.msrb.mxu2 %v5953_v30  ;;  %v6029_v12 = vld [vmem:[%s7429_s3 + $0x278] sm:$0xff] }
 0x41c   :  { %v3022_v46 = vmax.f32 %v2990_v10, 0.0  ;;  %v2951_v51 = vadd.f32 %v2950_v8, %v2902_v11  ;;  %v2760_v10 = vadd.f32 %v6853_v50, %v2711_v5  ;;  %v2955_v34 = vpop.f32.mrf.mxu3  ;;  %4567 = vmatpush.bf16.msra.mxu1 %v6029_v12  ;;  %v5980_v5 = vld [vmem:[%s7429_s3 + $0xf0] sm:$0xff] }
 0x41d   :  { %v3053_v0 = vld [vmem:[#allocation5 + $0x20] ss:$2 sm:$0xf]  ;;  %v3069_v1 = vld [vmem:[#allocation5 + $0x21] ss:$2 sm:$0xf] }
 0x41e   :  { %3038 = vst [vmem:[#allocation5 + $0x28] sm:$0xff] %v3022_v46  ;;  %v3082_v33 = vmax.f32 %v3053_v0, %v3069_v1  ;;  %v2909_v26 = vpop.f32.mrf.mxu2 }
 0x41f   :  { %4455 = vmatpush.bf16.msrb.mxu2 %v5952_v41  ;;  %v2910_v13 = vadd.f32 %v2909_v26, %v6920_v37 }
 0x421   :  { %v2992_v25 = vpop.f32.mrf.mxu1 }
 0x422   :  { %v2993_v58 = vadd.f32 %v2992_v25, %v2944_v32  ;;  %v2809_v32 = vadd.f32 %v6855_v42, %v2760_v10  ;;  %v2954_v25 = vadd.f32 %v2953_v43, %v2905_v7  ;;  %v3144_v43 = vld [vmem:[#allocation6] sm:$0x1] }
 0x423   :  { %4456 = vmatpush.bf16.msrb.mxu2 %v5951_v57 }
 0x424   :  { %v3023_v23 = vmax.f32 %v2993_v58, 0.0  ;;  %v5960_v58 = vld [vmem:[%s7429_s3 + $0x50] sm:$0xff]  ;;  %v2858_v18 = vadd.f32 %v6913_v53, %v2809_v32 }
 0x425   :  { %v3093_v56 = vld [vmem:[#allocation5 + $0x28] ss:$2 sm:$0xf]  ;;  %v3109_v14 = vld [vmem:[#allocation5 + $0x29] ss:$2 sm:$0xf]  ;;  %4468 = vmatpush.bf16.msrb.mxu3 %v5960_v58 }
 0x426   :  { %v3122_v9 = vmax.f32 %v3093_v56, %v3109_v14  ;;  %3039 = vst [vmem:[#allocation5 + $0x30] sm:$0xff] %v3023_v23  ;;  %v2907_v19 = vadd.f32 %v2906_v49, %v2858_v18  ;;  %v5959_v23 = vld [vmem:[%s7429_s3 + $0x48] sm:$0xff] }
 0x427   :  { %4457 = vmatpush.bf16.msrb.mxu2 %v5950_v3  ;;  %v5969_v3 = vld [vmem:[%s7429_s3 + $0x98] sm:$0xff] }
 0x428   :  { %v3130_v40 = vmax.f32 %v3082_v33, %v3122_v9  ;;  %v2958_v33 = vpop.f32.mrf.mxu3  ;;  %v2956_v15 = vadd.f32 %v2955_v34, %v2907_v19 }
 0x429   :  { %v2994_v47 = vpop.f32.mrf.mxu1  ;;  %4469 = vmatpush.bf16.msrb.mxu3 %v5959_v23  ;;  %v2959_v20 = vadd.f32 %v2958_v33, %v2910_v13 }
 0x42a   :  { %3138 = vst [vmem:[#allocation6 + $0x8] sm:$0xf] %v3130_v40  ;;  %v2995_v2 = vadd.f32 %v2994_v47, %v2946_v16  ;;  %v2911_v40 = vpop.f32.mrf.mxu2 }
 0x42b   :  { %4476 = vmatpush.bf16.msra.mxu2 %v5973_v61  ;;  %v5977_v61 = vld [vmem:[%s7429_s3 + $0xd8] sm:$0xff] }
 0x42c   :  { %v3024_v52 = vmax.f32 %v2995_v2, 0.0 }
 0x42d   :  { %v3055_v36 = vld [vmem:[#allocation5 + $0x30] ss:$2 sm:$0xf]  ;;  %v3071_v59 = vld [vmem:[#allocation5 + $0x31] ss:$2 sm:$0xf]  ;;  %4470 = vmatpush.bf16.msrb.mxu3 %v5958_v35 }
 0x42e   :  { %3040 = vst [vmem:[#allocation5 + $0x38] sm:$0xff] %v3024_v52  ;;  %v3083_v39 = vmax.f32 %v3055_v36, %v3071_v59  ;;  %v5981_v52 = vld [vmem:[%s7429_s3 + $0xf8] sm:$0xff]  ;;  %v3176_v36 = vld [vmem:[#allocation6 + $0x2] sm:$0x1] }
 0x430   :  { %v2960_v37 = vpop.f32.mrf.mxu3 }
 0x431   :  { %v2997_v48 = vpop.f32.mrf.mxu1  ;;  %4489 = vmatpush.bf16.msra.mxu3 %v5981_v52 }
 0x432   :  { %v2998_v54 = vadd.f32 %v2997_v48, %v2949_v38  ;;  %v5972_v38 = vld [vmem:[%s7429_s3 + $0xb0] sm:$0xff]  ;;  %v6015_v48 = vld [vmem:[%s7429_s3 + $0x208] sm:$0xff] }
 0x433   :  { %4560 = vmatpush.bf16.msrb.mxu0 %v6015_v48  ;;  %4477 = vmatpush.bf16.msra.mxu2 %v5972_v38  ;;  %v5976_v38 = vld [vmem:[%s7429_s3 + $0xd0] sm:$0xff] }
 0x434   :  { %v3025_v6 = vmax.f32 %v2998_v54, 0.0  ;;  %v3163_v54 = vld [vmem:[#allocation6 + $0x1] sm:$0x1] }
 0x435   :  { %v3095_v28 = vld [vmem:[#allocation5 + $0x38] ss:$2 sm:$0xf]  ;;  %v3111_v24 = vld [vmem:[#allocation5 + $0x39] ss:$2 sm:$0xf]  ;;  %4490 = vmatpush.bf16.msra.mxu3 %v5980_v5 }
 0x436   :  { %v3123_v44 = vmax.f32 %v3095_v28, %v3111_v24  ;;  %3041 = vst [vmem:[#allocation5 + $0x40] sm:$0xff] %v3025_v6  ;;  %v3189_v28 = vld [vmem:[#allocation6 + $0x3] sm:$0x1] }
 0x438   :  { %v3131_v45 = vmax.f32 %v3083_v39, %v3123_v44 }
 0x439   :  { %v2999_v29 = vpop.f32.mrf.mxu1 }
 0x43a   :  { %3139 = vst [vmem:[#allocation6 + $0xc] sm:$0xf] %v3131_v45  ;;  %v3000_v63 = vadd.f32 %v2999_v29, %v2951_v51  ;;  %v2912_v51 = vadd.f32 %v2911_v40, %v6924_v27  ;;  %v5971_v27 = vld [vmem:[%s7429_s3 + $0xa8] sm:$0xff]  ;;  %v5978_v40 = vld [vmem:[%s7429_s3 + $0xe0] sm:$0xff] }
 0x43b   :  { %4478 = vmatpush.bf16.msra.mxu2 %v5971_v27 }
 0x43c   :  { %v3026_v46 = vmax.f32 %v3000_v63, 0.0  ;;  %v2914_v63 = vpop.f32.mrf.mxu2  ;;  %v2961_v57 = vadd.f32 %v2960_v37, %v2912_v51  ;;  %v5968_v37 = vld [vmem:[%s7429_s3 + $0x90] sm:$0xff] }
 0x43d   :  { %v3057_v0 = vld [vmem:[#allocation5 + $0x40] ss:$2 sm:$0xf]  ;;  %v3073_v1 = vld [vmem:[#allocation5 + $0x41] ss:$2 sm:$0xf]  ;;  %v2915_v13 = vadd.f32 %v2914_v63, %v6927_v4 }
 0x43e   :  { %3042 = vst [vmem:[#allocation5 + $0x48] sm:$0xff] %v3026_v46  ;;  %v3084_v9 = vmax.f32 %v3057_v0, %v3073_v1 }
 0x441   :  { %v3002_v50 = vpop.f32.mrf.mxu1 }
 0x442   :  { %v3003_v60 = vadd.f32 %v3002_v50, %v2954_v25 }
 0x444   :  { %v3027_v42 = vmax.f32 %v3003_v60, 0.0  ;;  %v2916_v35 = vpop.f32.mrf.mxu2 }
 0x445   :  { %v3097_v56 = vld [vmem:[#allocation5 + $0x48] ss:$2 sm:$0xf]  ;;  %v3113_v14 = vld [vmem:[#allocation5 + $0x49] ss:$2 sm:$0xf] }
 0x446   :  { %v3124_v53 = vmax.f32 %v3097_v56, %v3113_v14  ;;  %3043 = vst [vmem:[#allocation5 + $0x50] sm:$0xff] %v3027_v42  ;;  %v5979_v42 = vld [vmem:[%s7429_s3 + $0xe8] sm:$0xff] }
 0x447   :  { %4491 = vmatpush.bf16.msra.mxu3 %v5979_v42  ;;  %v5966_v42 = vld [vmem:[%s7429_s3 + $0x80] sm:$0xff] }
 0x448   :  { %v3132_v16 = vmax.f32 %v3084_v9, %v3124_v53  ;;  %v5970_v9 = vld [vmem:[%s7429_s3 + $0xa0] sm:$0xff]  ;;  %v6028_v53 = vld [vmem:[%s7429_s3 + $0x270] sm:$0xff] }
 0x449   :  { %v3004_v8 = vpop.f32.mrf.mxu1  ;;  %4568 = vmatpush.bf16.msra.mxu1 %v6028_v53  ;;  %4479 = vmatpush.bf16.msra.mxu2 %v5970_v9 }
 0x44a   :  { %3140 = vst [vmem:[#allocation6 + $0x10] sm:$0xf] %v3132_v16  ;;  %v3005_v47 = vadd.f32 %v3004_v8, %v2956_v15  ;;  %v2963_v15 = vpop.f32.mrf.mxu3 }
 0x44b   :  { %4492 = vmatpush.bf16.msra.mxu3 %v5978_v40  ;;  %v2964_v52 = vadd.f32 %v2963_v15, %v2915_v13  ;;  %v6014_v15 = vld [vmem:[%s7429_s3 + $0x200] sm:$0xff] }
 0x44c   :  { %v3028_v2 = vmax.f32 %v3005_v47, 0.0  ;;  %v6027_v47 = vld [vmem:[%s7429_s3 + $0x268] sm:$0xff]  ;;  %4561 = vmatpush.bf16.msrb.mxu0 %v6014_v15 }
 0x44d   :  { %v3059_v29 = vld [vmem:[#allocation5 + $0x50] ss:$2 sm:$0xf]  ;;  %v3075_v7 = vld [vmem:[#allocation5 + $0x51] ss:$2 sm:$0xf]  ;;  %4569 = vmatpush.bf16.msra.mxu1 %v6027_v47  ;;  %4480 = vmatpush.bf16.msra.mxu2 %v5969_v3 }
 0x44e   :  { %3044 = vst [vmem:[#allocation5 + $0x58] sm:$0xff] %v3028_v2  ;;  %v3085_v56 = vmax.f32 %v3059_v29, %v3075_v7  ;;  %v3242_v29 = vld [vmem:[#allocation6 + $0x7] sm:$0x1]  ;;  %v5989_v47 = vld [vmem:[%s7429_s3 + $0x138] sm:$0xff] }
 0x44f   :  { %4493 = vmatpush.bf16.msra.mxu3 %v5977_v61  ;;  %v5997_v3 = vld [vmem:[%s7429_s3 + $0x178] sm:$0xff]  ;;  %v6059_v15 = vld [vmem:[%s7429_s3 + $0x368] sm:$0xff] }
 0x451   :  { %v3145_v59 = vld [vmem:[#allocation6 + $0x10] sm:$0x1]  ;;  %v3164_v62 = vld [vmem:[#allocation6 + $0x11] sm:$0x1]  ;;  %v3177_v11 = vld [vmem:[#allocation6 + $0x12] sm:$0x1]  ;;  %v3007_v6 = vpop.f32.mrf.mxu1  ;;  %4481 = vmatpush.bf16.msra.mxu2 %v5968_v37 }
 0x452   :  { %v3152_v24 = vrot.slane %v3145_v59, 7  ;;  %v3169_v49 = vrot.slane %v3164_v62, 7  ;;  %v3182_v39 = vrot.slane %v3177_v11, 7  ;;  %v3190_v44 = vld [vmem:[#allocation6 + $0x13] sm:$0x1]  ;;  %v3008_v31 = vadd.f32 %v3007_v6, %v2959_v20  ;;  %v2965_v11 = vpop.f32.mrf.mxu3  ;;  %v5996_v37 = vld [vmem:[%s7429_s3 + $0x170] sm:$0xff] }
 0x453   :  { %v3195_v45 = vrot.slane %v3190_v44, 7  ;;  %v2917_v20 = vadd.f32 %v2916_v35, %v6930_v17  ;;  %v3216_v44 = vld [vmem:[#allocation6 + $0x5] sm:$0x1]  ;;  %4494 = vmatpush.bf16.msra.mxu3 %v5976_v38  ;;  %v6052_v35 = vld [vmem:[%s7429_s3 + $0x330] sm:$0xff] }
 0x454   :  { %v3154_v21 = vsel %vm3153_vm3, %v3152_v24, %v3144_v43  ;;  %v3170_v22 = vsel %vm3153_vm3, %v3169_v49, %v3163_v54  ;;  %v3183_v10 = vsel %vm3153_vm3, %v3182_v39, %v3176_v36  ;;  %v3029_v34 = vmax.f32 %v3008_v31, 0.0  ;;  %v3203_v54 = vld [vmem:[#allocation6 + $0x4] sm:$0x1]  ;;  %v3229_v31 = vld [vmem:[#allocation6 + $0x6] sm:$0x1] }
 0x455   :  { %v3156_v46 = vsel %vm3155_vm4, %v3152_v24, %v3154_v21  ;;  %v3171_v30 = vsel %vm3155_vm4, %v3169_v49, %v3170_v22  ;;  %v3184_v55 = vsel %vm3155_vm4, %v3182_v39, %v3183_v10  ;;  %v3196_v32 = vsel %vm3153_vm3, %v3195_v45, %v3189_v28  ;;  %v3099_v25 = vld [vmem:[#allocation5 + $0x58] ss:$2 sm:$0xf]  ;;  %v3115_v26 = vld [vmem:[#allocation5 + $0x59] ss:$2 sm:$0xf] }
 0x456   :  { %v3158_v50 = vsel %vm3157_vm5, %v3152_v24, %v3156_v46  ;;  %v3172_v41 = vsel %vm3157_vm5, %v3169_v49, %v3171_v30  ;;  %v3185_v58 = vsel %vm3157_vm5, %v3182_v39, %v3184_v55  ;;  %v3197_v18 = vsel %vm3155_vm4, %v3195_v45, %v3196_v32  ;;  %3045 = vst [vmem:[#allocation5 + $0x60] sm:$0xff] %v3029_v34  ;;  %v5975_v55 = vld [vmem:[%s7429_s3 + $0xc8] sm:$0xff] }
 0x457   :  { %v3160_v60 = vsel %vm3159_vm6, %v3152_v24, %v3158_v50  ;;  %v3173_v0 = vsel %vm3159_vm6, %v3169_v49, %v3172_v41  ;;  %v3186_v1 = vsel %vm3159_vm6, %v3182_v39, %v3185_v58  ;;  %v3198_v19 = vsel %vm3157_vm5, %v3195_v45, %v3197_v18  ;;  %v6026_v58 = vld [vmem:[%s7429_s3 + $0x260] sm:$0xff]  ;;  %4495 = vmatpush.bf16.msra.mxu3 %v5975_v55 }
 0x458   :  { %v3199_v23 = vsel %vm3159_vm6, %v3195_v45, %v3198_v19  ;;  %3162 = vst [vmem:[#allocation7] sm:$0x3] %v3160_v60  ;;  %v3125_v14 = vmax.f32 %v3099_v25, %v3115_v26  ;;  %v2966_v39 = vadd.f32 %v2965_v11, %v2917_v20  ;;  %v5967_v45 = vld [vmem:[%s7429_s3 + $0x88] sm:$0xff]  ;;  %4570 = vmatpush.bf16.msra.mxu1 %v6026_v58 }
 0x459   :  { %3175 = vst [vmem:[#allocation7 + $0x2] sm:$0x3] %v3173_v0  ;;  %v3009_v33 = vpop.f32.mrf.mxu1  ;;  %4482 = vmatpush.bf16.msra.mxu2 %v5967_v45 }
 0x45a   :  { %3188 = vst [vmem:[#allocation7 + $0x4] sm:$0x3] %v3186_v1  ;;  %v3133_v16 = vmax.f32 %v3085_v56, %v3125_v14  ;;  %v3010_v8 = vadd.f32 %v3009_v33, %v2961_v57  ;;  %v6025_v14 = vld [vmem:[%s7429_s3 + $0x258] sm:$0xff]  ;;  %v5974_v33 = vld [vmem:[%s7429_s3 + $0xc0] sm:$0xff] }
 0x45b   :  { %3201 = vst [vmem:[#allocation7 + $0x6] sm:$0x3] %v3199_v23  ;;  %4496 = vmatpush.bf16.msra.mxu3 %v5974_v33  ;;  %v5985_v33 = vld [vmem:[%s7429_s3 + $0x118] sm:$0xff] }
 0x45c   :  { %3141 = vst [vmem:[#allocation6 + $0x14] sm:$0xf] %v3133_v16  ;;  %v3030_v2 = vmax.f32 %v3010_v8, 0.0  ;;  %v6053_v16 = vld [vmem:[%s7429_s3 + $0x338] sm:$0xff]  ;;  %4571 = vmatpush.bf16.msra.mxu1 %v6025_v14  ;;  %v6024_v8 = vld [vmem:[%s7429_s3 + $0x250] sm:$0xff] }
 0x45d   :  { %v3061_v48 = vld [vmem:[#allocation5 + $0x60] ss:$2 sm:$0xf]  ;;  %v3077_v12 = vld [vmem:[#allocation5 + $0x61] ss:$2 sm:$0xf]  ;;  %4483 = vmatpush.bf16.msra.mxu2 %v5966_v42  ;;  %4606 = vmatpush.bf16.msra.mxu0 %v6053_v16 }
 0x45e   :  { %3046 = vst [vmem:[#allocation5 + $0x68] sm:$0xff] %v3030_v2  ;;  %v3086_v22 = vmax.f32 %v3061_v48, %v3077_v12  ;;  %v6022_v48 = vld [vmem:[%s7429_s3 + $0x240] sm:$0xff]  ;;  %v6051_v12 = vld [vmem:[%s7429_s3 + $0x328] sm:$0xff] }
 0x460   :  { %4572 = vmatpush.bf16.msra.mxu1 %v6024_v8  ;;  %v6048_v8 = vld [vmem:[%s7429_s3 + $0x310] sm:$0xff] }
 0x461   :  { %v3012_v4 = vpop.f32.mrf.mxu1  ;;  %4607 = vmatpush.bf16.msra.mxu0 %v6052_v35 }
 0x462   :  { %v3013_v43 = vadd.f32 %v3012_v4, %v2964_v52  ;;  %v3361_v32 = vld [vmem:[#allocation7] sm:$0xff]  ;;  %v5988_v4 = vld [vmem:[%s7429_s3 + $0x130] sm:$0xff] }
 0x463   :  { %v3204_v36 = vld [vmem:[#allocation6 + $0x14] sm:$0x1]  ;;  %v3217_v59 = vld [vmem:[#allocation6 + $0x15] sm:$0x1]  ;;  %v3230_v62 = vld [vmem:[#allocation6 + $0x16] sm:$0x1] }
 0x464   :  { %v3209_v17 = vrot.slane %v3204_v36, 7  ;;  %v3222_v6 = vrot.slane %v3217_v59, 7  ;;  %v3235_v28 = vrot.slane %v3230_v62, 7  ;;  %v3243_v24 = vld [vmem:[#allocation6 + $0x17] sm:$0x1]  ;;  %v3031_v49 = vmax.f32 %v3013_v43, 0.0 }
 0x465   :  { %v3248_v51 = vrot.slane %v3243_v24, 7  ;;  %v3101_v10 = vld [vmem:[#allocation5 + $0x68] ss:$2 sm:$0xf]  ;;  %3369 = vst [vmem:[#allocation1] ss:$4 sm:$0xff] %v3361_v32  ;;  %4608 = vmatpush.bf16.msra.mxu0 %v6051_v12 }
 0x466   :  { %v3210_v5 = vsel %vm3153_vm3, %v3209_v17, %v3203_v54  ;;  %v3223_v63 = vsel %vm3153_vm3, %v3222_v6, %v3216_v44  ;;  %v3236_v21 = vsel %vm3153_vm3, %v3235_v28, %v3229_v31  ;;  %3047 = vst [vmem:[#allocation5 + $0x70] sm:$0xff] %v3031_v49  ;;  %v3117_v30 = vld [vmem:[#allocation5 + $0x69] ss:$2 sm:$0xf]  ;;  %v6023_v52 = vld [vmem:[%s7429_s3 + $0x248] sm:$0xff] }
 0x467   :  { %v3211_v7 = vsel %vm3155_vm4, %v3209_v17, %v3210_v5  ;;  %v3224_v34 = vsel %vm3155_vm4, %v3222_v6, %v3223_v63  ;;  %v3237_v27 = vsel %vm3155_vm4, %v3235_v28, %v3236_v21  ;;  %v3249_v46 = vsel %vm3153_vm3, %v3248_v51, %v3242_v29  ;;  %v3256_v43 = vld [vmem:[#allocation6 + $0x8] sm:$0x1]  ;;  %v3269_v54 = vld [vmem:[#allocation6 + $0x9] sm:$0x1]  ;;  %v3282_v36 = vld [vmem:[#allocation6 + $0xa] sm:$0x1]  ;;  %4573 = vmatpush.bf16.msra.mxu1 %v6023_v52 }
 0x468   :  { %v3212_v25 = vsel %vm3157_vm5, %v3209_v17, %v3211_v7  ;;  %v3225_v26 = vsel %vm3157_vm5, %v3222_v6, %v3224_v34  ;;  %v3238_v50 = vsel %vm3157_vm5, %v3235_v28, %v3237_v27  ;;  %v3250_v41 = vsel %vm3155_vm4, %v3248_v51, %v3249_v46  ;;  %v5995_v29 = vld [vmem:[%s7429_s3 + $0x168] sm:$0xff]  ;;  %v3335_v12 = vld [vmem:[#allocation6 + $0xe] sm:$0x1] }
 0x469   :  { %v3213_v18 = vsel %vm3159_vm6, %v3209_v17, %v3212_v25  ;;  %v3226_v60 = vsel %vm3159_vm6, %v3222_v6, %v3225_v26  ;;  %v3239_v0 = vsel %vm3159_vm6, %v3235_v28, %v3238_v50  ;;  %v3251_v1 = vsel %vm3157_vm5, %v3248_v51, %v3250_v41  ;;  %v3014_v19 = vpop.f32.mrf.mxu1  ;;  %v5987_v17 = vld [vmem:[%s7429_s3 + $0x128] sm:$0xff]  ;;  %v5986_v41 = vld [vmem:[%s7429_s3 + $0x120] sm:$0xff] }
 0x46a   :  { %v3252_v57 = vsel %vm3159_vm6, %v3248_v51, %v3251_v1  ;;  %3215 = vst [vmem:[#allocation7 + $0x8] sm:$0x3] %v3213_v18  ;;  %v3126_v23 = vmax.f32 %v3101_v10, %v3117_v30  ;;  %v3015_v56 = vadd.f32 %v3014_v19, %v2966_v39  ;;  %v3295_v10 = vld [vmem:[#allocation6 + $0xb] sm:$0x1]  ;;  %v6050_v30 = vld [vmem:[%s7429_s3 + $0x320] sm:$0xff] }
 0x46b   :  { %3228 = vst [vmem:[#allocation7 + $0xa] sm:$0x3] %v3226_v60  ;;  %4574 = vmatpush.bf16.msra.mxu1 %v6022_v48  ;;  %v5994_v60 = vld [vmem:[%s7429_s3 + $0x160] sm:$0xff]  ;;  %v6060_v19 = vld [vmem:[%s7429_s3 + $0x370] sm:$0xff]  ;;  %4609 = vmatpush.bf16.msra.mxu0 %v6050_v30 }
 0x46c   :  { %3241 = vst [vmem:[#allocation7 + $0xc] sm:$0x3] %v3239_v0  ;;  %v3134_v9 = vmax.f32 %v3086_v22, %v3126_v23  ;;  %v3032_v53 = vmax.f32 %v3015_v56, 0.0  ;;  %v3372_v40 = vld.sshfl [vmem:[#allocation1] sm:$0xff pattern:$0x73625140] }
 0x46d   :  { %3254 = vst [vmem:[#allocation7 + $0xe] sm:$0x3] %v3252_v57  ;;  %v3406_v13 = vpack.c.bf16 %v3372_v40, %v3372_v40  ;;  %v3373_v2 = vld.sshfl [vmem:[#allocation1 + $0x8] sm:$0xff pattern:$0x73625140]  ;;  %v6061_v22 = vld [vmem:[%s7429_s3 + $0x378] sm:$0xff] }
 0x46e   :  { %3142 = vst [vmem:[#allocation6 + $0x18] sm:$0xf] %v3134_v9  ;;  %v3407_v61 = vpack.c.bf16 %v3373_v2, %v3373_v2  ;;  %v3063_v20 = vld [vmem:[#allocation5 + $0x70] ss:$2 sm:$0xf]  ;;  %v5984_v40 = vld [vmem:[%s7429_s3 + $0x110] sm:$0xff] }
 0x46f   :  { %3048 = vst [vmem:[#allocation5 + $0x78] sm:$0xff] %v3032_v53  ;;  %4458 = vmatmul.bf16.vlgmr.msrb.gmra.mxu2 %v3406_v13  ;;  %v3079_v38 = vld [vmem:[#allocation5 + $0x71] ss:$2 sm:$0xf]  ;;  %4619 = vmatpush.bf16.msrb.mxu1 %v6061_v22  ;;  %v6058_v13 = vld [vmem:[%s7429_s3 + $0x360] sm:$0xff] }
 0x470   :  { %4471 = vmatmul.bf16.vlgmr.msrb.gmra.mxu3 %v3407_v61  ;;  %4502 = vmatpush.bf16.msrb.mxu2 %v5989_v47  ;;  %v3087_v31 = vmax.f32 %v3063_v20, %v3079_v38  ;;  %v3374_v42 = vld.sshfl [vmem:[#allocation1 + $0x10] sm:$0xff pattern:$0x73625140]  ;;  %v6049_v23 = vld [vmem:[%s7429_s3 + $0x318] sm:$0xff]  ;;  %v6047_v38 = vld [vmem:[%s7429_s3 + $0x308] sm:$0xff] }
 0x471   :  { %4515 = vmatpush.bf16.msrb.mxu3 %v5997_v3  ;;  %v3375_v14 = vld.sshfl [vmem:[#allocation1 + $0x18] sm:$0xff pattern:$0x73625140]  ;;  %v3408_v9 = vpack.c.bf16 %v3374_v42, %v3374_v42  ;;  %4610 = vmatpush.bf16.msra.mxu0 %v6049_v23  ;;  %v5992_v47 = vld [vmem:[%s7429_s3 + $0x150] sm:$0xff]  ;;  %v6011_v23 = vld [vmem:[%s7429_s3 + $0x1e8] sm:$0xff] }
 0x472   :  { %v5993_v53 = vld [vmem:[%s7429_s3 + $0x158] sm:$0xff]  ;;  %v3409_v16 = vpack.c.bf16 %v3375_v14, %v3375_v14  ;;  %v3309_v2 = vld [vmem:[#allocation6 + $0xc] sm:$0x1]  ;;  %v3322_v48 = vld [vmem:[#allocation6 + $0xd] sm:$0x1] }
 0x473   :  { %4620 = vmatpush.bf16.msrb.mxu1 %v6060_v19  ;;  %v6055_v19 = vld [vmem:[%s7429_s3 + $0x348] sm:$0xff] }
 0x474   :  { %v3362_v39 = vld [vmem:[#allocation7 + $0x8] sm:$0xff]  ;;  %4503 = vmatpush.bf16.msrb.mxu2 %v5988_v4 }
 0x475   :  { %v3257_v59 = vld [vmem:[#allocation6 + $0x18] sm:$0x1]  ;;  %v3270_v62 = vld [vmem:[#allocation6 + $0x19] sm:$0x1]  ;;  %v3283_v11 = vld [vmem:[#allocation6 + $0x1a] sm:$0x1]  ;;  %4516 = vmatpush.bf16.msrb.mxu3 %v5996_v37  ;;  %4611 = vmatpush.bf16.msra.mxu0 %v6048_v8 }
 0x476   :  { %v3262_v6 = vrot.slane %v3257_v59, 7  ;;  %v3275_v28 = vrot.slane %v3270_v62, 7  ;;  %v3288_v24 = vrot.slane %v3283_v11, 7  ;;  %v3296_v49 = vld [vmem:[#allocation6 + $0x1b] sm:$0x1] }
 0x477   :  { %v3301_v44 = vrot.slane %v3296_v49, 7  ;;  %v3103_v51 = vld [vmem:[#allocation5 + $0x78] ss:$2 sm:$0xf]  ;;  %3371 = vst [vmem:[#allocation1 + $0x20] ss:$4 sm:$0xff] %v3362_v39  ;;  %4621 = vmatpush.bf16.msrb.mxu1 %v6059_v15 }
 0x478   :  { %v3119_v45 = vld [vmem:[#allocation5 + $0x79] ss:$2 sm:$0xf]  ;;  %v3263_v5 = vsel %vm3153_vm3, %v3262_v6, %v3256_v43  ;;  %v3276_v63 = vsel %vm3153_vm3, %v3275_v28, %v3269_v54  ;;  %v3289_v21 = vsel %vm3153_vm3, %v3288_v24, %v3282_v36  ;;  %4504 = vmatpush.bf16.msrb.mxu2 %v5987_v17  ;;  %v5983_v36 = vld [vmem:[%s7429_s3 + $0x108] sm:$0xff]  ;;  %v3348_v17 = vld [vmem:[#allocation6 + $0xf] sm:$0x1] }
 0x479   :  { %v3127_v7 = vmax.f32 %v3103_v51, %v3119_v45  ;;  %v3264_v34 = vsel %vm3155_vm4, %v3262_v6, %v3263_v5  ;;  %v3277_v27 = vsel %vm3155_vm4, %v3275_v28, %v3276_v63  ;;  %v3290_v46 = vsel %vm3155_vm4, %v3288_v24, %v3289_v21  ;;  %4517 = vmatpush.bf16.msrb.mxu3 %v5995_v29  ;;  %v6057_v39 = vld [vmem:[%s7429_s3 + $0x358] sm:$0xff]  ;;  %v6046_v29 = vld [vmem:[%s7429_s3 + $0x300] sm:$0xff] }
 0x47a   :  { %v3265_v55 = vsel %vm3157_vm5, %v3262_v6, %v3264_v34  ;;  %v3278_v32 = vsel %vm3157_vm5, %v3275_v28, %v3277_v27  ;;  %v3291_v25 = vsel %vm3157_vm5, %v3288_v24, %v3290_v46  ;;  %v3302_v26 = vsel %vm3153_vm3, %v3301_v44, %v3295_v10  ;;  %4612 = vmatpush.bf16.msra.mxu0 %v6047_v38  ;;  %v5982_v10 = vld [vmem:[%s7429_s3 + $0x100] sm:$0xff]  ;;  %v6005_v27 = vld [vmem:[%s7429_s3 + $0x1b8] sm:$0xff] }
 0x47b   :  { %v3135_v50 = vmax.f32 %v3087_v31, %v3127_v7  ;;  %v3266_v58 = vsel %vm3159_vm6, %v3262_v6, %v3265_v55  ;;  %v3279_v18 = vsel %vm3159_vm6, %v3275_v28, %v3278_v32  ;;  %v3292_v0 = vsel %vm3159_vm6, %v3288_v24, %v3291_v25  ;;  %v5991_v6 = vld [vmem:[%s7429_s3 + $0x148] sm:$0xff]  ;;  %4622 = vmatpush.bf16.msrb.mxu1 %v6058_v13  ;;  %v5990_v34 = vld [vmem:[%s7429_s3 + $0x140] sm:$0xff]  ;;  %v6013_v46 = vld [vmem:[%s7429_s3 + $0x1f8] sm:$0xff] }
 0x47c   :  { %3268 = vst [vmem:[#allocation7 + $0x10] sm:$0x3] %v3266_v58  ;;  %v3303_v1 = vsel %vm3155_vm4, %v3301_v44, %v3302_v26  ;;  %4505 = vmatpush.bf16.msrb.mxu2 %v5986_v41  ;;  %v6056_v32 = vld [vmem:[%s7429_s3 + $0x350] sm:$0xff]  ;;  %v6001_v15 = vld [vmem:[%s7429_s3 + $0x198] sm:$0xff] }
 0x47d   :  { %3143 = vst [vmem:[#allocation6 + $0x1c] sm:$0xf] %v3135_v50  ;;  %v3304_v57 = vsel %vm3157_vm5, %v3301_v44, %v3303_v1  ;;  %4518 = vmatpush.bf16.msrb.mxu3 %v5994_v60  ;;  %v6004_v60 = vld [vmem:[%s7429_s3 + $0x1b0] sm:$0xff] }
 0x47e   :  { %3281 = vst [vmem:[#allocation7 + $0x12] sm:$0x3] %v3279_v18  ;;  %v3305_v56 = vsel %vm3159_vm6, %v3301_v44, %v3304_v57  ;;  %v3376_v55 = vld.sshfl [vmem:[#allocation1 + $0x20] sm:$0xff pattern:$0x73625140]  ;;  %4613 = vmatpush.bf16.msra.mxu0 %v6046_v29  ;;  %v6012_v1 = vld [vmem:[%s7429_s3 + $0x1f0] sm:$0xff] }
 0x47f   :  { %3294 = vst [vmem:[#allocation7 + $0x14] sm:$0x3] %v3292_v0  ;;  %4484 = vmatmul.bf16.vlgmr.msra.gmra.mxu2 %v3408_v9  ;;  %4623 = vmatpush.bf16.msrb.mxu1 %v6057_v39  ;;  %v3377_v25 = vld.sshfl [vmem:[#allocation1 + $0x28] sm:$0xff pattern:$0x73625140]  ;;  %v3410_v41 = vpack.c.bf16 %v3376_v55, %v3376_v55  ;;  %v6002_v9 = vld [vmem:[%s7429_s3 + $0x1a0] sm:$0xff] }
 0x480   :  { %3307 = vst [vmem:[#allocation7 + $0x16] sm:$0x3] %v3305_v56  ;;  %4497 = vmatmul.bf16.vlgmr.msra.gmra.mxu3 %v3409_v16  ;;  %4506 = vmatpush.bf16.msrb.mxu2 %v5985_v33  ;;  %v3411_v0 = vpack.c.bf16 %v3377_v25, %v3377_v25  ;;  %v3378_v42 = vld.sshfl [vmem:[#allocation1 + $0x30] sm:$0xff pattern:$0x73625140]  ;;  %v6003_v57 = vld [vmem:[%s7429_s3 + $0x1a8] sm:$0xff] }
 0x481   :  { %4519 = vmatpush.bf16.msrb.mxu3 %v5993_v53  ;;  %v3379_v14 = vld.sshfl [vmem:[#allocation1 + $0x38] sm:$0xff pattern:$0x73625140]  ;;  %v6054_v33 = vld [vmem:[%s7429_s3 + $0x340] sm:$0xff]  ;;  %v3412_v38 = vpack.c.bf16 %v3378_v42, %v3378_v42  ;;  %v6064_v55 = vld [vmem:[%s7429_s3 + $0x390] sm:$0xff] }
 0x482   :  { %v6010_v53 = vld [vmem:[%s7429_s3 + $0x1e0] sm:$0xff]  ;;  %v6009_v16 = vld [vmem:[%s7429_s3 + $0x1d8] sm:$0xff]  ;;  %v6063_v25 = vld [vmem:[%s7429_s3 + $0x388] sm:$0xff] }
 0x483   :  { %4624 = vmatpush.bf16.msrb.mxu1 %v6056_v32  ;;  %v6030_v39 = vld [vmem:[%s7429_s3 + $0x280] sm:$0xff]  ;;  %v6072_v32 = vld [vmem:[%s7429_s3 + $0x3d0] sm:$0xff] }
 0x484   :  { %v3310_v3 = vld [vmem:[#allocation6 + $0x1c] sm:$0x1]  ;;  %v3323_v35 = vld [vmem:[#allocation6 + $0x1d] sm:$0x1]  ;;  %v3336_v61 = vld [vmem:[#allocation6 + $0x1e] sm:$0x1]  ;;  %4507 = vmatpush.bf16.msrb.mxu2 %v5984_v40 }
 0x485   :  { %v3315_v52 = vrot.slane %v3310_v3, 7  ;;  %v3328_v20 = vrot.slane %v3323_v35, 7  ;;  %v3341_v4 = vrot.slane %v3336_v61, 7  ;;  %v3349_v37 = vld [vmem:[#allocation6 + $0x1f] sm:$0x1]  ;;  %4520 = vmatpush.bf16.msrb.mxu3 %v5992_v47  ;;  %v6008_v3 = vld [vmem:[%s7429_s3 + $0x1d0] sm:$0xff] }
 0x486   :  { %v3354_v43 = vrot.slane %v3349_v37, 7  ;;  %v5999_v35 = vld [vmem:[%s7429_s3 + $0x188] sm:$0xff]  ;;  %v6045_v37 = vld [vmem:[%s7429_s3 + $0x2f8] sm:$0xff] }
 0x487   :  { %v3363_v54 = vld [vmem:[#allocation7 + $0x10] sm:$0xff]  ;;  %v3316_v59 = vsel %vm3153_vm3, %v3315_v52, %v3309_v2  ;;  %v3329_v62 = vsel %vm3153_vm3, %v3328_v20, %v3322_v48  ;;  %v3342_v11 = vsel %vm3153_vm3, %v3341_v4, %v3335_v12  ;;  %4625 = vmatpush.bf16.msrb.mxu1 %v6055_v19  ;;  %v6000_v2 = vld [vmem:[%s7429_s3 + $0x190] sm:$0xff]  ;;  %v6007_v61 = vld [vmem:[%s7429_s3 + $0x1c8] sm:$0xff]  ;;  %v3413_v12 = vpack.c.bf16 %v3379_v14, %v3379_v14 }
 0x488   :  { %3380 = vst [vmem:[#allocation1] ss:$4 sm:$0xff] %v3363_v54  ;;  %v3317_v28 = vsel %vm3155_vm4, %v3315_v52, %v3316_v59  ;;  %v3330_v24 = vsel %vm3155_vm4, %v3328_v20, %v3329_v62  ;;  %v3343_v49 = vsel %vm3155_vm4, %v3341_v4, %v3342_v11  ;;  %v3355_v45 = vsel %vm3153_vm3, %v3354_v43, %v3348_v17  ;;  %v6036_v48 = vld [vmem:[%s7429_s3 + $0x2b0] sm:$0xff]  ;;  %v6035_v54 = vld [vmem:[%s7429_s3 + $0x2a8] sm:$0xff]  ;;  %v6034_v59 = vld [vmem:[%s7429_s3 + $0x2a0] sm:$0xff] }
 0x489   :  { %v3318_v44 = vsel %vm3157_vm5, %v3315_v52, %v3317_v28  ;;  %v3331_v31 = vsel %vm3157_vm5, %v3328_v20, %v3330_v24  ;;  %v3344_v51 = vsel %vm3157_vm5, %v3341_v4, %v3343_v49  ;;  %v3356_v22 = vsel %vm3155_vm4, %v3354_v43, %v3355_v45  ;;  %4508 = vmatpush.bf16.msrb.mxu2 %v5983_v36  ;;  %v6043_v36 = vld [vmem:[%s7429_s3 + $0x2e8] sm:$0xff]  ;;  %v6042_v62 = vld [vmem:[%s7429_s3 + $0x2e0] sm:$0xff]  ;;  %v6033_v11 = vld [vmem:[%s7429_s3 + $0x298] sm:$0xff] }
 0x48a   :  { %v3319_v5 = vsel %vm3159_vm6, %v3315_v52, %v3318_v44  ;;  %v3332_v63 = vsel %vm3159_vm6, %v3328_v20, %v3331_v31  ;;  %v3345_v21 = vsel %vm3159_vm6, %v3341_v4, %v3344_v51  ;;  %v3357_v7 = vsel %vm3157_vm5, %v3354_v43, %v3356_v22  ;;  %4521 = vmatpush.bf16.msrb.mxu3 %v5991_v6  ;;  %v5998_v52 = vld [vmem:[%s7429_s3 + $0x180] sm:$0xff]  ;;  %v6037_v4 = vld [vmem:[%s7429_s3 + $0x2b8] sm:$0xff]  ;;  %v6032_v6 = vld [vmem:[%s7429_s3 + $0x290] sm:$0xff] }
 0x48b   :  { %3321 = vst [vmem:[#allocation7 + $0x18] sm:$0x3] %v3319_v5  ;;  %v3358_v30 = vsel %vm3159_vm6, %v3354_v43, %v3357_v7  ;;  %4626 = vmatpush.bf16.msrb.mxu1 %v6054_v33  ;;  %v6006_v20 = vld [vmem:[%s7429_s3 + $0x1c0] sm:$0xff]  ;;  %v6044_v43 = vld [vmem:[%s7429_s3 + $0x2f0] sm:$0xff]  ;;  %v6041_v17 = vld [vmem:[%s7429_s3 + $0x2d8] sm:$0xff] }
 0x48c   :  { %3334 = vst [vmem:[#allocation7 + $0x1a] sm:$0x3] %v3332_v63  ;;  %v6040_v28 = vld [vmem:[%s7429_s3 + $0x2d0] sm:$0xff]  ;;  %v6031_v24 = vld [vmem:[%s7429_s3 + $0x288] sm:$0xff]  ;;  %v6038_v44 = vld [vmem:[%s7429_s3 + $0x2c0] sm:$0xff] }
 0x48d   :  { %3347 = vst [vmem:[#allocation7 + $0x1c] sm:$0x3] %v3345_v21  ;;  %4509 = vmatpush.bf16.msrb.mxu2 %v5982_v10  ;;  %v6039_v49 = vld [vmem:[%s7429_s3 + $0x2c8] sm:$0xff]  ;;  %v6069_v31 = vld [vmem:[%s7429_s3 + $0x3b8] sm:$0xff]  ;;  %v6068_v63 = vld [vmem:[%s7429_s3 + $0x3b0] sm:$0xff] }
 0x48e   :  { %3360 = vst [vmem:[#allocation7 + $0x1e] sm:$0x3] %v3358_v30  ;;  %4522 = vmatpush.bf16.msrb.mxu3 %v5990_v34  ;;  %v6077_v51 = vld [vmem:[%s7429_s3 + $0x3f8] sm:$0xff]  ;;  %v6076_v22 = vld [vmem:[%s7429_s3 + $0x3f0] sm:$0xff]  ;;  %v6067_v10 = vld [vmem:[%s7429_s3 + $0x3a8] sm:$0xff] }
 0x48f   :  { %v3382_v26 = vld.sshfl [vmem:[#allocation1] sm:$0xff pattern:$0x73625140]  ;;  %v3383_v50 = vld.sshfl [vmem:[#allocation1 + $0x8] sm:$0xff pattern:$0x73625140] }
 0x490   :  { %v3414_v58 = vpack.c.bf16 %v3382_v26, %v3382_v26  ;;  %v3415_v18 = vpack.c.bf16 %v3383_v50, %v3383_v50  ;;  %4510 = vmatmul.bf16.vlgmr.msrb.gmra.mxu2 %v3410_v41  ;;  %v3384_v45 = vld.sshfl [vmem:[#allocation1 + $0x10] sm:$0xff pattern:$0x73625140]  ;;  %v3385_v29 = vld.sshfl [vmem:[#allocation1 + $0x18] sm:$0xff pattern:$0x73625140] }
 0x491   :  { %4528 = vmatpush.bf16.msra.mxu2 %v6005_v27  ;;  %4523 = vmatmul.bf16.vlgmr.msrb.gmra.mxu3 %v3411_v0  ;;  %v3416_v5 = vpack.c.bf16 %v3384_v45, %v3384_v45  ;;  %v3417_v21 = vpack.c.bf16 %v3385_v29, %v3385_v29  ;;  %v6075_v7 = vld [vmem:[%s7429_s3 + $0x3e8] sm:$0xff]  ;;  %v6066_v34 = vld [vmem:[%s7429_s3 + $0x3a0] sm:$0xff]  ;;  %v6073_v30 = vld [vmem:[%s7429_s3 + $0x3d8] sm:$0xff] }
 0x492   :  { %4541 = vmatpush.bf16.msra.mxu3 %v6013_v46  ;;  %4562 = vmatmul.bf16.vlgmr.msrb.gmra.mxu0 %v3414_v58  ;;  %v6074_v27 = vld [vmem:[%s7429_s3 + $0x3e0] sm:$0xff]  ;;  %v6065_v46 = vld [vmem:[%s7429_s3 + $0x398] sm:$0xff]  ;;  %v6071_v26 = vld [vmem:[%s7429_s3 + $0x3c8] sm:$0xff] }
 0x493   :  { %4575 = vmatmul.bf16.vlgmr.msra.gmra.mxu1 %v3415_v18  ;;  %v6062_v50 = vld [vmem:[%s7429_s3 + $0x380] sm:$0xff] }
 0x494   :  { %v6070_v41 = vld [vmem:[%s7429_s3 + $0x3c0] sm:$0xff] }
 0x495   :  { %4529 = vmatpush.bf16.msra.mxu2 %v6004_v60  ;;  %v3364_v56 = vld [vmem:[#allocation7 + $0x18] sm:$0xff] }
 0x496   :  { %4542 = vmatpush.bf16.msra.mxu3 %v6012_v1  ;;  %3381 = vst [vmem:[#allocation1 + $0x20] ss:$4 sm:$0xff] %v3364_v56  ;;  %v6089_v1 = vld [vmem:[%s7430_s4] ss:$0 sm:$0xff] }
 0x499   :  { %4530 = vmatpush.bf16.msra.mxu2 %v6003_v57 }
 0x49a   :  { %4543 = vmatpush.bf16.msra.mxu3 %v6011_v23 }
 0x49d   :  { %4531 = vmatpush.bf16.msra.mxu2 %v6002_v9  ;;  %v3386_v8 = vld.sshfl [vmem:[#allocation1 + $0x20] sm:$0xff pattern:$0x73625140]  ;;  %v3387_v40 = vld.sshfl [vmem:[#allocation1 + $0x28] sm:$0xff pattern:$0x73625140] }
 0x49e   :  { %4544 = vmatpush.bf16.msra.mxu3 %v6010_v53  ;;  %v3418_v47 = vpack.c.bf16 %v3386_v8, %v3386_v8  ;;  %v3419_v13 = vpack.c.bf16 %v3387_v40, %v3387_v40  ;;  %v3388_v58 = vld.sshfl [vmem:[#allocation1 + $0x30] sm:$0xff pattern:$0x73625140]  ;;  %v3389_v18 = vld.sshfl [vmem:[#allocation1 + $0x38] sm:$0xff pattern:$0x73625140] }
 0x49f   :  { %v3420_v60 = vpack.c.bf16 %v3388_v58, %v3388_v58  ;;  %v3421_v0 = vpack.c.bf16 %v3389_v18, %v3389_v18 }
 0x4a1   :  { %4532 = vmatpush.bf16.msra.mxu2 %v6001_v15 }
 0x4a2   :  { %4545 = vmatpush.bf16.msra.mxu3 %v6009_v16  ;;  %4614 = vmatmul.bf16.vlgmr.msra.gmra.mxu0 %v3418_v47 }
 0x4a3   :  { %4627 = vmatmul.bf16.vlgmr.msrb.gmra.mxu1 %v3419_v13 }
 0x4a5   :  { %4533 = vmatpush.bf16.msra.mxu2 %v6000_v2 }
 0x4a6   :  { %4546 = vmatpush.bf16.msra.mxu3 %v6008_v3 }
 0x4a9   :  { %4534 = vmatpush.bf16.msra.mxu2 %v5999_v35 }
 0x4aa   :  { %4547 = vmatpush.bf16.msra.mxu3 %v6007_v61 }
 0x4ad   :  { %4535 = vmatpush.bf16.msra.mxu2 %v5998_v52 }
 0x4ae   :  { %4548 = vmatpush.bf16.msra.mxu3 %v6006_v20 }
 0x4b0   :  { %4536 = vmatmul.bf16.vlgmr.msra.gmra.mxu2 %v3412_v38 }
 0x4b1   :  { %4580 = vmatpush.bf16.msrb.mxu2 %v6037_v4  ;;  %4549 = vmatmul.bf16.vlgmr.msra.gmra.mxu3 %v3413_v12 }
 0x4b2   :  { %4593 = vmatpush.bf16.msrb.mxu3 %v6045_v37 }
 0x4b5   :  { %4581 = vmatpush.bf16.msrb.mxu2 %v6036_v48 }
 0x4b6   :  { %4594 = vmatpush.bf16.msrb.mxu3 %v6044_v43 }
 0x4b9   :  { %4582 = vmatpush.bf16.msrb.mxu2 %v6035_v54 }
 0x4ba   :  { %4595 = vmatpush.bf16.msrb.mxu3 %v6043_v36 }
 0x4bd   :  { %4583 = vmatpush.bf16.msrb.mxu2 %v6034_v59  ;;  %v6085_v59 = vld [vmem:[%s7431_s5 + $0x38] sm:$0xff] }
 0x4be   :  { %4596 = vmatpush.bf16.msrb.mxu3 %v6042_v62  ;;  %4728 = vmatpush.bf16.msrb.mxu0 %v6085_v59 }
 0x4c1   :  { %4584 = vmatpush.bf16.msrb.mxu2 %v6033_v11 }
 0x4c2   :  { %4597 = vmatpush.bf16.msrb.mxu3 %v6041_v17  ;;  %v6084_v17 = vld [vmem:[%s7431_s5 + $0x30] sm:$0xff] }
 0x4c3   :  { %4729 = vmatpush.bf16.msrb.mxu0 %v6084_v17 }
 0x4c5   :  { %4585 = vmatpush.bf16.msrb.mxu2 %v6032_v6 }
 0x4c6   :  { %4598 = vmatpush.bf16.msrb.mxu3 %v6040_v28 }
 0x4c9   :  { %4586 = vmatpush.bf16.msrb.mxu2 %v6031_v24  ;;  %v6083_v24 = vld [vmem:[%s7431_s5 + $0x28] sm:$0xff] }
 0x4ca   :  { %4599 = vmatpush.bf16.msrb.mxu3 %v6039_v49  ;;  %4730 = vmatpush.bf16.msrb.mxu0 %v6083_v24 }
 0x4cd   :  { %4587 = vmatpush.bf16.msrb.mxu2 %v6030_v39  ;;  %v6082_v39 = vld [vmem:[%s7431_s5 + $0x20] sm:$0xff] }
 0x4ce   :  { %4600 = vmatpush.bf16.msrb.mxu3 %v6038_v44  ;;  %4731 = vmatpush.bf16.msrb.mxu0 %v6082_v39  ;;  %v6081_v44 = vld [vmem:[%s7431_s5 + $0x18] sm:$0xff] }
 0x4d0   :  { %4588 = vmatmul.bf16.vlgmr.msrb.gmra.mxu2 %v3416_v5 }
 0x4d1   :  { %4632 = vmatpush.bf16.msra.mxu2 %v6069_v31  ;;  %4601 = vmatmul.bf16.vlgmr.msrb.gmra.mxu3 %v3417_v21  ;;  %v6080_v31 = vld [vmem:[%s7431_s5 + $0x10] sm:$0xff] }
 0x4d2   :  { %4645 = vmatpush.bf16.msra.mxu3 %v6077_v51  ;;  %4732 = vmatpush.bf16.msrb.mxu0 %v6081_v44 }
 0x4d5   :  { %4633 = vmatpush.bf16.msra.mxu2 %v6068_v63  ;;  %v6079_v63 = vld [vmem:[%s7431_s5 + $0x8] sm:$0xff] }
 0x4d6   :  { %4646 = vmatpush.bf16.msra.mxu3 %v6076_v22  ;;  %4733 = vmatpush.bf16.msrb.mxu0 %v6080_v31  ;;  %v6078_v22 = vld [vmem:[%s7431_s5] sm:$0xff] }
 0x4d9   :  { %4634 = vmatpush.bf16.msra.mxu2 %v6067_v10 }
 0x4da   :  { %4647 = vmatpush.bf16.msra.mxu3 %v6075_v7  ;;  %4734 = vmatpush.bf16.msrb.mxu0 %v6079_v63 }
 0x4dd   :  { %4635 = vmatpush.bf16.msra.mxu2 %v6066_v34 }
 0x4de   :  { %4648 = vmatpush.bf16.msra.mxu3 %v6074_v27  ;;  %4735 = vmatpush.bf16.msrb.mxu0 %v6078_v22 }
 0x4e1   :  { %4636 = vmatpush.bf16.msra.mxu2 %v6065_v46 }
 0x4e2   :  { %4649 = vmatpush.bf16.msra.mxu3 %v6073_v30 }
 0x4e5   :  { %4637 = vmatpush.bf16.msra.mxu2 %v6064_v55 }
 0x4e6   :  { %4650 = vmatpush.bf16.msra.mxu3 %v6072_v32 }
 0x4e9   :  { %4638 = vmatpush.bf16.msra.mxu2 %v6063_v25 }
 0x4ea   :  { %4651 = vmatpush.bf16.msra.mxu3 %v6071_v26 }
 0x4ed   :  { %4639 = vmatpush.bf16.msra.mxu2 %v6062_v50 }
 0x4ee   :  { %4652 = vmatpush.bf16.msra.mxu3 %v6070_v41  ;;  %v6090_v41 = vld [vmem:[%s7432_s6] ss:$0 sm:$0xff] }
 0x4f0   :  { %4640 = vmatmul.bf16.vlgmr.msra.gmra.mxu2 %v3420_v60 }
 0x4f1   :  { %4653 = vmatmul.bf16.vlgmr.msra.gmra.mxu3 %v3421_v0 }
 0x4f2   :  { %v4459_v19 = vpop.f32.mrf.mxu2 }
 0x4f3   :  { %v4460_v42 = vadd.f32 %v6089_v1, %v4459_v19  ;;  %v4472_v57 = vpop.f32.mrf.mxu3 }
 0x4f5   :  { %v4473_v23 = vadd.f32 %v4472_v57, %v4460_v42 }
 0x4fa   :  { %v4461_v56 = vpop.f32.mrf.mxu2 }
 0x4fb   :  { %v4474_v14 = vpop.f32.mrf.mxu3 }
 0x502   :  { %v4485_v33 = vpop.f32.mrf.mxu2 }
 0x503   :  { %v4486_v9 = vadd.f32 %v4485_v33, %v4473_v23  ;;  %v4498_v53 = vpop.f32.mrf.mxu3 }
 0x505   :  { %v4499_v15 = vadd.f32 %v4498_v53, %v4486_v9 }
 0x50a   :  { %v4487_v16 = vpop.f32.mrf.mxu2 }
 0x50b   :  { %v4500_v8 = vpop.f32.mrf.mxu3 }
 0x50f   :  { %v4563_v40 = vpop.f32.mrf.mxu0 }
 0x510   :  { %v4576_v47 = vpop.f32.mrf.mxu1 }
 0x513   :  { %v4511_v13 = vpop.f32.mrf.mxu2 }
 0x514   :  { %v4512_v2 = vadd.f32 %v4511_v13, %v4499_v15  ;;  %v4524_v3 = vpop.f32.mrf.mxu3 }
 0x516   :  { %v4525_v61 = vadd.f32 %v4524_v3, %v4512_v2 }
 0x517   :  { %v4565_v35 = vpop.f32.mrf.mxu0 }
 0x518   :  { %v4578_v52 = vpop.f32.mrf.mxu1 }
 0x51b   :  { %v4513_v20 = vpop.f32.mrf.mxu2 }
 0x51c   :  { %v4526_v4 = vpop.f32.mrf.mxu3 }
 0x51f   :  { %v4615_v37 = vpop.f32.mrf.mxu0 }
 0x520   :  { %v4628_v38 = vpop.f32.mrf.mxu1 }
 0x527   :  { %v4617_v48 = vpop.f32.mrf.mxu0 }
 0x528   :  { %v4630_v12 = vpop.f32.mrf.mxu1 }
 0x533   :  { %v4537_v43 = vpop.f32.mrf.mxu2 }
 0x534   :  { %v4538_v54 = vadd.f32 %v4537_v43, %v4525_v61  ;;  %v4550_v36 = vpop.f32.mrf.mxu3 }
 0x536   :  { %v4551_v62 = vadd.f32 %v4550_v36, %v4538_v54 }
 0x538   :  { %v4564_v11 = vadd.f32 %v4563_v40, %v4551_v62 }
 0x53a   :  { %v4577_v6 = vadd.f32 %v4576_v47, %v4564_v11 }
 0x53b   :  { %v4539_v28 = vpop.f32.mrf.mxu2 }
 0x53c   :  { %v4552_v49 = vpop.f32.mrf.mxu3 }
 0x553   :  { %v4589_v51 = vpop.f32.mrf.mxu2 }
 0x554   :  { %v4590_v45 = vadd.f32 %v4589_v51, %v4577_v6  ;;  %v4602_v29 = vpop.f32.mrf.mxu3 }
 0x556   :  { %v4603_v5 = vadd.f32 %v4602_v29, %v4590_v45 }
 0x558   :  { %v4616_v21 = vadd.f32 %v4615_v37, %v4603_v5 }
 0x55a   :  { %v4629_v10 = vadd.f32 %v4628_v38, %v4616_v21 }
 0x55b   :  { %v4591_v7 = vpop.f32.mrf.mxu2 }
 0x55c   :  { %v4604_v34 = vpop.f32.mrf.mxu3 }
 0x573   :  { %v4641_v27 = vpop.f32.mrf.mxu2 }
 0x574   :  { %v4642_v46 = vadd.f32 %v4641_v27, %v4629_v10  ;;  %v4654_v30 = vpop.f32.mrf.mxu3 }
 0x576   :  { %v4655_v55 = vadd.f32 %v4654_v30, %v4642_v46 }
 0x578   :  { %v4658_v32 = vmax.f32 %v4655_v55, 0.0 }
 0x57a   :  { %v4659_v25 = vpack.c.bf16 %v4658_v32, %v4658_v32 }
 0x57b   :  { %v4643_v26 = vpop.f32.mrf.mxu2 }
 0x57c   :  { %v4656_v50 = vpop.f32.mrf.mxu3  ;;  %4736 = vmatmul.bf16.vlgmr.msrb.gmra.mxu0 %v4659_v25 }
 0x5f9   :  { %v4737_v58 = vpop.f32.mrf.mxu0 }
 0x5fa   :  { %v4738_v18 = vadd.f32 %v6090_v41, %v4737_v58 }
 0x5fc   :  { %4741 = vst [vmem:[#allocation8] sm:$0x3] %v4738_v18 }
 0x5fd   :  { %4752 = dma.vmem_to_hbm [thread:$0]  %s4748_s25, 32, %s4750_s26, [#allocation9]  }
 0x601   :  { %v4739_v60 = vpop.f32.mrf.mxu0 }
 0x602   :  { %6115 = dma.done.wait [#allocation9], 32  }
 0x603   :  { %6116 = vsyncadd [#allocation9], 4294967264 }
 0x604   :  { %4757 = vsyncpa [#allocation9], 1 }

</bundles_post_ra>
